<compile_context>
chip_gen: v7x
topology: tpu7x:2x2x1
jax: 0.10.0
libtpu: 0.0.40
codegen_flags: <defaults>
</compile_context>

<pallas_src>
import functools

import jax
import jax.numpy as jnp
from jax import lax
from jax.experimental import pallas as pl
from jax.experimental.pallas import tpu as pltpu

_LANE = 128


def _round_up(v, m):
    return ((v + m - 1) // m) * m


def _pick_row_tile(H, W, target_rows=1024):
    """Largest divisor of H whose tile has <= target_rows flattened rows."""
    best = 1
    for d in range(1, H + 1):
        if H % d == 0 and d * W <= max(target_rows, W):
            best = d
    return best


# ----------------------------------------------------------------------------
# Fused kernel: 1x1 conv -> BN(shift) -> LeakyReLU -> 3x3 conv (9 taps) ->
#               BN(shift) -> LeakyReLU [-> + residual]
# ----------------------------------------------------------------------------
def _fused_repeat_kernel(xa_ref, xb0_ref, xb1_ref, w1_ref, b1_ref, w2_ref,
                         b2_ref, *rest, th, H, W, has_residual):
    if has_residual:
        res_ref, o_ref, mid_ref = rest
    else:
        o_ref, mid_ref = rest
        res_ref = None

    ti = pl.program_id(1)
    nt = pl.num_programs(1)
    cin = xa_ref.shape[-1]
    cm = w1_ref.shape[1]      # padded mid channels
    cout = w2_ref.shape[2]    # padded output channels

    # ---- stage 1: 1x1 conv (BN scale folded into w1) + shift + LeakyReLU ----
    # Rows = th output rows plus the 2 halo rows needed by the 3x3 conv.
    xt = jnp.concatenate([xa_ref[0], xb0_ref[0], xb1_ref[0]], axis=0)
    h = jnp.dot(xt.reshape((th + 2) * W, cin), w1_ref[...],
                preferred_element_type=jnp.float32)
    h = h + b1_ref[...]
    h = jnp.where(h > 0, h, 0.1 * h)

    # ---- stash mid activation in a zero-padded VMEM scratch (W+2 wide) ----
    mid_ref[...] = jnp.zeros_like(mid_ref)
    mid_ref[:, 1:W + 1, :] = h.reshape(th + 2, W, cm).astype(mid_ref.dtype)

    # Halo rows that fall outside the image are the 3x3 conv's zero padding.
    @pl.when(ti == 0)
    def _():
        mid_ref[0] = jnp.zeros((W + 2, cm), mid_ref.dtype)

    @pl.when(ti == nt - 1)
    def _():
        mid_ref[th + 1] = jnp.zeros((W + 2, cm), mid_ref.dtype)

    # ---- stage 2: 3x3 conv as 9 shifted matmuls accumulated in f32 ----
    acc = jnp.zeros((th * W, cout), jnp.float32)
    for t in range(9):
        dy, dx = t // 3, t % 3
        lhs = mid_ref[dy:dy + th, dx:dx + W, :].reshape(th * W, cm)
        acc = acc + jnp.dot(lhs, w2_ref[t], preferred_element_type=jnp.float32)

    y = acc + b2_ref[...]
    y = jnp.where(y > 0, y, 0.1 * y)
    y = y.reshape(th, W, cout)
    if has_residual:
        y = y + res_ref[0].astype(jnp.float32)
    o_ref[0] = y.astype(o_ref.dtype)


def _conv_pair_pallas(x, residual, p1, p2, *, th):
    """One repeat of the ResidualBlock body, fully fused in one pallas_call."""
    N, H, W, Cp = x.shape
    Cm = p1["w"].shape[1]
    assert H % th == 0, "row tile must divide H"
    nt = H // th
    has_res = residual is not None

    # Zero-pad one row top/bottom so the halo BlockSpecs are always in bounds
    # (the kernel re-zeroes the out-of-image mid rows itself).
    xpad = jnp.pad(x, ((0, 0), (1, 1), (0, 0), (0, 0)))

    kernel = functools.partial(_fused_repeat_kernel, th=th, H=H, W=W,
                               has_residual=has_res)

    in_specs = [
        pl.BlockSpec((1, th, W, Cp), lambda n, i: (n, i, 0, 0)),            # main rows
        pl.BlockSpec((1, 1, W, Cp), lambda n, i: (n, (i + 1) * th, 0, 0)),  # halo row 0
        pl.BlockSpec((1, 1, W, Cp), lambda n, i: (n, (i + 1) * th + 1, 0, 0)),  # halo 1
        pl.BlockSpec((Cp, Cm), lambda n, i: (0, 0)),                        # w1 (resident)
        pl.BlockSpec((1, Cm), lambda n, i: (0, 0)),                         # b1
        pl.BlockSpec((9, Cm, Cp), lambda n, i: (0, 0, 0)),                  # w2 (resident)
        pl.BlockSpec((1, Cp), lambda n, i: (0, 0)),                         # b2
    ]
    args = [xpad, xpad, xpad, p1["w"], p1["b"], p2["w"], p2["b"]]
    if has_res:
        in_specs.append(pl.BlockSpec((1, th, W, Cp), lambda n, i: (n, i, 0, 0)))
        args.append(residual)

    bpe = 2  # bf16
    flops = 2 * N * H * W * Cp * Cm * 10            # 1x1 + 9 taps of the 3x3
    bytes_accessed = (xpad.size + N * H * W * Cp * (2 if has_res else 1)) * bpe \
        + (p1["w"].size + p2["w"].size) * bpe + (p1["b"].size + p2["b"].size) * 4
    blk = (th * W * Cp * (2 + (1 if has_res else 0)) + 2 * W * Cp) * bpe
    wgt = (Cp * Cm + 9 * Cm * Cp) * bpe + (Cm + Cp) * 4
    scr = (th + 2) * (W + 2) * Cm * bpe
    vmem_limit = int(min(max(4 * blk + wgt + scr + (8 << 20), 16 << 20), 32 << 20))

    return pl.pallas_call(
        kernel,
        out_shape=jax.ShapeDtypeStruct((N, H, W, Cp), jnp.bfloat16),
        grid=(N, nt),
        in_specs=in_specs,
        out_specs=pl.BlockSpec((1, th, W, Cp), lambda n, i: (n, i, 0, 0)),
        scratch_shapes=[pltpu.VMEM((th + 2, W + 2, Cm), jnp.bfloat16)],
        compiler_params=pltpu.CompilerParams(
            dimension_semantics=("parallel", "parallel"),
            vmem_limit_bytes=vmem_limit),
        cost_estimate=pl.CostEstimate(flops=int(flops), transcendentals=0,
                                      bytes_accessed=int(bytes_accessed)),
    )(*args)


# ----------------------------------------------------------------------------
# Parameter init (deterministic, synthetic).  BN scale is folded into the
# weights; only the shift survives as a bias.  Channel dims padded to 128.
# ----------------------------------------------------------------------------
def init_block_params(key, cin, cout, ksize, cin_pad, cout_pad, eps=1e-5):
    k1, k2, k3, k4, k5 = jax.random.split(key, 5)
    w_pt = jax.random.normal(k1, (cout, cin, ksize, ksize), jnp.float32) * 0.1
    gamma = 1.0 + 0.1 * jax.random.normal(k2, (cout,), jnp.float32)
    beta = 0.1 * jax.random.normal(k3, (cout,), jnp.float32)
    mean = 0.1 * jax.random.normal(k4, (cout,), jnp.float32)
    var = jax.random.uniform(k5, (cout,), jnp.float32, minval=0.5, maxval=1.5)
    scale = gamma / jnp.sqrt(var + eps)
    shift = beta - mean * scale
    if ksize == 1:
        w = jnp.transpose(w_pt[:, :, 0, 0], (1, 0)) * scale[None, :]       # (cin, cout)
        w = jnp.pad(w, ((0, cin_pad - cin), (0, cout_pad - cout)))
    else:
        w = jnp.transpose(w_pt, (2, 3, 1, 0)).reshape(ksize * ksize, cin, cout)
        w = w * scale[None, None, :]                                       # (9, cin, cout)
        w = jnp.pad(w, ((0, 0), (0, cin_pad - cin), (0, cout_pad - cout)))
    b = jnp.pad(shift, (0, cout_pad - cout))[None, :]
    return dict(w_pt=w_pt, scale=scale, shift=shift,
                w=w.astype(jnp.bfloat16), b=b.astype(jnp.float32))


def init_residual_block_params(key, channels, repeat):
    cmid = channels // 2
    cpad, cmid_pad = _round_up(channels, _LANE), _round_up(cmid, _LANE)
    params = []
    for _ in range(repeat):
        k1, k2, key = jax.random.split(key, 3)
        p1 = init_block_params(k1, channels, cmid, 1, cpad, cmid_pad)
        p2 = init_block_params(k2, cmid, channels, 3, cmid_pad, cpad)
        params.append((p1, p2))
    return params


# ----------------------------------------------------------------------------
# ResidualBlock forward (wrapper: layout glue only; all compute in Pallas)
# ----------------------------------------------------------------------------
def residual_block_forward(x_nchw, params, use_residual=True, row_tile=None):
    N, C, H, W = x_nchw.shape
    Cp = params[0][0]["w"].shape[0]                      # padded channels
    th = row_tile if row_tile is not None else _pick_row_tile(H, W)

    x = jnp.transpose(x_nchw, (0, 2, 3, 1)).astype(jnp.bfloat16)   # NHWC, bf16
    x = jnp.pad(x, ((0, 0), (0, 0), (0, 0), (0, Cp - C)))          # lane padding

    cur = x
    last = len(params) - 1
    for r, (p1, p2) in enumerate(params):
        res = x if (use_residual and r == last) else None          # out = x + Seq(x)
        cur = _conv_pair_pallas(cur, res, p1, p2, th=th)

    out = cur[..., :C].astype(jnp.float32)
    return jnp.transpose(out, (0, 3, 1, 2))                        # back to NCHW


# ----------------------------------------------------------------------------
# Pure-JAX reference (f32 lax.conv, NCHW) for a correctness check
# ----------------------------------------------------------------------------
def _bn_leaky_ref(h, p):
    y = h * p["scale"].reshape(1, -1, 1, 1) + p["shift"].reshape(1, -1, 1, 1)
    return jnp.where(y > 0, y, 0.1 * y)


def residual_block_reference(x, params, use_residual=True):
    out = x
    for p1, p2 in params:
        h = lax.conv_general_dilated(out, p1["w_pt"], (1, 1), "VALID",
                                     dimension_numbers=("NCHW", "OIHW", "NCHW"))
        h = _bn_leaky_ref(h, p1)
        h = lax.conv_general_dilated(h, p2["w_pt"], (1, 1), [(1, 1), (1, 1)],
                                     dimension_numbers=("NCHW", "OIHW", "NCHW"))
        h = _bn_leaky_ref(h, p2)
        out = h
    if use_residual:
        out = x + out
    return out


# ----------------------------------------------------------------------------
if __name__ == "__main__":
    key = jax.random.PRNGKey(0)
    kx, kp = jax.random.split(key)

    N, C, H, W = 2, 4, 16, 16      # In_Output = 4
    REPEAT = 2
    USE_RESIDUAL = True

    x = jax.random.normal(kx, (N, C, H, W), jnp.float32)
    # Quantize input once so the bf16 Pallas path and the f32 reference agree.
    x = x.astype(jnp.bfloat16).astype(jnp.float32)
    params = init_residual_block_params(kp, C, REPEAT)

    fwd = jax.jit(functools.partial(residual_block_forward,
                                    use_residual=USE_RESIDUAL, row_tile=8))
    out = jax.block_until_ready(fwd(x, params))

    ref = jax.block_until_ready(residual_block_reference(x, params, USE_RESIDUAL))
    assert out.shape == (N, C, H, W)
    assert jnp.allclose(out, ref, rtol=2e-2, atol=2e-2), "mismatch vs reference"

    print("KERNEL_OK")
</pallas_src>

<mosaic_0001>
module attributes {stable_mosaic.version = 11 : i64} {
  func.func @_fused_repeat_kernel(%arg0: i32, %arg1: i32, %arg2: memref<1x8x16x128xbf16, #tpu.memory_space<vmem>>, %arg3: memref<1x1x16x128xbf16, #tpu.memory_space<vmem>>, %arg4: memref<1x1x16x128xbf16, #tpu.memory_space<vmem>>, %arg5: memref<128x128xbf16, #tpu.memory_space<vmem>>, %arg6: memref<1x128xf32, #tpu.memory_space<vmem>>, %arg7: memref<9x128x128xbf16, #tpu.memory_space<vmem>>, %arg8: memref<1x128xf32, #tpu.memory_space<vmem>>, %arg9: memref<1x8x16x128xbf16, #tpu.memory_space<vmem>>, %arg10: memref<10x18x128xbf16, #tpu.memory_space<vmem>>) attributes {dimension_semantics = [#tpu.dimension_semantics<parallel>, #tpu.dimension_semantics<parallel>], iteration_bounds = array<i64: 2, 2>, scalar_prefetch = 0 : i64, scratch_operands = 1 : i64, tpu.core_type = #tpu.core_type<tc>, window_params = [{transform_indices = @transform_0, window_bounds = array<i64: 1, 8, 16, 128>}, {transform_indices = @transform_1, window_bounds = array<i64: 1, 1, 16, 128>}, {transform_indices = @transform_2, window_bounds = array<i64: 1, 1, 16, 128>}, {pipeline_mode = #tpu.pipeline_mode<synchronous>, transform_indices = @transform_3, window_bounds = array<i64: 128, 128>}, {pipeline_mode = #tpu.pipeline_mode<synchronous>, transform_indices = @transform_4, window_bounds = array<i64: 1, 128>}, {pipeline_mode = #tpu.pipeline_mode<synchronous>, transform_indices = @transform_5, window_bounds = array<i64: 9, 128, 128>}, {pipeline_mode = #tpu.pipeline_mode<synchronous>, transform_indices = @transform_6, window_bounds = array<i64: 1, 128>}, {transform_indices = @transform_7, window_bounds = array<i64: 1, 8, 16, 128>}]} {
    %c0 = arith.constant 0 : index
    %c0_0 = arith.constant 0 : index
    %c0_1 = arith.constant 0 : index
    %c0_2 = arith.constant 0 : index
    %0 = vector.load %arg2[%c0, %c0_0, %c0_1, %c0_2] : memref<1x8x16x128xbf16, #tpu.memory_space<vmem>>, vector<1x8x16x128xbf16>
    %1 = vector.shape_cast %0 : vector<1x8x16x128xbf16> to vector<8x16x128xbf16>
    %c0_3 = arith.constant 0 : index
    %c0_4 = arith.constant 0 : index
    %c0_5 = arith.constant 0 : index
    %c0_6 = arith.constant 0 : index
    %2 = vector.load %arg3[%c0_3, %c0_4, %c0_5, %c0_6] : memref<1x1x16x128xbf16, #tpu.memory_space<vmem>>, vector<1x1x16x128xbf16>
    %3 = vector.shape_cast %2 : vector<1x1x16x128xbf16> to vector<1x16x128xbf16>
    %c0_7 = arith.constant 0 : index
    %c0_8 = arith.constant 0 : index
    %c0_9 = arith.constant 0 : index
    %c0_10 = arith.constant 0 : index
    %4 = vector.load %arg4[%c0_7, %c0_8, %c0_9, %c0_10] : memref<1x1x16x128xbf16, #tpu.memory_space<vmem>>, vector<1x1x16x128xbf16>
    %5 = vector.shape_cast %4 : vector<1x1x16x128xbf16> to vector<1x16x128xbf16>
    %6 = tpu.concatenate %1, %3, %5 in 0 : vector<8x16x128xbf16>, vector<1x16x128xbf16>, vector<1x16x128xbf16> -> vector<10x16x128xbf16>
    %7 = vector.shape_cast %6 : vector<10x16x128xbf16> to vector<160x128xbf16>
    %c0_11 = arith.constant 0 : index
    %c0_12 = arith.constant 0 : index
    %8 = vector.load %arg5[%c0_11, %c0_12] : memref<128x128xbf16, #tpu.memory_space<vmem>>, vector<128x128xbf16>
    %cst = arith.constant dense<0.000000e+00> : vector<160x128xf32>
    %9 = tpu.matmul %7, %8, %cst {dimension_numbers = #tpu.dot_dimension_numbers<[1], [0], [0], [1], [0, 0, 1, 1], [], []>} : vector<160x128xbf16>, vector<128x128xbf16>, vector<160x128xf32> -> vector<160x128xf32>
    %c0_13 = arith.constant 0 : index
    %c0_14 = arith.constant 0 : index
    %10 = vector.load %arg6[%c0_13, %c0_14] : memref<1x128xf32, #tpu.memory_space<vmem>>, vector<1x128xf32>
    %11 = vector.broadcast %10 : vector<1x128xf32> to vector<160x128xf32>
    %12 = arith.addf %9, %11 : vector<160x128xf32>
    %cst_15 = arith.constant 0.000000e+00 : f32
    %13 = vector.broadcast %cst_15 : f32 to vector<160x128xf32>
    %14 = arith.cmpf ogt, %12, %13 : vector<160x128xf32>
    %cst_16 = arith.constant 1.000000e-01 : f32
    %15 = vector.broadcast %cst_16 : f32 to vector<160x128xf32>
    %16 = arith.mulf %15, %12 : vector<160x128xf32>
    %17 = arith.select %14, %12, %16 : vector<160x128xi1>, vector<160x128xf32>
    %cst_17 = arith.constant 0.000000e+00 : bf16
    %18 = vector.broadcast %cst_17 : bf16 to vector<10x18x128xbf16>
    %c0_18 = arith.constant 0 : index
    %c0_19 = arith.constant 0 : index
    %c0_20 = arith.constant 0 : index
    %19 = vector.load %arg10[%c0_18, %c0_19, %c0_20] : memref<10x18x128xbf16, #tpu.memory_space<vmem>>, vector<10x18x128xbf16>
    tpu.vector_store %arg10[%c0_18, %c0_19, %c0_20], %18 {strides = array<i32>} : memref<10x18x128xbf16, #tpu.memory_space<vmem>>, vector<10x18x128xbf16>,
    %20 = vector.shape_cast %17 : vector<160x128xf32> to vector<10x16x128xf32>
    %21 = arith.truncf %20 : vector<10x16x128xf32> to vector<10x16x128xbf16>
    %c0_21 = arith.constant 0 : index
    %c1 = arith.constant 1 : index
    %c0_22 = arith.constant 0 : index
    %22 = vector.load %arg10[%c0_21, %c1, %c0_22] : memref<10x18x128xbf16, #tpu.memory_space<vmem>>, vector<10x16x128xbf16>
    tpu.vector_store %arg10[%c0_21, %c1, %c0_22], %21 {strides = array<i32>} : memref<10x18x128xbf16, #tpu.memory_space<vmem>>, vector<10x16x128xbf16>,
    %c0_i32 = arith.constant 0 : i32
    %23 = arith.cmpi eq, %arg1, %c0_i32 : i32
    %24 = arith.extui %23 : i1 to i32
    %c0_i32_23 = arith.constant 0 : i32
    %25 = arith.cmpi ne, %24, %c0_i32_23 : i32
    scf.if %25 {
      %cst_90 = arith.constant 0.000000e+00 : bf16
      %97 = vector.broadcast %cst_90 : bf16 to vector<18x128xbf16>
      %c0_91 = arith.constant 0 : index
      %c0_92 = arith.constant 0 : index
      %c0_93 = arith.constant 0 : index
      %98 = vector.load %arg10[%c0_91, %c0_92, %c0_93] : memref<10x18x128xbf16, #tpu.memory_space<vmem>>, vector<1x18x128xbf16>
      %99 = vector.shape_cast %98 : vector<1x18x128xbf16> to vector<18x128xbf16>
      %100 = vector.shape_cast %97 : vector<18x128xbf16> to vector<1x18x128xbf16>
      tpu.vector_store %arg10[%c0_91, %c0_92, %c0_93], %100 {strides = array<i32>} : memref<10x18x128xbf16, #tpu.memory_space<vmem>>, vector<1x18x128xbf16>,
    } else {
    }
    %c1_i32 = arith.constant 1 : i32
    %26 = arith.cmpi eq, %arg1, %c1_i32 : i32
    %27 = arith.extui %26 : i1 to i32
    %c0_i32_24 = arith.constant 0 : i32
    %28 = arith.cmpi ne, %27, %c0_i32_24 : i32
    scf.if %28 {
      %cst_90 = arith.constant 0.000000e+00 : bf16
      %97 = vector.broadcast %cst_90 : bf16 to vector<18x128xbf16>
      %c9 = arith.constant 9 : index
      %c0_91 = arith.constant 0 : index
      %c0_92 = arith.constant 0 : index
      %98 = vector.load %arg10[%c9, %c0_91, %c0_92] : memref<10x18x128xbf16, #tpu.memory_space<vmem>>, vector<1x18x128xbf16>
      %99 = vector.shape_cast %98 : vector<1x18x128xbf16> to vector<18x128xbf16>
      %100 = vector.shape_cast %97 : vector<18x128xbf16> to vector<1x18x128xbf16>
      tpu.vector_store %arg10[%c9, %c0_91, %c0_92], %100 {strides = array<i32>} : memref<10x18x128xbf16, #tpu.memory_space<vmem>>, vector<1x18x128xbf16>,
    } else {
    }
    %cst_25 = arith.constant 0.000000e+00 : f32
    %29 = vector.broadcast %cst_25 : f32 to vector<128x128xf32>
    %c0_26 = arith.constant 0 : index
    %c0_27 = arith.constant 0 : index
    %c0_28 = arith.constant 0 : index
    %30 = vector.load %arg10[%c0_26, %c0_27, %c0_28] : memref<10x18x128xbf16, #tpu.memory_space<vmem>>, vector<8x16x128xbf16>
    %31 = vector.shape_cast %30 : vector<8x16x128xbf16> to vector<128x128xbf16>
    %c0_29 = arith.constant 0 : index
    %c0_30 = arith.constant 0 : index
    %c0_31 = arith.constant 0 : index
    %32 = vector.load %arg7[%c0_29, %c0_30, %c0_31] : memref<9x128x128xbf16, #tpu.memory_space<vmem>>, vector<1x128x128xbf16>
    %33 = vector.shape_cast %32 : vector<1x128x128xbf16> to vector<128x128xbf16>
    %cst_32 = arith.constant dense<0.000000e+00> : vector<128x128xf32>
    %34 = tpu.matmul %31, %33, %cst_32 {dimension_numbers = #tpu.dot_dimension_numbers<[1], [0], [0], [1], [0, 0, 1, 1], [], []>} : vector<128x128xbf16>, vector<128x128xbf16>, vector<128x128xf32> -> vector<128x128xf32>
    %35 = arith.addf %29, %34 : vector<128x128xf32>
    %c0_33 = arith.constant 0 : index
    %c1_34 = arith.constant 1 : index
    %c0_35 = arith.constant 0 : index
    %36 = vector.load %arg10[%c0_33, %c1_34, %c0_35] : memref<10x18x128xbf16, #tpu.memory_space<vmem>>, vector<8x16x128xbf16>
    %37 = vector.shape_cast %36 : vector<8x16x128xbf16> to vector<128x128xbf16>
    %c1_36 = arith.constant 1 : index
    %c0_37 = arith.constant 0 : index
    %c0_38 = arith.constant 0 : index
    %38 = vector.load %arg7[%c1_36, %c0_37, %c0_38] : memref<9x128x128xbf16, #tpu.memory_space<vmem>>, vector<1x128x128xbf16>
    %39 = vector.shape_cast %38 : vector<1x128x128xbf16> to vector<128x128xbf16>
    %cst_39 = arith.constant dense<0.000000e+00> : vector<128x128xf32>
    %40 = tpu.matmul %37, %39, %cst_39 {dimension_numbers = #tpu.dot_dimension_numbers<[1], [0], [0], [1], [0, 0, 1, 1], [], []>} : vector<128x128xbf16>, vector<128x128xbf16>, vector<128x128xf32> -> vector<128x128xf32>
    %41 = arith.addf %35, %40 : vector<128x128xf32>
    %c0_40 = arith.constant 0 : index
    %c2 = arith.constant 2 : index
    %c0_41 = arith.constant 0 : index
    %42 = vector.load %arg10[%c0_40, %c2, %c0_41] : memref<10x18x128xbf16, #tpu.memory_space<vmem>>, vector<8x16x128xbf16>
    %43 = vector.shape_cast %42 : vector<8x16x128xbf16> to vector<128x128xbf16>
    %c2_42 = arith.constant 2 : index
    %c0_43 = arith.constant 0 : index
    %c0_44 = arith.constant 0 : index
    %44 = vector.load %arg7[%c2_42, %c0_43, %c0_44] : memref<9x128x128xbf16, #tpu.memory_space<vmem>>, vector<1x128x128xbf16>
    %45 = vector.shape_cast %44 : vector<1x128x128xbf16> to vector<128x128xbf16>
    %cst_45 = arith.constant dense<0.000000e+00> : vector<128x128xf32>
    %46 = tpu.matmul %43, %45, %cst_45 {dimension_numbers = #tpu.dot_dimension_numbers<[1], [0], [0], [1], [0, 0, 1, 1], [], []>} : vector<128x128xbf16>, vector<128x128xbf16>, vector<128x128xf32> -> vector<128x128xf32>
    %47 = arith.addf %41, %46 : vector<128x128xf32>
    %c1_46 = arith.constant 1 : index
    %c0_47 = arith.constant 0 : index
    %c0_48 = arith.constant 0 : index
    %48 = vector.load %arg10[%c1_46, %c0_47, %c0_48] : memref<10x18x128xbf16, #tpu.memory_space<vmem>>, vector<8x16x128xbf16>
    %49 = vector.shape_cast %48 : vector<8x16x128xbf16> to vector<128x128xbf16>
    %c3 = arith.constant 3 : index
    %c0_49 = arith.constant 0 : index
    %c0_50 = arith.constant 0 : index
    %50 = vector.load %arg7[%c3, %c0_49, %c0_50] : memref<9x128x128xbf16, #tpu.memory_space<vmem>>, vector<1x128x128xbf16>
    %51 = vector.shape_cast %50 : vector<1x128x128xbf16> to vector<128x128xbf16>
    %cst_51 = arith.constant dense<0.000000e+00> : vector<128x128xf32>
    %52 = tpu.matmul %49, %51, %cst_51 {dimension_numbers = #tpu.dot_dimension_numbers<[1], [0], [0], [1], [0, 0, 1, 1], [], []>} : vector<128x128xbf16>, vector<128x128xbf16>, vector<128x128xf32> -> vector<128x128xf32>
    %53 = arith.addf %47, %52 : vector<128x128xf32>
    %c1_52 = arith.constant 1 : index
    %c1_53 = arith.constant 1 : index
    %c0_54 = arith.constant 0 : index
    %54 = vector.load %arg10[%c1_52, %c1_53, %c0_54] : memref<10x18x128xbf16, #tpu.memory_space<vmem>>, vector<8x16x128xbf16>
    %55 = vector.shape_cast %54 : vector<8x16x128xbf16> to vector<128x128xbf16>
    %c4 = arith.constant 4 : index
    %c0_55 = arith.constant 0 : index
    %c0_56 = arith.constant 0 : index
    %56 = vector.load %arg7[%c4, %c0_55, %c0_56] : memref<9x128x128xbf16, #tpu.memory_space<vmem>>, vector<1x128x128xbf16>
    %57 = vector.shape_cast %56 : vector<1x128x128xbf16> to vector<128x128xbf16>
    %cst_57 = arith.constant dense<0.000000e+00> : vector<128x128xf32>
    %58 = tpu.matmul %55, %57, %cst_57 {dimension_numbers = #tpu.dot_dimension_numbers<[1], [0], [0], [1], [0, 0, 1, 1], [], []>} : vector<128x128xbf16>, vector<128x128xbf16>, vector<128x128xf32> -> vector<128x128xf32>
    %59 = arith.addf %53, %58 : vector<128x128xf32>
    %c1_58 = arith.constant 1 : index
    %c2_59 = arith.constant 2 : index
    %c0_60 = arith.constant 0 : index
    %60 = vector.load %arg10[%c1_58, %c2_59, %c0_60] : memref<10x18x128xbf16, #tpu.memory_space<vmem>>, vector<8x16x128xbf16>
    %61 = vector.shape_cast %60 : vector<8x16x128xbf16> to vector<128x128xbf16>
    %c5 = arith.constant 5 : index
    %c0_61 = arith.constant 0 : index
    %c0_62 = arith.constant 0 : index
    %62 = vector.load %arg7[%c5, %c0_61, %c0_62] : memref<9x128x128xbf16, #tpu.memory_space<vmem>>, vector<1x128x128xbf16>
    %63 = vector.shape_cast %62 : vector<1x128x128xbf16> to vector<128x128xbf16>
    %cst_63 = arith.constant dense<0.000000e+00> : vector<128x128xf32>
    %64 = tpu.matmul %61, %63, %cst_63 {dimension_numbers = #tpu.dot_dimension_numbers<[1], [0], [0], [1], [0, 0, 1, 1], [], []>} : vector<128x128xbf16>, vector<128x128xbf16>, vector<128x128xf32> -> vector<128x128xf32>
    %65 = arith.addf %59, %64 : vector<128x128xf32>
    %c2_64 = arith.constant 2 : index
    %c0_65 = arith.constant 0 : index
    %c0_66 = arith.constant 0 : index
    %66 = vector.load %arg10[%c2_64, %c0_65, %c0_66] : memref<10x18x128xbf16, #tpu.memory_space<vmem>>, vector<8x16x128xbf16>
    %67 = vector.shape_cast %66 : vector<8x16x128xbf16> to vector<128x128xbf16>
    %c6 = arith.constant 6 : index
    %c0_67 = arith.constant 0 : index
    %c0_68 = arith.constant 0 : index
    %68 = vector.load %arg7[%c6, %c0_67, %c0_68] : memref<9x128x128xbf16, #tpu.memory_space<vmem>>, vector<1x128x128xbf16>
    %69 = vector.shape_cast %68 : vector<1x128x128xbf16> to vector<128x128xbf16>
    %cst_69 = arith.constant dense<0.000000e+00> : vector<128x128xf32>
    %70 = tpu.matmul %67, %69, %cst_69 {dimension_numbers = #tpu.dot_dimension_numbers<[1], [0], [0], [1], [0, 0, 1, 1], [], []>} : vector<128x128xbf16>, vector<128x128xbf16>, vector<128x128xf32> -> vector<128x128xf32>
    %71 = arith.addf %65, %70 : vector<128x128xf32>
    %c2_70 = arith.constant 2 : index
    %c1_71 = arith.constant 1 : index
    %c0_72 = arith.constant 0 : index
    %72 = vector.load %arg10[%c2_70, %c1_71, %c0_72] : memref<10x18x128xbf16, #tpu.memory_space<vmem>>, vector<8x16x128xbf16>
    %73 = vector.shape_cast %72 : vector<8x16x128xbf16> to vector<128x128xbf16>
    %c7 = arith.constant 7 : index
    %c0_73 = arith.constant 0 : index
    %c0_74 = arith.constant 0 : index
    %74 = vector.load %arg7[%c7, %c0_73, %c0_74] : memref<9x128x128xbf16, #tpu.memory_space<vmem>>, vector<1x128x128xbf16>
    %75 = vector.shape_cast %74 : vector<1x128x128xbf16> to vector<128x128xbf16>
    %cst_75 = arith.constant dense<0.000000e+00> : vector<128x128xf32>
    %76 = tpu.matmul %73, %75, %cst_75 {dimension_numbers = #tpu.dot_dimension_numbers<[1], [0], [0], [1], [0, 0, 1, 1], [], []>} : vector<128x128xbf16>, vector<128x128xbf16>, vector<128x128xf32> -> vector<128x128xf32>
    %77 = arith.addf %71, %76 : vector<128x128xf32>
    %c2_76 = arith.constant 2 : index
    %c2_77 = arith.constant 2 : index
    %c0_78 = arith.constant 0 : index
    %78 = vector.load %arg10[%c2_76, %c2_77, %c0_78] : memref<10x18x128xbf16, #tpu.memory_space<vmem>>, vector<8x16x128xbf16>
    %79 = vector.shape_cast %78 : vector<8x16x128xbf16> to vector<128x128xbf16>
    %c8 = arith.constant 8 : index
    %c0_79 = arith.constant 0 : index
    %c0_80 = arith.constant 0 : index
    %80 = vector.load %arg7[%c8, %c0_79, %c0_80] : memref<9x128x128xbf16, #tpu.memory_space<vmem>>, vector<1x128x128xbf16>
    %81 = vector.shape_cast %80 : vector<1x128x128xbf16> to vector<128x128xbf16>
    %cst_81 = arith.constant dense<0.000000e+00> : vector<128x128xf32>
    %82 = tpu.matmul %79, %81, %cst_81 {dimension_numbers = #tpu.dot_dimension_numbers<[1], [0], [0], [1], [0, 0, 1, 1], [], []>} : vector<128x128xbf16>, vector<128x128xbf16>, vector<128x128xf32> -> vector<128x128xf32>
    %83 = arith.addf %77, %82 : vector<128x128xf32>
    %c0_82 = arith.constant 0 : index
    %c0_83 = arith.constant 0 : index
    %84 = vector.load %arg8[%c0_82, %c0_83] : memref<1x128xf32, #tpu.memory_space<vmem>>, vector<1x128xf32>
    %85 = vector.broadcast %84 : vector<1x128xf32> to vector<128x128xf32>
    %86 = arith.addf %83, %85 : vector<128x128xf32>
    %cst_84 = arith.constant 0.000000e+00 : f32
    %87 = vector.broadcast %cst_84 : f32 to vector<128x128xf32>
    %88 = arith.cmpf ogt, %86, %87 : vector<128x128xf32>
    %cst_85 = arith.constant 1.000000e-01 : f32
    %89 = vector.broadcast %cst_85 : f32 to vector<128x128xf32>
    %90 = arith.mulf %89, %86 : vector<128x128xf32>
    %91 = arith.select %88, %86, %90 : vector<128x128xi1>, vector<128x128xf32>
    %92 = vector.shape_cast %91 : vector<128x128xf32> to vector<8x16x128xf32>
    %93 = arith.truncf %92 : vector<8x16x128xf32> to vector<8x16x128xbf16>
    %c0_86 = arith.constant 0 : index
    %c0_87 = arith.constant 0 : index
    %c0_88 = arith.constant 0 : index
    %c0_89 = arith.constant 0 : index
    %94 = vector.load %arg9[%c0_86, %c0_87, %c0_88, %c0_89] : memref<1x8x16x128xbf16, #tpu.memory_space<vmem>>, vector<1x8x16x128xbf16>
    %95 = vector.shape_cast %94 : vector<1x8x16x128xbf16> to vector<8x16x128xbf16>
    %96 = vector.shape_cast %93 : vector<8x16x128xbf16> to vector<1x8x16x128xbf16>
    tpu.vector_store %arg9[%c0_86, %c0_87, %c0_88, %c0_89], %96 {strides = array<i32>} : memref<1x8x16x128xbf16, #tpu.memory_space<vmem>>, vector<1x8x16x128xbf16>,
    return
  }
  func.func @transform_0(%arg0: i32, %arg1: i32) -> (i32, i32, i32, i32) {
    %c0_i32 = arith.constant 0 : i32
    %c0_i32_0 = arith.constant 0 : i32
    %c0_i32_1 = arith.constant 0 : i32
    return %arg0, %arg1, %c0_i32, %c0_i32_0 : i32, i32, i32, i32
  }
  func.func @transform_1(%arg0: i32, %arg1: i32) -> (i32, i32, i32, i32) {
    %c1_i32 = arith.constant 1 : i32
    %0 = arith.addi %arg1, %c1_i32 : i32
    %c8_i32 = arith.constant 8 : i32
    %1 = arith.muli %0, %c8_i32 : i32
    %c0_i32 = arith.constant 0 : i32
    %c0_i32_0 = arith.constant 0 : i32
    %c0_i32_1 = arith.constant 0 : i32
    return %arg0, %1, %c0_i32, %c0_i32_0 : i32, i32, i32, i32
  }
  func.func @transform_2(%arg0: i32, %arg1: i32) -> (i32, i32, i32, i32) {
    %c1_i32 = arith.constant 1 : i32
    %0 = arith.addi %arg1, %c1_i32 : i32
    %c8_i32 = arith.constant 8 : i32
    %1 = arith.muli %0, %c8_i32 : i32
    %c1_i32_0 = arith.constant 1 : i32
    %2 = arith.addi %1, %c1_i32_0 : i32
    %c0_i32 = arith.constant 0 : i32
    %c0_i32_1 = arith.constant 0 : i32
    %c0_i32_2 = arith.constant 0 : i32
    return %arg0, %2, %c0_i32, %c0_i32_1 : i32, i32, i32, i32
  }
  func.func @transform_3(%arg0: i32, %arg1: i32) -> (i32, i32) {
    %c0_i32 = arith.constant 0 : i32
    %c0_i32_0 = arith.constant 0 : i32
    %c0_i32_1 = arith.constant 0 : i32
    return %c0_i32, %c0_i32_0 : i32, i32
  }
  func.func @transform_4(%arg0: i32, %arg1: i32) -> (i32, i32) {
    %c0_i32 = arith.constant 0 : i32
    %c0_i32_0 = arith.constant 0 : i32
    %c0_i32_1 = arith.constant 0 : i32
    return %c0_i32, %c0_i32_0 : i32, i32
  }
  func.func @transform_5(%arg0: i32, %arg1: i32) -> (i32, i32, i32) {
    %c0_i32 = arith.constant 0 : i32
    %c0_i32_0 = arith.constant 0 : i32
    %c0_i32_1 = arith.constant 0 : i32
    %c0_i32_2 = arith.constant 0 : i32
    return %c0_i32, %c0_i32_0, %c0_i32_1 : i32, i32, i32
  }
  func.func @transform_6(%arg0: i32, %arg1: i32) -> (i32, i32) {
    %c0_i32 = arith.constant 0 : i32
    %c0_i32_0 = arith.constant 0 : i32
    %c0_i32_1 = arith.constant 0 : i32
    return %c0_i32, %c0_i32_0 : i32, i32
  }
  func.func @transform_7(%arg0: i32, %arg1: i32) -> (i32, i32, i32, i32) {
    %c0_i32 = arith.constant 0 : i32
    %c0_i32_0 = arith.constant 0 : i32
    %c0_i32_1 = arith.constant 0 : i32
    return %arg0, %arg1, %c0_i32, %c0_i32_0 : i32, i32, i32, i32
  }
}

module attributes {stable_mosaic.version = 11 : i64} {
  func.func @_fused_repeat_kernel(%arg0: i32, %arg1: i32, %arg2: memref<1x8x16x128xbf16, #tpu.memory_space<vmem>>, %arg3: memref<1x1x16x128xbf16, #tpu.memory_space<vmem>>, %arg4: memref<1x1x16x128xbf16, #tpu.memory_space<vmem>>, %arg5: memref<128x128xbf16, #tpu.memory_space<vmem>>, %arg6: memref<1x128xf32, #tpu.memory_space<vmem>>, %arg7: memref<9x128x128xbf16, #tpu.memory_space<vmem>>, %arg8: memref<1x128xf32, #tpu.memory_space<vmem>>, %arg9: memref<1x8x16x128xbf16, #tpu.memory_space<vmem>>, %arg10: memref<1x8x16x128xbf16, #tpu.memory_space<vmem>>, %arg11: memref<10x18x128xbf16, #tpu.memory_space<vmem>>) attributes {dimension_semantics = [#tpu.dimension_semantics<parallel>, #tpu.dimension_semantics<parallel>], iteration_bounds = array<i64: 2, 2>, scalar_prefetch = 0 : i64, scratch_operands = 1 : i64, tpu.core_type = #tpu.core_type<tc>, window_params = [{transform_indices = @transform_0, window_bounds = array<i64: 1, 8, 16, 128>}, {transform_indices = @transform_1, window_bounds = array<i64: 1, 1, 16, 128>}, {transform_indices = @transform_2, window_bounds = array<i64: 1, 1, 16, 128>}, {pipeline_mode = #tpu.pipeline_mode<synchronous>, transform_indices = @transform_3, window_bounds = array<i64: 128, 128>}, {pipeline_mode = #tpu.pipeline_mode<synchronous>, transform_indices = @transform_4, window_bounds = array<i64: 1, 128>}, {pipeline_mode = #tpu.pipeline_mode<synchronous>, transform_indices = @transform_5, window_bounds = array<i64: 9, 128, 128>}, {pipeline_mode = #tpu.pipeline_mode<synchronous>, transform_indices = @transform_6, window_bounds = array<i64: 1, 128>}, {transform_indices = @transform_7, window_bounds = array<i64: 1, 8, 16, 128>}, {transform_indices = @transform_8, window_bounds = array<i64: 1, 8, 16, 128>}]} {
    %c0 = arith.constant 0 : index
    %c0_0 = arith.constant 0 : index
    %c0_1 = arith.constant 0 : index
    %c0_2 = arith.constant 0 : index
    %0 = vector.load %arg2[%c0, %c0_0, %c0_1, %c0_2] : memref<1x8x16x128xbf16, #tpu.memory_space<vmem>>, vector<1x8x16x128xbf16>
    %1 = vector.shape_cast %0 : vector<1x8x16x128xbf16> to vector<8x16x128xbf16>
    %c0_3 = arith.constant 0 : index
    %c0_4 = arith.constant 0 : index
    %c0_5 = arith.constant 0 : index
    %c0_6 = arith.constant 0 : index
    %2 = vector.load %arg3[%c0_3, %c0_4, %c0_5, %c0_6] : memref<1x1x16x128xbf16, #tpu.memory_space<vmem>>, vector<1x1x16x128xbf16>
    %3 = vector.shape_cast %2 : vector<1x1x16x128xbf16> to vector<1x16x128xbf16>
    %c0_7 = arith.constant 0 : index
    %c0_8 = arith.constant 0 : index
    %c0_9 = arith.constant 0 : index
    %c0_10 = arith.constant 0 : index
    %4 = vector.load %arg4[%c0_7, %c0_8, %c0_9, %c0_10] : memref<1x1x16x128xbf16, #tpu.memory_space<vmem>>, vector<1x1x16x128xbf16>
    %5 = vector.shape_cast %4 : vector<1x1x16x128xbf16> to vector<1x16x128xbf16>
    %6 = tpu.concatenate %1, %3, %5 in 0 : vector<8x16x128xbf16>, vector<1x16x128xbf16>, vector<1x16x128xbf16> -> vector<10x16x128xbf16>
    %7 = vector.shape_cast %6 : vector<10x16x128xbf16> to vector<160x128xbf16>
    %c0_11 = arith.constant 0 : index
    %c0_12 = arith.constant 0 : index
    %8 = vector.load %arg5[%c0_11, %c0_12] : memref<128x128xbf16, #tpu.memory_space<vmem>>, vector<128x128xbf16>
    %cst = arith.constant dense<0.000000e+00> : vector<160x128xf32>
    %9 = tpu.matmul %7, %8, %cst {dimension_numbers = #tpu.dot_dimension_numbers<[1], [0], [0], [1], [0, 0, 1, 1], [], []>} : vector<160x128xbf16>, vector<128x128xbf16>, vector<160x128xf32> -> vector<160x128xf32>
    %c0_13 = arith.constant 0 : index
    %c0_14 = arith.constant 0 : index
    %10 = vector.load %arg6[%c0_13, %c0_14] : memref<1x128xf32, #tpu.memory_space<vmem>>, vector<1x128xf32>
    %11 = vector.broadcast %10 : vector<1x128xf32> to vector<160x128xf32>
    %12 = arith.addf %9, %11 : vector<160x128xf32>
    %cst_15 = arith.constant 0.000000e+00 : f32
    %13 = vector.broadcast %cst_15 : f32 to vector<160x128xf32>
    %14 = arith.cmpf ogt, %12, %13 : vector<160x128xf32>
    %cst_16 = arith.constant 1.000000e-01 : f32
    %15 = vector.broadcast %cst_16 : f32 to vector<160x128xf32>
    %16 = arith.mulf %15, %12 : vector<160x128xf32>
    %17 = arith.select %14, %12, %16 : vector<160x128xi1>, vector<160x128xf32>
    %cst_17 = arith.constant 0.000000e+00 : bf16
    %18 = vector.broadcast %cst_17 : bf16 to vector<10x18x128xbf16>
    %c0_18 = arith.constant 0 : index
    %c0_19 = arith.constant 0 : index
    %c0_20 = arith.constant 0 : index
    %19 = vector.load %arg11[%c0_18, %c0_19, %c0_20] : memref<10x18x128xbf16, #tpu.memory_space<vmem>>, vector<10x18x128xbf16>
    tpu.vector_store %arg11[%c0_18, %c0_19, %c0_20], %18 {strides = array<i32>} : memref<10x18x128xbf16, #tpu.memory_space<vmem>>, vector<10x18x128xbf16>,
    %20 = vector.shape_cast %17 : vector<160x128xf32> to vector<10x16x128xf32>
    %21 = arith.truncf %20 : vector<10x16x128xf32> to vector<10x16x128xbf16>
    %c0_21 = arith.constant 0 : index
    %c1 = arith.constant 1 : index
    %c0_22 = arith.constant 0 : index
    %22 = vector.load %arg11[%c0_21, %c1, %c0_22] : memref<10x18x128xbf16, #tpu.memory_space<vmem>>, vector<10x16x128xbf16>
    tpu.vector_store %arg11[%c0_21, %c1, %c0_22], %21 {strides = array<i32>} : memref<10x18x128xbf16, #tpu.memory_space<vmem>>, vector<10x16x128xbf16>,
    %c0_i32 = arith.constant 0 : i32
    %23 = arith.cmpi eq, %arg1, %c0_i32 : i32
    %24 = arith.extui %23 : i1 to i32
    %c0_i32_23 = arith.constant 0 : i32
    %25 = arith.cmpi ne, %24, %c0_i32_23 : i32
    scf.if %25 {
      %cst_94 = arith.constant 0.000000e+00 : bf16
      %101 = vector.broadcast %cst_94 : bf16 to vector<18x128xbf16>
      %c0_95 = arith.constant 0 : index
      %c0_96 = arith.constant 0 : index
      %c0_97 = arith.constant 0 : index
      %102 = vector.load %arg11[%c0_95, %c0_96, %c0_97] : memref<10x18x128xbf16, #tpu.memory_space<vmem>>, vector<1x18x128xbf16>
      %103 = vector.shape_cast %102 : vector<1x18x128xbf16> to vector<18x128xbf16>
      %104 = vector.shape_cast %101 : vector<18x128xbf16> to vector<1x18x128xbf16>
      tpu.vector_store %arg11[%c0_95, %c0_96, %c0_97], %104 {strides = array<i32>} : memref<10x18x128xbf16, #tpu.memory_space<vmem>>, vector<1x18x128xbf16>,
    } else {
    }
    %c1_i32 = arith.constant 1 : i32
    %26 = arith.cmpi eq, %arg1, %c1_i32 : i32
    %27 = arith.extui %26 : i1 to i32
    %c0_i32_24 = arith.constant 0 : i32
    %28 = arith.cmpi ne, %27, %c0_i32_24 : i32
    scf.if %28 {
      %cst_94 = arith.constant 0.000000e+00 : bf16
      %101 = vector.broadcast %cst_94 : bf16 to vector<18x128xbf16>
      %c9 = arith.constant 9 : index
      %c0_95 = arith.constant 0 : index
      %c0_96 = arith.constant 0 : index
      %102 = vector.load %arg11[%c9, %c0_95, %c0_96] : memref<10x18x128xbf16, #tpu.memory_space<vmem>>, vector<1x18x128xbf16>
      %103 = vector.shape_cast %102 : vector<1x18x128xbf16> to vector<18x128xbf16>
      %104 = vector.shape_cast %101 : vector<18x128xbf16> to vector<1x18x128xbf16>
      tpu.vector_store %arg11[%c9, %c0_95, %c0_96], %104 {strides = array<i32>} : memref<10x18x128xbf16, #tpu.memory_space<vmem>>, vector<1x18x128xbf16>,
    } else {
    }
    %cst_25 = arith.constant 0.000000e+00 : f32
    %29 = vector.broadcast %cst_25 : f32 to vector<128x128xf32>
    %c0_26 = arith.constant 0 : index
    %c0_27 = arith.constant 0 : index
    %c0_28 = arith.constant 0 : index
    %30 = vector.load %arg11[%c0_26, %c0_27, %c0_28] : memref<10x18x128xbf16, #tpu.memory_space<vmem>>, vector<8x16x128xbf16>
    %31 = vector.shape_cast %30 : vector<8x16x128xbf16> to vector<128x128xbf16>
    %c0_29 = arith.constant 0 : index
    %c0_30 = arith.constant 0 : index
    %c0_31 = arith.constant 0 : index
    %32 = vector.load %arg7[%c0_29, %c0_30, %c0_31] : memref<9x128x128xbf16, #tpu.memory_space<vmem>>, vector<1x128x128xbf16>
    %33 = vector.shape_cast %32 : vector<1x128x128xbf16> to vector<128x128xbf16>
    %cst_32 = arith.constant dense<0.000000e+00> : vector<128x128xf32>
    %34 = tpu.matmul %31, %33, %cst_32 {dimension_numbers = #tpu.dot_dimension_numbers<[1], [0], [0], [1], [0, 0, 1, 1], [], []>} : vector<128x128xbf16>, vector<128x128xbf16>, vector<128x128xf32> -> vector<128x128xf32>
    %35 = arith.addf %29, %34 : vector<128x128xf32>
    %c0_33 = arith.constant 0 : index
    %c1_34 = arith.constant 1 : index
    %c0_35 = arith.constant 0 : index
    %36 = vector.load %arg11[%c0_33, %c1_34, %c0_35] : memref<10x18x128xbf16, #tpu.memory_space<vmem>>, vector<8x16x128xbf16>
    %37 = vector.shape_cast %36 : vector<8x16x128xbf16> to vector<128x128xbf16>
    %c1_36 = arith.constant 1 : index
    %c0_37 = arith.constant 0 : index
    %c0_38 = arith.constant 0 : index
    %38 = vector.load %arg7[%c1_36, %c0_37, %c0_38] : memref<9x128x128xbf16, #tpu.memory_space<vmem>>, vector<1x128x128xbf16>
    %39 = vector.shape_cast %38 : vector<1x128x128xbf16> to vector<128x128xbf16>
    %cst_39 = arith.constant dense<0.000000e+00> : vector<128x128xf32>
    %40 = tpu.matmul %37, %39, %cst_39 {dimension_numbers = #tpu.dot_dimension_numbers<[1], [0], [0], [1], [0, 0, 1, 1], [], []>} : vector<128x128xbf16>, vector<128x128xbf16>, vector<128x128xf32> -> vector<128x128xf32>
    %41 = arith.addf %35, %40 : vector<128x128xf32>
    %c0_40 = arith.constant 0 : index
    %c2 = arith.constant 2 : index
    %c0_41 = arith.constant 0 : index
    %42 = vector.load %arg11[%c0_40, %c2, %c0_41] : memref<10x18x128xbf16, #tpu.memory_space<vmem>>, vector<8x16x128xbf16>
    %43 = vector.shape_cast %42 : vector<8x16x128xbf16> to vector<128x128xbf16>
    %c2_42 = arith.constant 2 : index
    %c0_43 = arith.constant 0 : index
    %c0_44 = arith.constant 0 : index
    %44 = vector.load %arg7[%c2_42, %c0_43, %c0_44] : memref<9x128x128xbf16, #tpu.memory_space<vmem>>, vector<1x128x128xbf16>
    %45 = vector.shape_cast %44 : vector<1x128x128xbf16> to vector<128x128xbf16>
    %cst_45 = arith.constant dense<0.000000e+00> : vector<128x128xf32>
    %46 = tpu.matmul %43, %45, %cst_45 {dimension_numbers = #tpu.dot_dimension_numbers<[1], [0], [0], [1], [0, 0, 1, 1], [], []>} : vector<128x128xbf16>, vector<128x128xbf16>, vector<128x128xf32> -> vector<128x128xf32>
    %47 = arith.addf %41, %46 : vector<128x128xf32>
    %c1_46 = arith.constant 1 : index
    %c0_47 = arith.constant 0 : index
    %c0_48 = arith.constant 0 : index
    %48 = vector.load %arg11[%c1_46, %c0_47, %c0_48] : memref<10x18x128xbf16, #tpu.memory_space<vmem>>, vector<8x16x128xbf16>
    %49 = vector.shape_cast %48 : vector<8x16x128xbf16> to vector<128x128xbf16>
    %c3 = arith.constant 3 : index
    %c0_49 = arith.constant 0 : index
    %c0_50 = arith.constant 0 : index
    %50 = vector.load %arg7[%c3, %c0_49, %c0_50] : memref<9x128x128xbf16, #tpu.memory_space<vmem>>, vector<1x128x128xbf16>
    %51 = vector.shape_cast %50 : vector<1x128x128xbf16> to vector<128x128xbf16>
    %cst_51 = arith.constant dense<0.000000e+00> : vector<128x128xf32>
    %52 = tpu.matmul %49, %51, %cst_51 {dimension_numbers = #tpu.dot_dimension_numbers<[1], [0], [0], [1], [0, 0, 1, 1], [], []>} : vector<128x128xbf16>, vector<128x128xbf16>, vector<128x128xf32> -> vector<128x128xf32>
    %53 = arith.addf %47, %52 : vector<128x128xf32>
    %c1_52 = arith.constant 1 : index
    %c1_53 = arith.constant 1 : index
    %c0_54 = arith.constant 0 : index
    %54 = vector.load %arg11[%c1_52, %c1_53, %c0_54] : memref<10x18x128xbf16, #tpu.memory_space<vmem>>, vector<8x16x128xbf16>
    %55 = vector.shape_cast %54 : vector<8x16x128xbf16> to vector<128x128xbf16>
    %c4 = arith.constant 4 : index
    %c0_55 = arith.constant 0 : index
    %c0_56 = arith.constant 0 : index
    %56 = vector.load %arg7[%c4, %c0_55, %c0_56] : memref<9x128x128xbf16, #tpu.memory_space<vmem>>, vector<1x128x128xbf16>
    %57 = vector.shape_cast %56 : vector<1x128x128xbf16> to vector<128x128xbf16>
    %cst_57 = arith.constant dense<0.000000e+00> : vector<128x128xf32>
    %58 = tpu.matmul %55, %57, %cst_57 {dimension_numbers = #tpu.dot_dimension_numbers<[1], [0], [0], [1], [0, 0, 1, 1], [], []>} : vector<128x128xbf16>, vector<128x128xbf16>, vector<128x128xf32> -> vector<128x128xf32>
    %59 = arith.addf %53, %58 : vector<128x128xf32>
    %c1_58 = arith.constant 1 : index
    %c2_59 = arith.constant 2 : index
    %c0_60 = arith.constant 0 : index
    %60 = vector.load %arg11[%c1_58, %c2_59, %c0_60] : memref<10x18x128xbf16, #tpu.memory_space<vmem>>, vector<8x16x128xbf16>
    %61 = vector.shape_cast %60 : vector<8x16x128xbf16> to vector<128x128xbf16>
    %c5 = arith.constant 5 : index
    %c0_61 = arith.constant 0 : index
    %c0_62 = arith.constant 0 : index
    %62 = vector.load %arg7[%c5, %c0_61, %c0_62] : memref<9x128x128xbf16, #tpu.memory_space<vmem>>, vector<1x128x128xbf16>
    %63 = vector.shape_cast %62 : vector<1x128x128xbf16> to vector<128x128xbf16>
    %cst_63 = arith.constant dense<0.000000e+00> : vector<128x128xf32>
    %64 = tpu.matmul %61, %63, %cst_63 {dimension_numbers = #tpu.dot_dimension_numbers<[1], [0], [0], [1], [0, 0, 1, 1], [], []>} : vector<128x128xbf16>, vector<128x128xbf16>, vector<128x128xf32> -> vector<128x128xf32>
    %65 = arith.addf %59, %64 : vector<128x128xf32>
    %c2_64 = arith.constant 2 : index
    %c0_65 = arith.constant 0 : index
    %c0_66 = arith.constant 0 : index
    %66 = vector.load %arg11[%c2_64, %c0_65, %c0_66] : memref<10x18x128xbf16, #tpu.memory_space<vmem>>, vector<8x16x128xbf16>
    %67 = vector.shape_cast %66 : vector<8x16x128xbf16> to vector<128x128xbf16>
    %c6 = arith.constant 6 : index
    %c0_67 = arith.constant 0 : index
    %c0_68 = arith.constant 0 : index
    %68 = vector.load %arg7[%c6, %c0_67, %c0_68] : memref<9x128x128xbf16, #tpu.memory_space<vmem>>, vector<1x128x128xbf16>
    %69 = vector.shape_cast %68 : vector<1x128x128xbf16> to vector<128x128xbf16>
    %cst_69 = arith.constant dense<0.000000e+00> : vector<128x128xf32>
    %70 = tpu.matmul %67, %69, %cst_69 {dimension_numbers = #tpu.dot_dimension_numbers<[1], [0], [0], [1], [0, 0, 1, 1], [], []>} : vector<128x128xbf16>, vector<128x128xbf16>, vector<128x128xf32> -> vector<128x128xf32>
    %71 = arith.addf %65, %70 : vector<128x128xf32>
    %c2_70 = arith.constant 2 : index
    %c1_71 = arith.constant 1 : index
    %c0_72 = arith.constant 0 : index
    %72 = vector.load %arg11[%c2_70, %c1_71, %c0_72] : memref<10x18x128xbf16, #tpu.memory_space<vmem>>, vector<8x16x128xbf16>
    %73 = vector.shape_cast %72 : vector<8x16x128xbf16> to vector<128x128xbf16>
    %c7 = arith.constant 7 : index
    %c0_73 = arith.constant 0 : index
    %c0_74 = arith.constant 0 : index
    %74 = vector.load %arg7[%c7, %c0_73, %c0_74] : memref<9x128x128xbf16, #tpu.memory_space<vmem>>, vector<1x128x128xbf16>
    %75 = vector.shape_cast %74 : vector<1x128x128xbf16> to vector<128x128xbf16>
    %cst_75 = arith.constant dense<0.000000e+00> : vector<128x128xf32>
    %76 = tpu.matmul %73, %75, %cst_75 {dimension_numbers = #tpu.dot_dimension_numbers<[1], [0], [0], [1], [0, 0, 1, 1], [], []>} : vector<128x128xbf16>, vector<128x128xbf16>, vector<128x128xf32> -> vector<128x128xf32>
    %77 = arith.addf %71, %76 : vector<128x128xf32>
    %c2_76 = arith.constant 2 : index
    %c2_77 = arith.constant 2 : index
    %c0_78 = arith.constant 0 : index
    %78 = vector.load %arg11[%c2_76, %c2_77, %c0_78] : memref<10x18x128xbf16, #tpu.memory_space<vmem>>, vector<8x16x128xbf16>
    %79 = vector.shape_cast %78 : vector<8x16x128xbf16> to vector<128x128xbf16>
    %c8 = arith.constant 8 : index
    %c0_79 = arith.constant 0 : index
    %c0_80 = arith.constant 0 : index
    %80 = vector.load %arg7[%c8, %c0_79, %c0_80] : memref<9x128x128xbf16, #tpu.memory_space<vmem>>, vector<1x128x128xbf16>
    %81 = vector.shape_cast %80 : vector<1x128x128xbf16> to vector<128x128xbf16>
    %cst_81 = arith.constant dense<0.000000e+00> : vector<128x128xf32>
    %82 = tpu.matmul %79, %81, %cst_81 {dimension_numbers = #tpu.dot_dimension_numbers<[1], [0], [0], [1], [0, 0, 1, 1], [], []>} : vector<128x128xbf16>, vector<128x128xbf16>, vector<128x128xf32> -> vector<128x128xf32>
    %83 = arith.addf %77, %82 : vector<128x128xf32>
    %c0_82 = arith.constant 0 : index
    %c0_83 = arith.constant 0 : index
    %84 = vector.load %arg8[%c0_82, %c0_83] : memref<1x128xf32, #tpu.memory_space<vmem>>, vector<1x128xf32>
    %85 = vector.broadcast %84 : vector<1x128xf32> to vector<128x128xf32>
    %86 = arith.addf %83, %85 : vector<128x128xf32>
    %cst_84 = arith.constant 0.000000e+00 : f32
    %87 = vector.broadcast %cst_84 : f32 to vector<128x128xf32>
    %88 = arith.cmpf ogt, %86, %87 : vector<128x128xf32>
    %cst_85 = arith.constant 1.000000e-01 : f32
    %89 = vector.broadcast %cst_85 : f32 to vector<128x128xf32>
    %90 = arith.mulf %89, %86 : vector<128x128xf32>
    %91 = arith.select %88, %86, %90 : vector<128x128xi1>, vector<128x128xf32>
    %92 = vector.shape_cast %91 : vector<128x128xf32> to vector<8x16x128xf32>
    %c0_86 = arith.constant 0 : index
    %c0_87 = arith.constant 0 : index
    %c0_88 = arith.constant 0 : index
    %c0_89 = arith.constant 0 : index
    %93 = vector.load %arg9[%c0_86, %c0_87, %c0_88, %c0_89] : memref<1x8x16x128xbf16, #tpu.memory_space<vmem>>, vector<1x8x16x128xbf16>
    %94 = vector.shape_cast %93 : vector<1x8x16x128xbf16> to vector<8x16x128xbf16>
    %95 = arith.extf %94 : vector<8x16x128xbf16> to vector<8x16x128xf32>
    %96 = arith.addf %92, %95 : vector<8x16x128xf32>
    %97 = arith.truncf %96 : vector<8x16x128xf32> to vector<8x16x128xbf16>
    %c0_90 = arith.constant 0 : index
    %c0_91 = arith.constant 0 : index
    %c0_92 = arith.constant 0 : index
    %c0_93 = arith.constant 0 : index
    %98 = vector.load %arg10[%c0_90, %c0_91, %c0_92, %c0_93] : memref<1x8x16x128xbf16, #tpu.memory_space<vmem>>, vector<1x8x16x128xbf16>
    %99 = vector.shape_cast %98 : vector<1x8x16x128xbf16> to vector<8x16x128xbf16>
    %100 = vector.shape_cast %97 : vector<8x16x128xbf16> to vector<1x8x16x128xbf16>
    tpu.vector_store %arg10[%c0_90, %c0_91, %c0_92, %c0_93], %100 {strides = array<i32>} : memref<1x8x16x128xbf16, #tpu.memory_space<vmem>>, vector<1x8x16x128xbf16>,
    return
  }
  func.func @transform_0(%arg0: i32, %arg1: i32) -> (i32, i32, i32, i32) {
    %c0_i32 = arith.constant 0 : i32
    %c0_i32_0 = arith.constant 0 : i32
    %c0_i32_1 = arith.constant 0 : i32
    return %arg0, %arg1, %c0_i32, %c0_i32_0 : i32, i32, i32, i32
  }
  func.func @transform_1(%arg0: i32, %arg1: i32) -> (i32, i32, i32, i32) {
    %c1_i32 = arith.constant 1 : i32
    %0 = arith.addi %arg1, %c1_i32 : i32
    %c8_i32 = arith.constant 8 : i32
    %1 = arith.muli %0, %c8_i32 : i32
    %c0_i32 = arith.constant 0 : i32
    %c0_i32_0 = arith.constant 0 : i32
    %c0_i32_1 = arith.constant 0 : i32
    return %arg0, %1, %c0_i32, %c0_i32_0 : i32, i32, i32, i32
  }
  func.func @transform_2(%arg0: i32, %arg1: i32) -> (i32, i32, i32, i32) {
    %c1_i32 = arith.constant 1 : i32
    %0 = arith.addi %arg1, %c1_i32 : i32
    %c8_i32 = arith.constant 8 : i32
    %1 = arith.muli %0, %c8_i32 : i32
    %c1_i32_0 = arith.constant 1 : i32
    %2 = arith.addi %1, %c1_i32_0 : i32
    %c0_i32 = arith.constant 0 : i32
    %c0_i32_1 = arith.constant 0 : i32
    %c0_i32_2 = arith.constant 0 : i32
    return %arg0, %2, %c0_i32, %c0_i32_1 : i32, i32, i32, i32
  }
  func.func @transform_3(%arg0: i32, %arg1: i32) -> (i32, i32) {
    %c0_i32 = arith.constant 0 : i32
    %c0_i32_0 = arith.constant 0 : i32
    %c0_i32_1 = arith.constant 0 : i32
    return %c0_i32, %c0_i32_0 : i32, i32
  }
  func.func @transform_4(%arg0: i32, %arg1: i32) -> (i32, i32) {
    %c0_i32 = arith.constant 0 : i32
    %c0_i32_0 = arith.constant 0 : i32
    %c0_i32_1 = arith.constant 0 : i32
    return %c0_i32, %c0_i32_0 : i32, i32
  }
  func.func @transform_5(%arg0: i32, %arg1: i32) -> (i32, i32, i32) {
    %c0_i32 = arith.constant 0 : i32
    %c0_i32_0 = arith.constant 0 : i32
    %c0_i32_1 = arith.constant 0 : i32
    %c0_i32_2 = arith.constant 0 : i32
    return %c0_i32, %c0_i32_0, %c0_i32_1 : i32, i32, i32
  }
  func.func @transform_6(%arg0: i32, %arg1: i32) -> (i32, i32) {
    %c0_i32 = arith.constant 0 : i32
    %c0_i32_0 = arith.constant 0 : i32
    %c0_i32_1 = arith.constant 0 : i32
    return %c0_i32, %c0_i32_0 : i32, i32
  }
  func.func @transform_7(%arg0: i32, %arg1: i32) -> (i32, i32, i32, i32) {
    %c0_i32 = arith.constant 0 : i32
    %c0_i32_0 = arith.constant 0 : i32
    %c0_i32_1 = arith.constant 0 : i32
    return %arg0, %arg1, %c0_i32, %c0_i32_0 : i32, i32, i32, i32
  }
  func.func @transform_8(%arg0: i32, %arg1: i32) -> (i32, i32, i32, i32) {
    %c0_i32 = arith.constant 0 : i32
    %c0_i32_0 = arith.constant 0 : i32
    %c0_i32_1 = arith.constant 0 : i32
    return %arg0, %arg1, %c0_i32, %c0_i32_0 : i32, i32, i32, i32
  }
}

</mosaic_0001>

<bundles_post_ra>
// kernel: residual_block_forward.2
= control target key start
LH: loop header
LB: loop body
LE: loop exit
PB: predicated region body
PF: predicated region fallthrough
CT: control target
= control target key end

     0   :  { %s5632_s24 = smov 0   ;;  %s5634_s25 = smov 0   ;;  %s6736_s0 = inlined_call_operand.vmem [shape: bf16[2,18,16,128], index: 0, kind: input, shape index: {}, may-alias: {0,1,2}]   ;;  %s6737_s1 = inlined_call_operand.vmem [shape: bf16[2,18,16,128], index: 1, kind: input, shape index: {}, may-alias: {0,1,2}]   ;;  %s6738_s2 = inlined_call_operand.vmem [shape: bf16[2,18,16,128], index: 2, kind: input, shape index: {}, may-alias: {0,1,2}]   ;;  %s6739_s3 = inlined_call_operand.vmem [shape: bf16[128,128], index: 3, kind: input, shape index: {}]   ;;  %s6740_s4 = inlined_call_operand.vmem [shape: f32[1,128], index: 4, kind: input, shape index: {}]   ;;  %s6741_s5 = inlined_call_operand.vmem [shape: bf16[9,128,128], index: 5, kind: input, shape index: {}]   ;;  %s6742_s6 = inlined_call_operand.vmem [shape: f32[1,128], index: 6, kind: input, shape index: {}]   ;;  %s6743_s7 = inlined_call_operand.vmem [shape: bf16[2,16,16,128], index: 7, kind: output, shape index: {}]  }
   0x1   :  { %s5636_s26 = smov 0   ;;  %s5638_s27 = smov 0  }
   0x2   :  { %s5640_s28 = smov 0  }
   0x3 LB: > { %s26_s29 = sadd.s32 1, %s5579_s26  ;;  %s29_s30 = sadd.s32 1, %s5583_s27  ;;  %s5587_s28 = sphi %s5640_s28, %s17_s28   ;;  %s5583_s27 = sphi %s5638_s27, %s6766_s27   ;;  %s5579_s26 = sphi %s5636_s26, %s6765_s26   ;;  %s5575_s25 = sphi %s5634_s25, %s6764_s25   ;;  %s5571_s24 = sphi %s5632_s24, %s6763_s24  }
   0x4   : > { %p27_p0 = scmp.ge.s32.totalorder %s26_s29, 2  ;;  %p4308_p1 = scmp.ge.s32.totalorder %s5587_s28, 1 }
   0x5   : > { %p321_p2 = scmp.lt.s32.totalorder %s5587_s28, 5 }
   0x6   : > { %s6768_s29 = smov (%p27_p0, %s26_s29), 0  ;;  %s6770_s30 = smov (!%p27_p0, %s29_s30), %s5583_s27 }
   0x7   : > { %p322_p3 = pnand %p4308_p1, %p321_p2  ;;  %p31_p4 = scmp.ge.s32.totalorder %s6770_s30, 2 }
   0x9   : > { %s6772_s30 = smov (%p31_p4, %s6770_s30), 0  ;;  %325 = sbr.rel (%p322_p3) target bundleno = 774 (0x306), region = 48 }
  0x10   : > { %v5431_v0 = vld [vmem:[%s6739_s3] sm:$0xff]   ;;  %s4309_s10 = sshll.u32 %s5571_s24, 3  ;;  %v5432_v1 = vld [vmem:[%s6739_s3 + $0x8] sm:$0xff]   ;;  %p397_p5 = scmp.lt.s32.totalorder %s5575_s25, 1  ;;  %v5433_v2 = vld [vmem:[%s6739_s3 + $0x10] sm:$0xff]   ;;  %v5589_v18 = vmov 0  }
  0x11   : > { %4935 = vmatprep.subr.bf16.mxu0 %v5431_v0  ;;  %p399_p6 = scmp.lt.s32.totalorder %s4309_s10, 17  ;;  %p443_p7 = scmp.lt.s32.totalorder %s4309_s10, 15  ;;  %v5434_v3 = vld [vmem:[%s6739_s3 + $0x18] sm:$0xff]   ;;  %v5435_v5 = vld [vmem:[%s6739_s3 + $0x20] sm:$0xff]   ;;  %v5436_v6 = vld [vmem:[%s6739_s3 + $0x28] sm:$0xff]   ;;  %vm1069_vm1 = vcmask 1043456  }
  0x12   : > { %4936 = vmatpush3.bf16.msra.mxu0 %v5431_v0  ;;  %s6774_s25 = smov (!%p397_p5, %s5575_s25), 1  ;;  %s4687_s11 = sadd.s32 8, %s4309_s10  ;;  %v5437_v7 = vld [vmem:[%s6739_s3 + $0x30] sm:$0xff]   ;;  %v5438_v8 = vld [vmem:[%s6739_s3 + $0x38] sm:$0xff]   ;;  %779 = vst [vmem:[#allocation2 + $0xc] sm:$0xf] %v5589_v18 }
  0x13   : > { %4937 = vmatprep.subr.bf16.mxu0 %v5432_v1  ;;  %s400_s15 = scalar_select %p399_p6, %s4309_s10, 17  ;;  %776 = vst [vmem:[#allocation2] sm:$0xf] %v5589_v18  ;;  %777 = vst [vmem:[#allocation2 + $0x4] sm:$0xf] %v5589_v18  ;;  %vm1076_vm8 = vcmask 1040384  }
  0x14   : > { %s5674_s16 = smul.u32 36, %s6774_s25  ;;  %s4320_s22 = sshll.u32 %s6774_s25, 5  ;;  %778 = vst [vmem:[#allocation2 + $0x8] sm:$0x1] %v5589_v18  ;;  %780 = vst [vmem:[#allocation2 + $0x10] sm:$0xf] %v5589_v18 }
  0x15   : > { %s4310_s17 = sshll.u32 %s400_s15, 1  ;;  %s6776_s10 = smov (!%p443_p7, %s4309_s10), 15  ;;  %781 = vst [vmem:[#allocation2 + $0x14] sm:$0x1] %v5589_v18  ;;  %782 = vst [vmem:[#allocation2 + $0x18] sm:$0xf] %v5589_v18 }
  0x16   : > { %4938 = vmatpush3.bf16.msra.mxu0 %v5432_v1  ;;  %s403_s18 = sadd.s32 %s5674_s16, %s4310_s17  ;;  %s4319_s14 = sshll.u32 %s6776_s10, 1  ;;  %783 = vst [vmem:[#allocation2 + $0x1c] sm:$0xf] %v5589_v18  ;;  %784 = vst [vmem:[#allocation2 + $0x20] sm:$0x1] %v5589_v18 }
  0x17   : > { %4939 = vmatprep.subr.bf16.mxu0 %v5433_v2  ;;  %s4311_s21 = sshll.u32 %s403_s18, 2  ;;  %p416_p8 = scmp.lt.s32.totalorder %s4687_s11, 17  ;;  %785 = vst [vmem:[#allocation2 + $0x24] sm:$0xf] %v5589_v18  ;;  %786 = vst [vmem:[#allocation2 + $0x28] sm:$0xf] %v5589_v18 }
  0x18   : > { %s5683_s9 = scalar_lea.vmem %s6736_s0, %s4311_s21  ;;  %s447_s25 = sadd.s32 %s4320_s22, %s4319_s14  ;;  %787 = vst [vmem:[#allocation2 + $0x2c] sm:$0x1] %v5589_v18  ;;  %788 = vst [vmem:[#allocation2 + $0x30] sm:$0xf] %v5589_v18  ;;  %v5721_v19 = vld [vmem:[%s6740_s4] ss:$0 sm:$0xff] }
  0x19   : > { %v5439_v4 = vld [vmem:[%s5683_s9] sm:$0xff]   ;;  %s427_s15 = sadd.s32 1, %s4687_s11  ;;  %s4321_s17 = sshll.u32 %s447_s25, 2  ;;  %v5440_v9 = vld [vmem:[%s5683_s9 + $0x8] sm:$0xff]   ;;  %v5441_v10 = vld [vmem:[%s5683_s9 + $0x10] sm:$0xff]  }
  0x1a   : > { %4940 = vmatpush3.bf16.msra.mxu0 %v5433_v2  ;;  %4951 = vmatprep.mubr.bf16.mxu0 %v5439_v4  ;;  %s5692_s20 = scalar_lea.vmem %s6743_s7, %s4321_s17  ;;  %p430_p9 = scmp.lt.s32.totalorder %s427_s15, 17  ;;  %v5442_v11 = vld [vmem:[%s5683_s9 + $0x18] sm:$0xff]   ;;  %v5443_v12 = vld [vmem:[%s5683_s9 + $0x20] sm:$0xff]   ;;  %v5444_v13 = vld [vmem:[%s5683_s9 + $0x28] sm:$0xff]   ;;  %789 = vst [vmem:[#allocation2 + $0x34] sm:$0xf] %v5589_v18 }
  0x1b   : > { %4941 = vmatprep.subr.bf16.mxu0 %v5434_v3  ;;  %s6778_s11 = smov (!%p416_p8, %s4687_s11), 17  ;;  %v5445_v14 = vld [vmem:[%s5683_s9 + $0x30] sm:$0xff]   ;;  %v5446_v15 = vld [vmem:[%s5683_s9 + $0x38] sm:$0xff]   ;;  %790 = vst [vmem:[#allocation2 + $0x38] sm:$0x1] %v5589_v18  ;;  %p4361_p10 = scmp.ne.s32.totalorder %s5571_s24, 0 }
  0x1c   : > { %s6780_s15 = smov (!%p430_p9, %s427_s15), 17  ;;  %s4313_s10 = sshll.u32 %s6778_s11, 1  ;;  %791 = vst [vmem:[#allocation2 + $0x3c] sm:$0xf] %v5589_v18  ;;  %792 = vst [vmem:[#allocation2 + $0x40] sm:$0xf] %v5589_v18 }
  0x1d   : > { %s420_s22 = sadd.s32 %s5674_s16, %s4313_s10  ;;  %s4316_s8 = sshll.u32 %s6780_s15, 1  ;;  %793 = vst [vmem:[#allocation2 + $0x44] sm:$0x1] %v5589_v18  ;;  %794 = vst [vmem:[#allocation2 + $0x48] sm:$0xf] %v5589_v18 }
  0x1e   : > { %4942 = vmatpush3.bf16.msra.mxu0 %v5434_v3  ;;  %s4314_s14 = sshll.u32 %s420_s22, 2  ;;  %s434_s25 = sadd.s32 %s5674_s16, %s4316_s8  ;;  %795 = vst [vmem:[#allocation2 + $0x4c] sm:$0xf] %v5589_v18  ;;  %796 = vst [vmem:[#allocation2 + $0x50] sm:$0x1] %v5589_v18 }
  0x1f   : > { %4943 = vmatprep.subr.bf16.mxu0 %v5435_v5  ;;  %s422_s19 = scalar_lea.vmem %s6737_s1, %s4314_s14  ;;  %s4317_s21 = sshll.u32 %s434_s25, 2  ;;  %797 = vst [vmem:[#allocation2 + $0x54] sm:$0xf] %v5589_v18  ;;  %798 = vst [vmem:[#allocation2 + $0x58] sm:$0xf] %v5589_v18 }
  0x20   : > { %s436_s10 = scalar_lea.vmem %s6738_s2, %s4317_s21  ;;  %v5447_v16 = vld [vmem:[%s422_s19] sm:$0xff]   ;;  %799 = vst [vmem:[#allocation2 + $0x5c] sm:$0x1] %v5589_v18  ;;  %800 = vst [vmem:[#allocation2 + $0x60] sm:$0xf] %v5589_v18 }
  0x21   : > { %v5448_v17 = vld [vmem:[%s436_s10] sm:$0xff]   ;;  %801 = vst [vmem:[#allocation2 + $0x64] sm:$0xf] %v5589_v18  ;;  %802 = vst [vmem:[#allocation2 + $0x68] sm:$0x1] %v5589_v18 }
  0x22   : > { %4944 = vmatpush3.bf16.msra.mxu0 %v5435_v5  ;;  %803 = vst [vmem:[#allocation2 + $0x6c] sm:$0xf] %v5589_v18  ;;  %804 = vst [vmem:[#allocation2 + $0x70] sm:$0xf] %v5589_v18  ;;  %vm1070_vm2 = vsmask.f32 7938 }
  0x23   : > { %4945 = vmatprep.subr.bf16.mxu0 %v5436_v6  ;;  %805 = vst [vmem:[#allocation2 + $0x74] sm:$0x1] %v5589_v18  ;;  %vm866_vm5 = vsmask.f32 256  ;;  %vm867_vm7 = vsmask.f32 4368  ;;  %vm5731_vm9 = vmand %vm1069_vm1, %vm1070_vm2 }
  0x24   : > { %v1081_v48 = vld [vmem:[#allocation2 + $0xc] sm:$0xf]  ;;  %v1072_v60 = vld [vmem:[#allocation2] sm:$0xf]  ;;  %vm5737_vm11 = vmor %vm866_vm5, %vm867_vm7 }
  0x25   : > { %vm5743_vm12 = vmand %vm1076_vm8, %vm866_vm5  ;;  %v1085_v3 = vld [vmem:[#allocation2 + $0x14] sm:$0x1] }
  0x26   : > { %4946 = vmatpush3.bf16.msra.mxu0 %v5436_v6 }
  0x27   : > { %4947 = vmatprep.subr.bf16.mxu0 %v5437_v7 }
  0x2a   : > { %4948 = vmatpush3.bf16.msra.mxu0 %v5437_v7 }
  0x2b   : > { %4949 = vmatprep.subr.bf16.mxu0 %v5438_v8 }
  0x2e   : > { %4950 = vmatpush3.bf16.msra.mxu0 %v5438_v8  ;;  %v1078_v8 = vld [vmem:[#allocation2 + $0x8] sm:$0x1] }
  0x31   : > { %4952 = vmatmul.mubr.bf16.vlgmr.msra.gmra.mrb[0].mxu0 %v5440_v9 }
  0x32   : > { %4955 = vmatprep.mubr.bf16.mxu0 %v5441_v10 }
  0x39   : > { %4956 = vmatmul.mubr.bf16.gmra.mrb[4].mxu0 %v5442_v11 }
  0x3a   : > { %4959 = vmatprep.mubr.bf16.mxu0 %v5443_v12 }
  0x41   : > { %4960 = vmatmul.mubr.bf16.gmra.mrb[8].mxu0 %v5444_v13 }
  0x42   : > { %4963 = vmatprep.mubr.bf16.mxu0 %v5445_v14 }
  0x49   : > { %4964 = vmatmul.mubr.bf16.gmra.mrb[12].mxu0 %v5446_v15 }
  0x4a   : > { %4967 = vmatprep.mubr.bf16.mxu0 %v5447_v16 }
  0x51   : > { %4968 = vmatmul.mubr.bf16.gmra.mrb[16].mxu0 %v5448_v17 }
 0x104   : > { %v4953_v20 = vpop.f32.mrb[0].mxu0 }
 0x105   : > { %v646_v21 = vadd.f32 %v4953_v20, %v5721_v19  ;;  %v637_v22 = vpop.f32.mrb[1].mxu0 }
 0x106   : > { %v638_v23 = vadd.f32 %v5721_v19, %v637_v22  ;;  %v4954_v24 = vpop.f32.mrb[2].mxu0 }
 0x107   : > { %vm718_vm0 = vcmp.gt.f32.partialorder %v646_v21, 0.0  ;;  %v738_v25 = vmul.f32 0.1, %v646_v21  ;;  %v649_v26 = vadd.f32 %v4954_v24, %v5721_v19  ;;  %v640_v27 = vpop.f32.mrb[3].mxu0 }
 0x108   : > { %vm716_vm3 = vcmp.gt.f32.partialorder %v638_v23, 0.0  ;;  %v736_v28 = vmul.f32 0.1, %v638_v23  ;;  %v641_v29 = vadd.f32 %v5721_v19, %v640_v27 }
 0x109   : > { %v758_v30 = vsel %vm718_vm0, %v646_v21, %v738_v25  ;;  %vm719_vm4 = vcmp.gt.f32.partialorder %v649_v26, 0.0  ;;  %v739_v31 = vmul.f32 0.1, %v649_v26 }
 0x10a   : > { %v4692_v32 = vpack.c.bf16 %v758_v30, %v758_v30  ;;  %v756_v33 = vsel %vm716_vm3, %v638_v23, %v736_v28  ;;  %vm717_vm6 = vcmp.gt.f32.partialorder %v641_v29, 0.0  ;;  %v737_v34 = vmul.f32 0.1, %v641_v29 }
 0x10b   : > { %v4690_v35 = vpack.c.bf16 %v756_v33, %v756_v33  ;;  %v759_v36 = vsel %vm719_vm4, %v649_v26, %v739_v31 }
 0x10c   : > { %v887_v37 = vshrl.u32 %v4692_v32, 16  ;;  %v890_v38 = vshll.u32 %v4692_v32, 16  ;;  %v4693_v39 = vpack.c.bf16 %v759_v36, %v759_v36  ;;  %v757_v40 = vsel %vm717_vm6, %v641_v29, %v737_v34  ;;  %v4957_v41 = vpop.f32.mrb[4].mxu0  ;;  %v1095_v34 = vld [vmem:[#allocation2 + $0x24] sm:$0xf] }
 0x10d   : > { %v870_v42 = vshrl.u32 %v4690_v35, 16  ;;  %v873_v43 = vshll.u32 %v4690_v35, 16  ;;  %v4691_v44 = vpack.c.bf16 %v757_v40, %v757_v40  ;;  %v662_v45 = vadd.f32 %v4957_v41, %v5721_v19  ;;  %v653_v46 = vpop.f32.mrb[5].mxu0 }
 0x10e   : > { %v889_v47 = vrot.slane %v887_v37, 7  ;;  %v895_v49 = vshrl.u32 %v4693_v39, 16  ;;  %v898_v50 = vshll.u32 %v4693_v39, 16  ;;  %v654_v51 = vadd.f32 %v5721_v19, %v653_v46  ;;  %v4958_v52 = vpop.f32.mrb[6].mxu0 }
 0x10f   : > { %v872_v54 = vrot.slane %v870_v42, 7  ;;  %v878_v55 = vshrl.u32 %v4691_v44, 16  ;;  %v881_v56 = vshll.u32 %v4691_v44, 16  ;;  %vm722_vm10 = vcmp.gt.f32.partialorder %v662_v45, 0.0  ;;  %v656_v57 = vpop.f32.mrb[7].mxu0 }
 0x110   : > { %v892_v58 = vor.u32 %v890_v38, %v889_v47  ;;  %v893_v59 = vrot.slane %v889_v47, 4  ;;  %v897_v62 = vrot.slane %v895_v49, 7  ;;  %v742_v63 = vmul.f32 0.1, %v662_v45  ;;  %v1088_v47 = vld [vmem:[#allocation2 + $0x18] sm:$0xf] }
 0x111   : > { %v875_v0 = vor.u32 %v873_v43, %v872_v54  ;;  %v876_v1 = vrot.slane %v872_v54, 4  ;;  %v880_v4 = vrot.slane %v878_v55, 7  ;;  %vm720_vm13 = vcmp.gt.f32.partialorder %v654_v51, 0.0 }
 0x112   : > { %v1082_v5 = vsel %vm5731_vm9, %v892_v58, %v1081_v48  ;;  %v900_v6 = vor.u32 %v898_v50, %v897_v62  ;;  %v902_v7 = vrot.slane %v897_v62, 4  ;;  %v762_v9 = vsel %vm722_vm10, %v662_v45, %v742_v63 }
 0x113   : > { %1083 = vst [vmem:[#allocation2 + $0xc] sm:$0xf] %v1082_v5  ;;  %v1073_v10 = vsel %vm5731_vm9, %v875_v0, %v1072_v60  ;;  %v883_v11 = vor.u32 %v881_v56, %v880_v4  ;;  %v885_v12 = vrot.slane %v880_v4, 4  ;;  %v4696_v13 = vpack.c.bf16 %v762_v9, %v762_v9 }
 0x114   : > { %1074 = vst [vmem:[#allocation2] sm:$0xf] %v1073_v10  ;;  %v901_v14 = vsel %vm5737_vm11, %v893_v59, %v900_v6  ;;  %v1086_v15 = vsel %vm5743_vm12, %v902_v7, %v1085_v3  ;;  %v740_v16 = vmul.f32 0.1, %v654_v51  ;;  %v665_v17 = vadd.f32 %v4958_v52, %v5721_v19  ;;  %v4961_v18 = vpop.f32.mrb[8].mxu0 }
 0x115   : > { %1084 = vst [vmem:[#allocation2 + $0x10] sm:$0xf] %v901_v14  ;;  %1087 = vst [vmem:[#allocation2 + $0x14] sm:$0x1] %v1086_v15  ;;  %v884_v20 = vsel %vm5737_vm11, %v876_v1, %v883_v11  ;;  %v1079_v21 = vsel %vm5743_vm12, %v885_v12, %v1078_v8  ;;  %v921_v22 = vshrl.u32 %v4696_v13, 16  ;;  %v924_v23 = vshll.u32 %v4696_v13, 16 }
 0x116   : > { %v669_v24 = vpop.f32.mrb[9].mxu0  ;;  %1075 = vst [vmem:[#allocation2 + $0x4] sm:$0xf] %v884_v20  ;;  %1080 = vst [vmem:[#allocation2 + $0x8] sm:$0x1] %v1079_v21  ;;  %v760_v25 = vsel %vm720_vm13, %v654_v51, %v740_v16  ;;  %vm723_vm14 = vcmp.gt.f32.partialorder %v665_v17, 0.0  ;;  %v657_v27 = vadd.f32 %v5721_v19, %v656_v57  ;;  %v678_v31 = vadd.f32 %v4961_v18, %v5721_v19 }
 0x117   : > { %v743_v26 = vmul.f32 0.1, %v665_v17  ;;  %v4962_v28 = vpop.f32.mrb[10].mxu0  ;;  %v923_v29 = vrot.slane %v921_v22, 7  ;;  %v4694_v30 = vpack.c.bf16 %v760_v25, %v760_v25  ;;  %v670_v32 = vadd.f32 %v5721_v19, %v669_v24  ;;  %v1099_v3 = vld [vmem:[#allocation2 + $0x2c] sm:$0x1] }
 0x118   : > { %v5765_v33 = vpop.f32.mrb[11].mxu0  ;;  %vm721_vm15 = vcmp.gt.f32.partialorder %v657_v27, 0.0  ;;  %v741_v36 = vmul.f32 0.1, %v657_v27  ;;  %v681_v37 = vadd.f32 %v4962_v28, %v5721_v19  ;;  %vm726_vm0 = vcmp.gt.f32.partialorder %v678_v31, 0.0 }
 0x119   : > { %v763_v35 = vsel %vm723_vm14, %v665_v17, %v743_v26  ;;  %v926_v38 = vor.u32 %v924_v23, %v923_v29  ;;  %v927_v39 = vrot.slane %v923_v29, 4  ;;  %v904_v40 = vshrl.u32 %v4694_v30, 16  ;;  %v1092_v10 = vld [vmem:[#allocation2 + $0x20] sm:$0x1]  ;;  %v1109_v24 = vld [vmem:[#allocation2 + $0x3c] sm:$0xf] }
 0x11a   : > { %v907_v41 = vshll.u32 %v4694_v30, 16  ;;  %v4697_v42 = vpack.c.bf16 %v763_v35, %v763_v35  ;;  %v761_v43 = vsel %vm721_vm15, %v657_v27, %v741_v36  ;;  %v746_v44 = vmul.f32 0.1, %v678_v31  ;;  %v1102_v28 = vld [vmem:[#allocation2 + $0x30] sm:$0xf] }
 0x11b   : > { %v1096_v45 = vsel %vm5731_vm9, %v926_v38, %v1095_v34  ;;  %v906_v46 = vrot.slane %v904_v40, 7  ;;  %v4695_v48 = vpack.c.bf16 %v761_v43, %v761_v43  ;;  %vm724_vm1 = vcmp.gt.f32.partialorder %v670_v32, 0.0 }
 0x11c   : > { %1097 = vst [vmem:[#allocation2 + $0x24] sm:$0xf] %v1096_v45  ;;  %v929_v49 = vshrl.u32 %v4697_v42, 16  ;;  %v932_v50 = vshll.u32 %v4697_v42, 16  ;;  %v766_v51 = vsel %vm726_vm0, %v678_v31, %v746_v44  ;;  %v744_v52 = vmul.f32 0.1, %v670_v32 }
 0x11d   : > { %v4965_v54 = vpop.f32.mrb[12].mxu0  ;;  %v909_v55 = vor.u32 %v907_v41, %v906_v46  ;;  %v910_v56 = vrot.slane %v906_v46, 4  ;;  %v912_v57 = vshrl.u32 %v4695_v48, 16  ;;  %v915_v58 = vshll.u32 %v4695_v48, 16  ;;  %v1113_v46 = vld [vmem:[#allocation2 + $0x44] sm:$0x1] }
 0x11e   : > { %v685_v59 = vpop.f32.mrb[13].mxu0  ;;  %v931_v60 = vrot.slane %v929_v49, 7  ;;  %v4700_v62 = vpack.c.bf16 %v766_v51, %v766_v51  ;;  %v764_v63 = vsel %vm724_vm1, %v670_v32, %v744_v52  ;;  %vm727_vm2 = vcmp.gt.f32.partialorder %v681_v37, 0.0 }
 0x11f   : > { %v4966_v0 = vpop.f32.mrb[14].mxu0  ;;  %v1089_v1 = vsel %vm5731_vm9, %v909_v55, %v1088_v47  ;;  %v914_v4 = vrot.slane %v912_v57, 7  ;;  %v4698_v5 = vpack.c.bf16 %v764_v63, %v764_v63  ;;  %v747_v6 = vmul.f32 0.1, %v681_v37 }
 0x120   : > { %v688_v7 = vpop.f32.mrb[15].mxu0  ;;  %1090 = vst [vmem:[#allocation2 + $0x18] sm:$0xf] %v1089_v1  ;;  %v934_v8 = vor.u32 %v932_v50, %v931_v60  ;;  %v936_v9 = vrot.slane %v931_v60, 4  ;;  %v955_v11 = vshrl.u32 %v4700_v62, 16  ;;  %v958_v12 = vshll.u32 %v4700_v62, 16 }
 0x121   : > { %v917_v13 = vor.u32 %v915_v58, %v914_v4  ;;  %v919_v14 = vrot.slane %v914_v4, 4  ;;  %v938_v15 = vshrl.u32 %v4698_v5, 16  ;;  %v941_v16 = vshll.u32 %v4698_v5, 16 }
 0x122   : > { %v935_v17 = vsel %vm5737_vm11, %v927_v39, %v934_v8  ;;  %v1100_v18 = vsel %vm5743_vm12, %v936_v9, %v1099_v3  ;;  %v957_v20 = vrot.slane %v955_v11, 7  ;;  %v767_v21 = vsel %vm727_vm2, %v681_v37, %v747_v6  ;;  %v1106_v6 = vld [vmem:[#allocation2 + $0x38] sm:$0x1] }
 0x123   : > { %1098 = vst [vmem:[#allocation2 + $0x28] sm:$0xf] %v935_v17  ;;  %1101 = vst [vmem:[#allocation2 + $0x2c] sm:$0x1] %v1100_v18  ;;  %v918_v22 = vsel %vm5737_vm11, %v910_v56, %v917_v13  ;;  %v1093_v23 = vsel %vm5743_vm12, %v919_v14, %v1092_v10  ;;  %v5781_v25 = vrot.slane %v938_v15, 7  ;;  %v4701_v26 = vpack.c.bf16 %v767_v21, %v767_v21 }
 0x124   : > { %1091 = vst [vmem:[#allocation2 + $0x1c] sm:$0xf] %v918_v22  ;;  %1094 = vst [vmem:[#allocation2 + $0x20] sm:$0x1] %v1093_v23  ;;  %v960_v27 = vor.u32 %v958_v12, %v957_v20  ;;  %v673_v29 = vadd.f32 %v5721_v19, %v5765_v33  ;;  %v694_v30 = vadd.f32 %v4965_v54, %v5721_v19  ;;  %v4969_v31 = vpop.f32.mrb[16].mxu0  ;;  %v961_v32 = vrot.slane %v957_v20, 4 }
 0x125   : > { %v943_v34 = vor.u32 %v941_v16, %v5781_v25  ;;  %v963_v35 = vshrl.u32 %v4701_v26, 16  ;;  %v966_v36 = vshll.u32 %v4701_v26, 16  ;;  %v5787_v37 = vpop.f32.mrb[17].mxu0  ;;  %v686_v43 = vadd.f32 %v5721_v19, %v685_v59  ;;  %v1123_v13 = vld [vmem:[#allocation2 + $0x54] sm:$0xf] }
 0x126   : > { %v1110_v38 = vsel %vm5731_vm9, %v960_v27, %v1109_v24  ;;  %vm725_vm3 = vcmp.gt.f32.partialorder %v673_v29, 0.0  ;;  %v745_v39 = vmul.f32 0.1, %v673_v29  ;;  %vm730_vm4 = vcmp.gt.f32.partialorder %v694_v30, 0.0  ;;  %v5791_v40 = vpop.f32.mrb[18].mxu0 }
 0x127   : > { %1111 = vst [vmem:[#allocation2 + $0x3c] sm:$0xf] %v1110_v38  ;;  %v1103_v33 = vsel %vm5731_vm9, %v943_v34, %v1102_v28  ;;  %v965_v41 = vrot.slane %v963_v35, 7  ;;  %v750_v42 = vmul.f32 0.1, %v694_v30  ;;  %v5796_v44 = vpop.f32.mrb[19].mxu0  ;;  %v697_v48 = vadd.f32 %v4966_v0, %v5721_v19 }
 0x128   : > { %v944_v45 = vrot.slane %v5781_v25, 4  ;;  %1104 = vst [vmem:[#allocation2 + $0x30] sm:$0xf] %v1103_v33  ;;  %v765_v47 = vsel %vm725_vm3, %v673_v29, %v745_v39  ;;  %v689_v49 = vadd.f32 %v5721_v19, %v688_v7  ;;  %vm728_vm5 = vcmp.gt.f32.partialorder %v686_v43, 0.0  ;;  %v1116_v26 = vld [vmem:[#allocation2 + $0x48] sm:$0xf] }
 0x129   : > { %v968_v50 = vor.u32 %v966_v36, %v965_v41  ;;  %v970_v51 = vrot.slane %v965_v41, 4  ;;  %v4699_v52 = vpack.c.bf16 %v765_v47, %v765_v47  ;;  %v770_v54 = vsel %vm730_vm4, %v694_v30, %v750_v42  ;;  %v1127_v33 = vld [vmem:[#allocation2 + $0x5c] sm:$0x1]  ;;  %v1120_v47 = vld [vmem:[#allocation2 + $0x50] sm:$0x1] }
 0x12a   : > { %v4704_v55 = vpack.c.bf16 %v770_v54, %v770_v54  ;;  %v748_v56 = vmul.f32 0.1, %v686_v43  ;;  %v710_v57 = vadd.f32 %v4969_v31, %v5721_v19  ;;  %vm731_vm6 = vcmp.gt.f32.partialorder %v697_v48, 0.0 }
 0x12b   : > { %v969_v58 = vsel %vm5737_vm11, %v961_v32, %v968_v50  ;;  %v1114_v59 = vsel %vm5743_vm12, %v970_v51, %v1113_v46  ;;  %v946_v60 = vshrl.u32 %v4699_v52, 16  ;;  %v949_v62 = vshll.u32 %v4699_v52, 16 }
 0x12c   : > { %1112 = vst [vmem:[#allocation2 + $0x40] sm:$0xf] %v969_v58  ;;  %1115 = vst [vmem:[#allocation2 + $0x44] sm:$0x1] %v1114_v59  ;;  %v989_v63 = vshrl.u32 %v4704_v55, 16  ;;  %v768_v0 = vsel %vm728_vm5, %v686_v43, %v748_v56  ;;  %vm729_vm7 = vcmp.gt.f32.partialorder %v689_v49, 0.0  ;;  %v702_v36 = vadd.f32 %v5721_v19, %v5787_v37 }
 0x12d   : > { %v751_v1 = vmul.f32 0.1, %v697_v48  ;;  %v948_v3 = vrot.slane %v946_v60, 7  ;;  %v4702_v4 = vpack.c.bf16 %v768_v0, %v768_v0  ;;  %v749_v5 = vmul.f32 0.1, %v689_v49 }
 0x12e   : > { %v991_v7 = vrot.slane %v989_v63, 7  ;;  %v992_v8 = vshll.u32 %v4704_v55, 16  ;;  %v754_v10 = vmul.f32 0.1, %v710_v57  ;;  %vm734_vm8 = vcmp.gt.f32.partialorder %v710_v57, 0.0 }
 0x12f   : > { %v771_v9 = vsel %vm731_vm6, %v697_v48, %v751_v1  ;;  %v951_v11 = vor.u32 %v949_v62, %v948_v3  ;;  %v953_v12 = vrot.slane %v948_v3, 4  ;;  %v972_v14 = vshrl.u32 %v4702_v4, 16  ;;  %v1137_v55 = vld [vmem:[#allocation2 + $0x6c] sm:$0xf] }
 0x130   : > { %v994_v15 = vor.u32 %v992_v8, %v991_v7  ;;  %v975_v16 = vshll.u32 %v4702_v4, 16  ;;  %v4705_v17 = vpack.c.bf16 %v771_v9, %v771_v9  ;;  %v769_v18 = vsel %vm729_vm7, %v689_v49, %v749_v5  ;;  %v1130_v8 = vld [vmem:[#allocation2 + $0x60] sm:$0xf] }
 0x131   : > { %v952_v20 = vsel %vm5737_vm11, %v944_v45, %v951_v11  ;;  %v1107_v21 = vsel %vm5743_vm12, %v953_v12, %v1106_v6  ;;  %v974_v22 = vrot.slane %v972_v14, 7  ;;  %v4703_v23 = vpack.c.bf16 %v769_v18, %v769_v18  ;;  %v1141_v14 = vld [vmem:[#allocation2 + $0x74] sm:$0x1] }
 0x132   : > { %1105 = vst [vmem:[#allocation2 + $0x34] sm:$0xf] %v952_v20  ;;  %1108 = vst [vmem:[#allocation2 + $0x38] sm:$0x1] %v1107_v21  ;;  %v995_v24 = vrot.slane %v991_v7, 4  ;;  %v1124_v25 = vsel %vm5731_vm9, %v994_v15, %v1123_v13  ;;  %v997_v27 = vshrl.u32 %v4705_v17, 16  ;;  %v774_v28 = vsel %vm734_vm8, %v710_v57, %v754_v10 }
 0x133   : > { %1125 = vst [vmem:[#allocation2 + $0x54] sm:$0xf] %v1124_v25  ;;  %v977_v29 = vor.u32 %v975_v16, %v974_v22  ;;  %v978_v30 = vrot.slane %v974_v22, 4  ;;  %v1000_v31 = vshll.u32 %v4705_v17, 16  ;;  %v980_v32 = vshrl.u32 %v4703_v23, 16 }
 0x134   : > { %v999_v34 = vrot.slane %v997_v27, 7  ;;  %v4708_v35 = vpack.c.bf16 %v774_v28, %v774_v28  ;;  %v713_v38 = vadd.f32 %v5791_v40, %v5721_v19  ;;  %v983_v42 = vshll.u32 %v4703_v23, 16  ;;  %v1134_v22 = vld [vmem:[#allocation2 + $0x68] sm:$0x1] }
 0x135   : > { %v1117_v39 = vsel %vm5731_vm9, %v977_v29, %v1116_v26  ;;  %v982_v41 = vrot.slane %v980_v32, 7  ;;  %v705_v43 = vadd.f32 %v5721_v19, %v5796_v44  ;;  %vm732_vm10 = vcmp.gt.f32.partialorder %v702_v36, 0.0 }
 0x136   : > { %1118 = vst [vmem:[#allocation2 + $0x48] sm:$0xf] %v1117_v39  ;;  %v1002_v45 = vor.u32 %v1000_v31, %v999_v34  ;;  %v1004_v46 = vrot.slane %v999_v34, 4  ;;  %v1023_v48 = vshrl.u32 %v4708_v35, 16  ;;  %v1026_v49 = vshll.u32 %v4708_v35, 16 }
 0x137   : > { %v985_v50 = vor.u32 %v983_v42, %v982_v41  ;;  %v987_v37 = vrot.slane %v982_v41, 4  ;;  %v752_v51 = vmul.f32 0.1, %v702_v36  ;;  %vm735_vm13 = vcmp.gt.f32.partialorder %v713_v38, 0.0 }
 0x138   : > { %v1003_v40 = vsel %vm5737_vm11, %v995_v24, %v1002_v45  ;;  %v1128_v52 = vsel %vm5743_vm12, %v1004_v46, %v1127_v33  ;;  %v1025_v54 = vrot.slane %v1023_v48, 7  ;;  %v755_v57 = vmul.f32 0.1, %v713_v38 }
 0x139   : > { %1126 = vst [vmem:[#allocation2 + $0x58] sm:$0xf] %v1003_v40  ;;  %1129 = vst [vmem:[#allocation2 + $0x5c] sm:$0x1] %v1128_v52  ;;  %v986_v19 = vsel %vm5737_vm11, %v978_v30, %v985_v50  ;;  %v1121_v44 = vsel %vm5743_vm12, %v987_v37, %v1120_v47  ;;  %v772_v56 = vsel %vm732_vm10, %v702_v36, %v752_v51  ;;  %vm733_vm14 = vcmp.gt.f32.partialorder %v705_v43, 0.0 }
 0x13a   : > { %1119 = vst [vmem:[#allocation2 + $0x4c] sm:$0xf] %v986_v19  ;;  %1122 = vst [vmem:[#allocation2 + $0x50] sm:$0x1] %v1121_v44  ;;  %v1028_v58 = vor.u32 %v1026_v49, %v1025_v54  ;;  %v4706_v59 = vpack.c.bf16 %v772_v56, %v772_v56  ;;  %v775_v60 = vsel %vm735_vm13, %v713_v38, %v755_v57  ;;  %v753_v62 = vmul.f32 0.1, %v705_v43 }
 0x13b   : > { %v4709_v1 = vpack.c.bf16 %v775_v60, %v775_v60  ;;  %v1029_v13 = vrot.slane %v1025_v54, 4  ;;  %v5590_v28 = vmov (!%p4361_p10), 0  }
 0x13c   : > { %v1138_v63 = vsel %vm5731_vm9, %v1028_v58, %v1137_v55  ;;  %v1006_v0 = vshrl.u32 %v4706_v59, 16  ;;  %v773_v3 = vsel %vm733_vm14, %v705_v43, %v753_v62  ;;  %v1009_v5 = vshll.u32 %v4706_v59, 16  ;;  %1148 = vst [vmem:[#allocation2] sm:$0xf] (!%p4361_p10), %v5590_v28  ;;  %1149 = vst [vmem:[#allocation2 + $0x4] sm:$0xf] (!%p4361_p10), %v5590_v28 }
 0x13d   : > { %1139 = vst [vmem:[#allocation2 + $0x6c] sm:$0xf] %v1138_v63  ;;  %v1031_v6 = vshrl.u32 %v4709_v1, 16  ;;  %v4707_v7 = vpack.c.bf16 %v773_v3, %v773_v3  ;;  %v1034_v11 = vshll.u32 %v4709_v1, 16  ;;  %1150 = vst [vmem:[#allocation2 + $0x8] sm:$0x1] (!%p4361_p10), %v5590_v28 }
 0x13e   : > { %v1008_v4 = vrot.slane %v1006_v0, 7 }
 0x13f   : > { %v1033_v10 = vrot.slane %v1031_v6, 7  ;;  %v1014_v12 = vshrl.u32 %v4707_v7, 16  ;;  %v1017_v15 = vshll.u32 %v4707_v7, 16 }
 0x140   : > { %v1011_v9 = vor.u32 %v1009_v5, %v1008_v4  ;;  %v1012_v21 = vrot.slane %v1008_v4, 4  ;;  %1147 = sbr.rel (%p4361_p10) target bundleno = 327 (0x147), region = 52 }
 0x141   : > { %v1036_v17 = vor.u32 %v1034_v11, %v1033_v10  ;;  %v1038_v18 = vrot.slane %v1033_v10, 4  ;;  %v1016_v20 = vrot.slane %v1014_v12, 7 }
 0x142   : > { %v1131_v16 = vsel %vm5731_vm9, %v1011_v9, %v1130_v8 }
 0x143   : > { %1132 = vst [vmem:[#allocation2 + $0x60] sm:$0xf] %v1131_v16  ;;  %v1037_v23 = vsel %vm5737_vm11, %v1029_v13, %v1036_v17  ;;  %v1142_v24 = vsel %vm5743_vm12, %v1038_v18, %v1141_v14  ;;  %v1019_v25 = vor.u32 %v1017_v15, %v1016_v20  ;;  %v1021_v26 = vrot.slane %v1016_v20, 4 }
 0x144   : > { %1140 = vst [vmem:[#allocation2 + $0x70] sm:$0xf] %v1037_v23  ;;  %1143 = vst [vmem:[#allocation2 + $0x74] sm:$0x1] %v1142_v24 }
 0x145   : > { %v1020_v53 = vsel %vm5737_vm11, %v1012_v21, %v1019_v25  ;;  %v1135_v27 = vsel %vm5743_vm12, %v1021_v26, %v1134_v22 }
 0x146   : > { %1133 = vst [vmem:[#allocation2 + $0x64] sm:$0xf] %v1020_v53  ;;  %1136 = vst [vmem:[#allocation2 + $0x68] sm:$0x1] %v1135_v27 }
 0x147 PF: > { %p4362_p11 = scmp.ne.s32.totalorder %s5571_s24, 1 }
 0x148   : > { %v5591_v29 = vmov (!%p4362_p11), 0  }
 0x149   : > { %1154 = sbr.rel (%p4362_p11) target bundleno = 336 (0x150), region = 56  ;;  %1156 = vst [vmem:[#allocation2 + $0x6c] sm:$0xf] (!%p4362_p11), %v5591_v29  ;;  %1157 = vst [vmem:[#allocation2 + $0x70] sm:$0xf] (!%p4362_p11), %v5591_v29 }
 0x14a   : > { %1158 = vst [vmem:[#allocation2 + $0x74] sm:$0x1] (!%p4362_p11), %v5591_v29 }
 0x150 PF: > { %v5449_v61 = vld [vmem:[%s6741_s5 + $0x40] sm:$0xff]   ;;  %v5451_v30 = vld [vmem:[%s6741_s5 + $0x48] sm:$0xff]   ;;  %v5453_v32 = vld [vmem:[%s6741_s5 + $0x50] sm:$0xff]   ;;  %vm1199_vm9 = vsmask.f32 3328  ;;  %vm1805_vm15 = vcmask 1042432  }
 0x151   : > { %v5450_v2 = vld [vmem:[%s6741_s5 + $0x100] sm:$0xff]   ;;  %4971 = vmatprep.subr.bf16.mxu0 %v5449_v61  ;;  %v5452_v31 = vld [vmem:[%s6741_s5 + $0x108] sm:$0xff]   ;;  %v5454_v34 = vld [vmem:[%s6741_s5 + $0x110] sm:$0xff]   ;;  %vm1200_vm11 = vsmask.f32 7440  ;;  %vm1806_vm0 = vcmask 1046532  }
 0x152   : > { %5099 = vmatprep.subr.bf16.mxu1 %v5450_v2  ;;  %4972 = vmatpush3.bf16.msra.mxu0 %v5449_v61  ;;  %v5455_v35 = vld [vmem:[%s6741_s5 + $0x58] sm:$0xff]   ;;  %v5457_v38 = vld [vmem:[%s6741_s5 + $0x60] sm:$0xff]   ;;  %v5459_v33 = vld [vmem:[%s6741_s5 + $0x68] sm:$0xff]  }
 0x153   : > { %5100 = vmatpush3.bf16.msra.mxu1 %v5450_v2  ;;  %4973 = vmatprep.subr.bf16.mxu0 %v5451_v30  ;;  %v5456_v36 = vld [vmem:[%s6741_s5 + $0x118] sm:$0xff]   ;;  %v5458_v39 = vld [vmem:[%s6741_s5 + $0x120] sm:$0xff]   ;;  %v5460_v41 = vld [vmem:[%s6741_s5 + $0x128] sm:$0xff]  }
 0x154   : > { %5101 = vmatprep.subr.bf16.mxu1 %v5452_v31  ;;  %v5879_v42 = vld [vmem:[#allocation2] sm:$0xf]  ;;  %v5881_v43 = vld [vmem:[#allocation2 + $0x4] sm:$0xf]  ;;  %v5883_v45 = vld [vmem:[#allocation2 + $0x8] sm:$0x1] }
 0x155   : > { %v1203_v46 = vshrl.u32 %v5879_v42, 16  ;;  %v1206_v47 = vshll.u32 %v5879_v42, 16  ;;  %v1212_v48 = vshll.u32 %v5881_v43, 16  ;;  %v1216_v49 = vshrl.u32 %v5881_v43, 16  ;;  %v2317_v37 = vld [vmem:[#allocation2 + $0xc] sm:$0xf]  ;;  %vm5909_vm12 = vmor %vm1199_vm9, %vm1200_vm11 }
 0x156   : > { %4974 = vmatpush3.bf16.msra.mxu0 %v5451_v30  ;;  %v1222_v50 = vshll.u32 %v5883_v45, 16  ;;  %v5890_v52 = vld [vmem:[#allocation2 + $0x10] sm:$0xf]  ;;  %v5892_v54 = vld [vmem:[#allocation2 + $0x14] sm:$0x1]  ;;  %v2342_v56 = vshrl.u32 %v2317_v37, 16  ;;  %vm6164_vm1 = vmor %vm1805_vm15, %vm1806_vm0 }
 0x157   : > { %5102 = vmatpush3.bf16.msra.mxu1 %v5452_v31  ;;  %4975 = vmatprep.subr.bf16.mxu0 %v5453_v32  ;;  %v1205_v51 = vrot.slane %v1203_v46, 4  ;;  %v1208_v40 = vrot.slane %v1206_v47, 5  ;;  %v5461_v19 = vld [vmem:[%s6741_s5 + $0x70] sm:$0xff]   ;;  %v1214_v44 = vrot.slane %v1212_v48, 5  ;;  %v1218_v55 = vrot.slane %v1216_v49, 4  ;;  %v5463_v0 = vld [vmem:[%s6741_s5 + $0x78] sm:$0xff]  }
 0x158   : > { %5103 = vmatprep.subr.bf16.mxu1 %v5454_v34  ;;  %v5462_v57 = vld [vmem:[%s6741_s5 + $0x130] sm:$0xff]   ;;  %v2345_v59 = vshll.u32 %v2317_v37, 16  ;;  %v2351_v60 = vshll.u32 %v5890_v52, 16  ;;  %v2355_v62 = vshrl.u32 %v5890_v52, 16  ;;  %v5902_v63 = vld [vmem:[#allocation2 + $0xc] sm:$0xf] }
 0x159   : > { %v1209_v58 = vor.u32 %v1208_v40, %v1205_v51  ;;  %v1219_v3 = vor.u32 %v1218_v55, %v1214_v44  ;;  %v1224_v4 = vrot.slane %v1222_v50, 5  ;;  %v2344_v5 = vrot.slane %v2342_v56, 4  ;;  %v5914_v7 = vld [vmem:[#allocation2 + $0x10] sm:$0xf]  ;;  %v5464_v16 = vld [vmem:[%s6741_s5 + $0x138] sm:$0xff]   ;;  %v5465_v30 = vld [vmem:[%s6741_s5] sm:$0xff]  }
 0x15a   : > { %4976 = vmatpush3.bf16.msra.mxu0 %v5453_v32  ;;  %v2361_v6 = vshll.u32 %v5892_v54, 16  ;;  %v2347_v9 = vrot.slane %v2345_v59, 5  ;;  %v2353_v10 = vrot.slane %v2351_v60, 5  ;;  %v2357_v11 = vrot.slane %v2355_v62, 4  ;;  %v5923_v21 = vld [vmem:[#allocation2 + $0x14] sm:$0x1] }
 0x15b   : > { %5104 = vmatpush3.bf16.msra.mxu1 %v5454_v34  ;;  %4977 = vmatprep.subr.bf16.mxu0 %v5455_v35  ;;  %v1210_v8 = vrot.slane %v1209_v58, 4  ;;  %v1220_v12 = vrot.slane %v1219_v3, 4  ;;  %v1227_v14 = vshrl.u32 %v5902_v63, 16  ;;  %v1230_v15 = vshll.u32 %v5902_v63, 16  ;;  %v2320_v23 = vld [vmem:[#allocation2 + $0x18] sm:$0xf] }
 0x15c   : > { %5105 = vmatprep.subr.bf16.mxu1 %v5456_v36  ;;  %v2363_v13 = vrot.slane %v2361_v6, 5  ;;  %v2348_v18 = vor.u32 %v2347_v9, %v2344_v5  ;;  %v2358_v20 = vor.u32 %v2357_v11, %v2353_v10  ;;  %v1236_v22 = vshll.u32 %v5914_v7, 16  ;;  %v5929_v27 = vld [vmem:[#allocation2 + $0x1c] sm:$0xf]  ;;  %v5937_v31 = vld [vmem:[%s6741_s5 + $0x140] sm:$0xff]  }
 0x15d   : > { %v1215_v17 = vsel %vm5909_vm12, %v1210_v8, %v1214_v44  ;;  %v1225_v24 = vsel %vm5909_vm12, %v1220_v12, %v1224_v4  ;;  %v1229_v25 = vrot.slane %v1227_v14, 4  ;;  %v1232_v26 = vrot.slane %v1230_v15, 5  ;;  %v5955_v62 = vld [vmem:[#allocation2 + $0x1c] sm:$0xf]  ;;  %v2323_v8 = vld [vmem:[#allocation2 + $0x24] sm:$0xf] }
 0x15e   : > { %4978 = vmatpush3.bf16.msra.mxu0 %v5455_v35  ;;  %v1240_v53 = vshrl.u32 %v5914_v7, 16  ;;  %v4379_v28 = vcombine.low %v1215_v17, %v1225_v24  ;;  %v2349_v29 = vrot.slane %v2348_v18, 4  ;;  %v2359_v61 = vrot.slane %v2358_v20, 4  ;;  %v5467_v12 = vld [vmem:[%s6741_s5 + $0x8] sm:$0xff]  }
 0x15f   : > { %5106 = vmatpush3.bf16.msra.mxu1 %v5456_v36  ;;  %4979 = vmatprep.subr.bf16.mxu0 %v5457_v38  ;;  %v1238_v2 = vrot.slane %v1236_v22, 5  ;;  %v1233_v32 = vor.u32 %v1232_v26, %v1229_v25  ;;  %v1246_v35 = vshll.u32 %v5923_v21, 16  ;;  %v5940_v36 = vld [vmem:[#allocation2 + $0x20] sm:$0x1]  ;;  %v2375_v51 = vshll.u32 %v5929_v27, 16  ;;  %v5469_v26 = vld [vmem:[%s6741_s5 + $0x10] sm:$0xff]  }
 0x160   : > { %5107 = vmatprep.subr.bf16.mxu1 %v5458_v39  ;;  %v1242_v34 = vrot.slane %v1240_v53, 4  ;;  %4987 = vmatprep.mubr.bf16.mxu0 %v4379_v28  ;;  %v2379_v40 = vshrl.u32 %v5929_v27, 16  ;;  %v1260_v15 = vshll.u32 %v5955_v62, 16  ;;  %v5967_v18 = vld [vmem:[#allocation2 + $0x28] sm:$0xf]  ;;  %v2390_v25 = vshrl.u32 %v2323_v8, 16 }
 0x161   : > { %v1234_v47 = vrot.slane %v1233_v32, 4  ;;  %v1248_v49 = vrot.slane %v1246_v35, 5  ;;  %v2377_v59 = vrot.slane %v2375_v51, 5  ;;  %v5971_v24 = vld [vmem:[#allocation2 + $0x2c] sm:$0x1] }
 0x162   : > { %4980 = vmatpush3.bf16.msra.mxu0 %v5457_v38  ;;  %v2354_v38 = vsel %vm5909_vm12, %v2349_v29, %v2353_v10  ;;  %v1243_v48 = vor.u32 %v1242_v34, %v1238_v2  ;;  %v2381_v60 = vrot.slane %v2379_v40, 4  ;;  %v5468_v53 = vld [vmem:[%s6741_s5 + $0x148] sm:$0xff]   ;;  %v1262_v28 = vrot.slane %v1260_v15, 5  ;;  %v5979_v32 = vld [vmem:[#allocation2 + $0x24] sm:$0xf] }
 0x163   : > { %5108 = vmatpush3.bf16.msra.mxu1 %v5458_v39  ;;  %4981 = vmatprep.subr.bf16.mxu0 %v5459_v33  ;;  %v2364_v39 = vsel %vm5909_vm12, %v2359_v61, %v2363_v13  ;;  %v1239_v55 = vsel %vm5909_vm12, %v1234_v47, %v1238_v2  ;;  %v2393_v2 = vshll.u32 %v2323_v8, 16  ;;  %v5985_v47 = vld [vmem:[#allocation2 + $0x28] sm:$0xf]  ;;  %v1275_v51 = vshrl.u32 %v5979_v32, 16  ;;  %v2326_v40 = vld [vmem:[#allocation2 + $0x30] sm:$0xf] }
 0x164   : > { %5109 = vmatprep.subr.bf16.mxu1 %v5460_v41  ;;  %v4499_v46 = vcombine.low %v2354_v38, %v2364_v39  ;;  %v1244_v56 = vrot.slane %v1243_v48, 4  ;;  %v2382_v11 = vor.u32 %v2381_v60, %v2377_v59  ;;  %v2392_v38 = vrot.slane %v2390_v25, 4  ;;  %v5987_v48 = vld [vmem:[#allocation2 + $0x2c] sm:$0x1]  ;;  %v5470_v60 = vld [vmem:[%s6741_s5 + $0x150] sm:$0xff]   ;;  %v5471_v8 = vld [vmem:[%s6741_s5 + $0x18] sm:$0xff]  }
 0x165   : > { %v2399_v39 = vshll.u32 %v5967_v18, 16  ;;  %v1294_v15 = vshll.u32 %v5987_v48, 16  ;;  %v5472_v25 = vld [vmem:[%s6741_s5 + $0x158] sm:$0xff]  }
 0x166   : > { %4982 = vmatpush3.bf16.msra.mxu0 %v5459_v33  ;;  %v2366_v33 = vshrl.u32 %v2320_v23, 16  ;;  %5115 = vmatprep.mubr.bf16.mxu1 %v4499_v46  ;;  %v1249_v3 = vsel %vm5909_vm12, %v1244_v56, %v1248_v49  ;;  %v2383_v22 = vrot.slane %v2382_v11, 4  ;;  %v2403_v46 = vshrl.u32 %v5967_v18, 16 }
 0x167   : > { %5110 = vmatpush3.bf16.msra.mxu1 %v5460_v41  ;;  %4983 = vmatprep.subr.bf16.mxu0 %v5461_v19  ;;  %v2369_v41 = vshll.u32 %v2320_v23, 16  ;;  %v4380_v9 = vcombine.low %v1239_v55, %v1249_v3 }
 0x168   : > { %5111 = vmatprep.subr.bf16.mxu1 %v5462_v57  ;;  %v2368_v50 = vrot.slane %v2366_v33, 4 }
 0x169   : > { %v2371_v37 = vrot.slane %v2369_v41, 5  ;;  %v2395_v41 = vrot.slane %v2393_v2, 5 }
 0x16a   : > { %4984 = vmatpush3.bf16.msra.mxu0 %v5461_v19  ;;  %v5948_v19 = vld [vmem:[#allocation2 + $0x18] sm:$0xf] }
 0x16b   : > { %5112 = vmatpush3.bf16.msra.mxu1 %v5462_v57  ;;  %4985 = vmatprep.subr.bf16.mxu0 %v5463_v0  ;;  %v2385_v57 = vshll.u32 %v5940_v36, 16  ;;  %v2372_v58 = vor.u32 %v2371_v37, %v2368_v50  ;;  %v1251_v6 = vshrl.u32 %v5948_v19, 16  ;;  %v1254_v13 = vshll.u32 %v5948_v19, 16 }
 0x16c   : > { %5113 = vmatprep.subr.bf16.mxu1 %v5464_v16  ;;  %v2401_v50 = vrot.slane %v2399_v39, 5  ;;  %v2409_v37 = vshll.u32 %v5971_v24, 16  ;;  %v2396_v56 = vor.u32 %v2395_v41, %v2392_v38 }
 0x16d   : > { %v2387_v4 = vrot.slane %v2385_v57, 5  ;;  %v2373_v10 = vrot.slane %v2372_v58, 4  ;;  %v1253_v14 = vrot.slane %v1251_v6, 4  ;;  %v1256_v23 = vrot.slane %v1254_v13, 5 }
 0x16e   : > { %4986 = vmatpush3.bf16.msra.mxu0 %v5463_v0  ;;  %v1193_v0 = vld [vmem:[#allocation2 + $0x20] sm:$0x1]  ;;  %v2405_v57 = vrot.slane %v2403_v46, 4  ;;  %v1278_v58 = vshll.u32 %v5979_v32, 16  ;;  %v2411_v3 = vrot.slane %v2409_v37, 5  ;;  %v1284_v6 = vshll.u32 %v5985_v47, 16 }
 0x16f   : > { %5114 = vmatpush3.bf16.msra.mxu1 %v5464_v16  ;;  %5003 = vmatprep.subr.bf16.mxu0 %v5465_v30  ;;  %v1264_v16 = vshrl.u32 %v5955_v62, 16  ;;  %v1270_v17 = vshll.u32 %v1193_v0, 16  ;;  %v2378_v20 = vsel %vm5909_vm12, %v2373_v10, %v2377_v59  ;;  %v2388_v34 = vsel %vm5909_vm12, %v2383_v22, %v2387_v4  ;;  %v5992_v59 = vld [vmem:[#allocation2 + $0x34] sm:$0xf]  ;;  %v6010_v22 = vld [vmem:[#allocation2 + $0x38] sm:$0x1] }
 0x170   : > { %5131 = vmatprep.subr.bf16.mxu1 %v5937_v31  ;;  %v1257_v35 = vor.u32 %v1256_v23, %v1253_v14  ;;  %v4500_v33 = vcombine.low %v2378_v20, %v2388_v34  ;;  %v1277_v4 = vrot.slane %v1275_v51, 4  ;;  %v2397_v10 = vrot.slane %v2396_v56, 4  ;;  %v6016_v34 = vld [vmem:[#allocation2 + $0x30] sm:$0xf] }
 0x171   : > { %4988 = vmatmul.mubr.bf16.vlgmr.msra.gmra.mrb[20].mxu0 %v4380_v9  ;;  %v1266_v29 = vrot.slane %v1264_v16, 4  ;;  %v1272_v61 = vrot.slane %v1270_v17, 5  ;;  %v2406_v11 = vor.u32 %v2405_v57, %v2401_v50  ;;  %v1286_v13 = vrot.slane %v1284_v6, 5  ;;  %v6030_v57 = vld [vmem:[#allocation2 + $0x38] sm:$0x1] }
 0x172   : > { %5004 = vmatpush3.bf16.msra.mxu0 %v5465_v30  ;;  %v1258_v49 = vrot.slane %v1257_v35, 4  ;;  %5116 = vmatmul.mubr.bf16.vlgmr.msra.gmra.mrb[0].mxu1 %v4500_v33  ;;  %v1288_v14 = vshrl.u32 %v5985_v47, 16  ;;  %v2402_v16 = vsel %vm5909_vm12, %v2397_v10, %v2401_v50  ;;  %v2414_v23 = vshrl.u32 %v2326_v40, 16  ;;  %v6021_v33 = vld [vmem:[#allocation2 + $0x34] sm:$0xf] }
 0x173   : > { %5005 = vmatprep.subr.bf16.mxu0 %v5467_v12  ;;  %v1267_v30 = vor.u32 %v1266_v29, %v1262_v28  ;;  %5132 = vmatpush3.bf16.msra.mxu1 %v5937_v31  ;;  %v2407_v17 = vrot.slane %v2406_v11, 4  ;;  %v1296_v29 = vrot.slane %v1294_v15, 5  ;;  %v2423_v2 = vshll.u32 %v5992_v59, 16  ;;  %v2329_v10 = vld [vmem:[#allocation2 + $0x3c] sm:$0xf] }
 0x174   : > { %v1263_v0 = vsel %vm5909_vm12, %v1258_v49, %v1262_v28  ;;  %5133 = vmatprep.subr.bf16.mxu1 %v5468_v53  ;;  %v1290_v28 = vrot.slane %v1288_v14, 4  ;;  %v2416_v39 = vrot.slane %v2414_v23, 4  ;;  %v2433_v51 = vshll.u32 %v6010_v22, 16  ;;  %v6043_v14 = vld [vmem:[#allocation2 + $0x40] sm:$0xf]  ;;  %v5477_v23 = vld [vmem:[%s6741_s5 + $0x30] sm:$0xff]  }
 0x175   : > { %v1268_v55 = vrot.slane %v1267_v30, 4  ;;  %v2412_v35 = vsel %vm5909_vm12, %v2407_v17, %v2411_v3  ;;  %v2425_v49 = vrot.slane %v2423_v2, 5  ;;  %v5475_v3 = vld [vmem:[%s6741_s5 + $0x28] sm:$0xff]   ;;  %v2438_v2 = vshrl.u32 %v2329_v10, 16 }
 0x176   : > { %5006 = vmatpush3.bf16.msra.mxu0 %v5467_v12  ;;  %v1280_v12 = vrot.slane %v1278_v58, 5  ;;  %v4501_v30 = vcombine.low %v2402_v16, %v2412_v35  ;;  %v1291_v41 = vor.u32 %v1290_v28, %v1286_v13  ;;  %v1302_v58 = vshll.u32 %v6016_v34, 16 }
 0x177   : > { %5007 = vmatprep.subr.bf16.mxu0 %v5469_v26  ;;  %v1273_v9 = vsel %vm5909_vm12, %v1268_v55, %v1272_v61  ;;  %5134 = vmatpush3.bf16.msra.mxu1 %v5468_v53  ;;  %v2417_v61 = vshll.u32 %v2326_v40, 16  ;;  %v5473_v53 = vld [vmem:[%s6741_s5 + $0x20] sm:$0xff]   ;;  %v1299_v40 = vshrl.u32 %v6016_v34, 16  ;;  %v2435_v6 = vrot.slane %v2433_v51, 5 }
 0x178   : > { %v4381_v31 = vcombine.low %v1263_v0, %v1273_v9  ;;  %v1281_v20 = vor.u32 %v1280_v12, %v1277_v4  ;;  %5135 = vmatprep.subr.bf16.mxu1 %v5470_v60  ;;  %5119 = vmatprep.mubr.bf16.mxu1 %v4501_v30  ;;  %v1292_v55 = vrot.slane %v1291_v41, 4  ;;  %v1308_v0 = vshll.u32 %v6021_v33, 16  ;;  %v6059_v41 = vld [vmem:[#allocation2 + $0x3c] sm:$0xf]  ;;  %v6063_v51 = vld [vmem:[#allocation2 + $0x44] sm:$0x1] }
 0x179   : > { %v2419_v46 = vrot.slane %v2417_v61, 5  ;;  %v1312_v9 = vshrl.u32 %v6021_v33, 16  ;;  %v6051_v61 = vld [vmem:[#allocation2 + $0x44] sm:$0x1]  ;;  %v2441_v35 = vshll.u32 %v2329_v10, 16  ;;  %v2447_v30 = vshll.u32 %v6043_v14, 16 }
 0x17a   : > { %5008 = vmatpush3.bf16.msra.mxu0 %v5469_v26  ;;  %4991 = vmatprep.mubr.bf16.mxu0 %v4381_v31  ;;  %v1282_v38 = vrot.slane %v1281_v20, 4  ;;  %v2427_v26 = vshrl.u32 %v5992_v59, 16  ;;  %v1297_v11 = vsel %vm5909_vm12, %v1292_v55, %v1296_v29  ;;  %v1304_v31 = vrot.slane %v1302_v58, 5  ;;  %6754 = vst [vmem:[#allocation3_spill] sm:$0xff] %v6063_v51 }
 0x17b   : > { %5009 = vmatprep.subr.bf16.mxu0 %v5471_v8  ;;  %v2420_v56 = vor.u32 %v2419_v46, %v2416_v39  ;;  %5136 = vmatpush3.bf16.msra.mxu1 %v5470_v60  ;;  %v5474_v60 = vld [vmem:[%s6741_s5 + $0x160] sm:$0xff]   ;;  %v1314_v17 = vrot.slane %v1312_v9, 4  ;;  %v1318_v20 = vshll.u32 %v6030_v57, 16  ;;  %v2451_v58 = vshrl.u32 %v6043_v14, 16 }
 0x17c   : > { %v1287_v50 = vsel %vm5909_vm12, %v1282_v38, %v1286_v13  ;;  %v2429_v37 = vrot.slane %v2427_v26, 4  ;;  %5137 = vmatprep.subr.bf16.mxu1 %v5472_v25  ;;  %v1310_v13 = vrot.slane %v1308_v0, 5  ;;  %v5476_v38 = vld [vmem:[%s6741_s5 + $0x168] sm:$0xff]   ;;  %v2457_v0 = vshll.u32 %v6051_v61, 16 }
 0x17d   : > { %v2421_v12 = vrot.slane %v2420_v56, 4  ;;  %v4382_v15 = vcombine.low %v1287_v50, %v1297_v11  ;;  %v2440_v50 = vrot.slane %v2438_v2, 4  ;;  %v2449_v56 = vrot.slane %v2447_v30, 5  ;;  %v6074_v11 = vld [vmem:[#allocation2 + $0x4c] sm:$0xf] }
 0x17e   : > { %5010 = vmatpush3.bf16.msra.mxu0 %v5471_v8  ;;  %v2430_v4 = vor.u32 %v2429_v37, %v2425_v49  ;;  %v1301_v8 = vrot.slane %v1299_v40, 4  ;;  %v1315_v26 = vor.u32 %v1314_v17, %v1310_v13  ;;  %v2443_v37 = vrot.slane %v2441_v35, 5  ;;  %v5479_v40 = vld [vmem:[%s6741_s5 + $0x38] sm:$0xff]  }
 0x17f   : > { %5011 = vmatprep.subr.bf16.mxu0 %v5473_v53  ;;  %v2426_v28 = vsel %vm5909_vm12, %v2421_v12, %v2425_v49  ;;  %5138 = vmatpush3.bf16.msra.mxu1 %v5472_v25  ;;  %v6061_v25 = vld [vmem:[#allocation2 + $0x40] sm:$0xf]  ;;  %v1323_v9 = vshrl.u32 %v6059_v41, 16  ;;  %v1326_v10 = vshll.u32 %v6059_v41, 16 }
 0x180   : > { %v2431_v16 = vrot.slane %v2430_v4, 4  ;;  %v1305_v29 = vor.u32 %v1304_v31, %v1301_v8  ;;  %4992 = vmatmul.mubr.bf16.gmra.mrb[24].mxu0 %v4382_v15  ;;  %5139 = vmatprep.subr.bf16.mxu1 %v5474_v60  ;;  %v1316_v55 = vrot.slane %v1315_v26, 4  ;;  %v2332_v4 = vld [vmem:[#allocation2 + $0x48] sm:$0xf]  ;;  %v2444_v8 = vor.u32 %v2443_v37, %v2440_v50 }
 0x181   : > { %v2453_v31 = vrot.slane %v2451_v58, 4  ;;  %v2459_v15 = vrot.slane %v2457_v0, 5  ;;  %v1336_v35 = vshrl.u32 %v6061_v25, 16  ;;  %v2462_v30 = vshrl.u32 %v2332_v4, 16 }
 0x182   : > { %5012 = vmatpush3.bf16.msra.mxu0 %v5473_v53  ;;  %v2436_v39 = vsel %vm5909_vm12, %v2431_v16, %v2435_v6  ;;  %v1320_v53 = vrot.slane %v1318_v20, 5  ;;  %v1306_v49 = vrot.slane %v1305_v29, 4  ;;  %v1332_v16 = vshll.u32 %v6061_v25, 16 }
 0x183   : > { %5013 = vmatprep.subr.bf16.mxu0 %v5475_v3  ;;  %v4502_v46 = vcombine.low %v2426_v28, %v2436_v39  ;;  %5140 = vmatpush3.bf16.msra.mxu1 %v5474_v60  ;;  %v2445_v17 = vrot.slane %v2444_v8, 4  ;;  %v1325_v20 = vrot.slane %v1323_v9, 4  ;;  %v5478_v28 = vld [vmem:[%s6741_s5 + $0x170] sm:$0xff]   ;;  %v2454_v29 = vor.u32 %v2453_v31, %v2449_v56  ;;  %v6098_v8 = vld [vmem:[#allocation2 + $0x48] sm:$0xf] }
 0x184   : > { %v1311_v6 = vsel %vm5909_vm12, %v1306_v49, %v1310_v13  ;;  %v1321_v12 = vsel %vm5909_vm12, %v1316_v55, %v1320_v53  ;;  %v1328_v13 = vrot.slane %v1326_v10, 5  ;;  %5141 = vmatprep.subr.bf16.mxu1 %v5476_v38  ;;  %v1334_v2 = vrot.slane %v1332_v16, 5  ;;  %v6086_v53 = vld [vmem:[#allocation2 + $0x50] sm:$0x1]  ;;  %v6091_v49 = vld [vmem:[%s6741_s5 + $0x80] sm:$0xff]  }
 0x185   : > { %5120 = vmatmul.mubr.bf16.gmra.mrb[4].mxu1 %v4502_v46  ;;  %v1342_v39 = vshll.u32 %v6063_v51, 16  ;;  %v2450_v60 = vsel %vm5909_vm12, %v2445_v17, %v2449_v56  ;;  %v2465_v46 = vshll.u32 %v2332_v4, 16  ;;  %v2455_v50 = vrot.slane %v2454_v29, 4  ;;  %v5480_v56 = vld [vmem:[%s6741_s5 + $0x178] sm:$0xff]   ;;  %v2335_v29 = vld [vmem:[#allocation2 + $0x54] sm:$0xf] }
 0x186   : > { %5014 = vmatpush3.bf16.msra.mxu0 %v5475_v3  ;;  %v4383_v3 = vcombine.low %v1311_v6, %v1321_v12  ;;  %v1329_v26 = vor.u32 %v1328_v13, %v1325_v20  ;;  %v1338_v37 = vrot.slane %v1336_v35, 4  ;;  %v2464_v0 = vrot.slane %v2462_v30, 4  ;;  %v6107_v13 = vld [vmem:[#allocation2 + $0x50] sm:$0x1] }
 0x187   : > { %5015 = vmatprep.subr.bf16.mxu0 %v5477_v23  ;;  %v1344_v55 = vrot.slane %v1342_v39, 5  ;;  %5142 = vmatpush3.bf16.msra.mxu1 %v5476_v38  ;;  %v2467_v6 = vrot.slane %v2465_v46, 5  ;;  %v2475_v4 = vshrl.u32 %v6074_v11, 16  ;;  %v2460_v9 = vsel %vm5909_vm12, %v2455_v50, %v2459_v15  ;;  %v6103_v38 = vld [vmem:[#allocation2 + $0x4c] sm:$0xf]  ;;  %6755 = vst [vmem:[#allocation4_spill] sm:$0xff] %v6107_v13 }
 0x188   : > { %4995 = vmatprep.mubr.bf16.mxu0 %v4383_v3  ;;  %v1330_v58 = vrot.slane %v1329_v26, 4  ;;  %5143 = vmatprep.subr.bf16.mxu1 %v5478_v28  ;;  %v1339_v10 = vor.u32 %v1338_v37, %v1334_v2  ;;  %v2481_v31 = vshll.u32 %v6086_v53, 16  ;;  %v4503_v16 = vcombine.low %v2450_v60, %v2460_v9  ;;  %v6117_v46 = vld [vmem:[%s6741_s5 + $0x180] sm:$0xff]  }
 0x189   : > { %v2468_v17 = vor.u32 %v2467_v6, %v2464_v0  ;;  %v2477_v20 = vrot.slane %v2475_v4, 4  ;;  %v1347_v39 = vshrl.u32 %v6098_v8, 16  ;;  %v1350_v26 = vshll.u32 %v6098_v8, 16 }
 0x18a   : > { %5016 = vmatpush3.bf16.msra.mxu0 %v5477_v23  ;;  %v2471_v23 = vshll.u32 %v6074_v11, 16  ;;  %v1335_v3 = vsel %vm5909_vm12, %v1330_v58, %v1334_v2  ;;  %v1340_v35 = vrot.slane %v1339_v10, 4  ;;  %v2483_v15 = vrot.slane %v2481_v31, 5  ;;  %5123 = vmatprep.mubr.bf16.mxu1 %v4503_v16  ;;  %v6122_v58 = vld [vmem:[#allocation2 + $0x58] sm:$0xf] }
 0x18b   : > { %5017 = vmatprep.subr.bf16.mxu0 %v5479_v40  ;;  %5144 = vmatpush3.bf16.msra.mxu1 %v5478_v28  ;;  %v1356_v30 = vshll.u32 %v6103_v38, 16  ;;  %v1360_v2 = vshrl.u32 %v6103_v38, 16  ;;  %v1349_v37 = vrot.slane %v1347_v39, 4  ;;  %v1366_v28 = vshll.u32 %v6107_v13, 16  ;;  %v6126_v10 = vld [vmem:[#allocation2 + $0x5c] sm:$0x1] }
 0x18c   : > { %v2473_v12 = vrot.slane %v2471_v23, 5  ;;  %5145 = vmatprep.subr.bf16.mxu1 %v5480_v56  ;;  %v1345_v50 = vsel %vm5909_vm12, %v1340_v35, %v1344_v55  ;;  %v1352_v23 = vrot.slane %v1350_v26, 5  ;;  %v6128_v31 = vld [vmem:[#allocation2 + $0x54] sm:$0xf]  ;;  %v2486_v55 = vshrl.u32 %v2335_v29, 16 }
 0x18d   : > { %v4384_v0 = vcombine.low %v1335_v3, %v1345_v50  ;;  %v1358_v9 = vrot.slane %v1356_v30, 5  ;;  %v6130_v35 = vld [vmem:[#allocation2 + $0x58] sm:$0xf]  ;;  %v2489_v39 = vshll.u32 %v2335_v29, 16  ;;  %v2499_v26 = vshrl.u32 %v6122_v58, 16 }
 0x18e   : > { %5018 = vmatpush3.bf16.msra.mxu0 %v5479_v40  ;;  %v2469_v40 = vrot.slane %v2468_v17, 4  ;;  %v2478_v60 = vor.u32 %v2477_v20, %v2473_v12  ;;  %v1353_v16 = vor.u32 %v1352_v23, %v1349_v37  ;;  %v1362_v17 = vrot.slane %v1360_v2, 4  ;;  %v2338_v29 = vld [vmem:[#allocation2 + $0x60] sm:$0xf]  ;;  %v6150_v13 = vld [vmem:[#allocation2 + $0x68] sm:$0x1] }
 0x18f   : > { %5035 = vmatprep.subr.bf16.mxu0 %v6091_v49  ;;  %v1368_v20 = vrot.slane %v1366_v28, 5  ;;  %5146 = vmatpush3.bf16.msra.mxu1 %v5480_v56  ;;  %v2488_v2 = vrot.slane %v2486_v55, 4  ;;  %v2491_v50 = vrot.slane %v2489_v39, 5  ;;  %v2501_v56 = vrot.slane %v2499_v26, 4  ;;  %v6138_v28 = vld [vmem:[#allocation2 + $0x5c] sm:$0x1] }
 0x190   : > { %v2474_v6 = vsel %vm5909_vm12, %v2469_v40, %v2473_v12  ;;  %v2479_v4 = vrot.slane %v2478_v60, 4  ;;  %4996 = vmatmul.mubr.bf16.gmra.mrb[28].mxu0 %v4384_v0  ;;  %v2495_v12 = vshll.u32 %v6122_v58, 16  ;;  %5163 = vmatprep.subr.bf16.mxu1 %v6117_v46  ;;  %v1354_v60 = vrot.slane %v1353_v16, 4  ;;  %v6145_v39 = vld [vmem:[#allocation2 + $0x64] sm:$0xf] }
 0x191   : > { %v1363_v30 = vor.u32 %v1362_v17, %v1358_v9  ;;  %v2505_v23 = vshll.u32 %v6126_v10, 16  ;;  %v2492_v16 = vor.u32 %v2491_v50, %v2488_v2  ;;  %v1384_v44 = vshrl.u32 %v6130_v35, 16  ;;  %v2743_v2 = vld [vmem:[#allocation2 + $0xc] sm:$0xe] }
 0x192   : > { %v2484_v3 = vsel %vm5909_vm12, %v2479_v4, %v2483_v15  ;;  %v2497_v37 = vrot.slane %v2495_v12, 5  ;;  %v1359_v15 = vsel %vm5909_vm12, %v1354_v60, %v1358_v9  ;;  %v1374_v4 = vshll.u32 %v6128_v31, 16 }
 0x193   : > { %v4504_v40 = vcombine.low %v2474_v6, %v2484_v3  ;;  %v1364_v0 = vrot.slane %v1363_v30, 4  ;;  %v1371_v6 = vshrl.u32 %v6128_v31, 16  ;;  %v2507_v55 = vrot.slane %v2505_v23, 5 }
 0x194   : > { %v2502_v17 = vor.u32 %v2501_v56, %v2497_v37  ;;  %v1380_v3 = vshll.u32 %v6130_v35, 16  ;;  %v2493_v60 = vrot.slane %v2492_v16, 4  ;;  %v1386_v56 = vrot.slane %v1384_v44, 4 }
 0x195   : > { %5124 = vmatmul.mubr.bf16.gmra.mrb[8].mxu1 %v4504_v40  ;;  %v1369_v12 = vsel %vm5909_vm12, %v1364_v0, %v1368_v20  ;;  %v1373_v26 = vrot.slane %v1371_v6, 4  ;;  %v1376_v40 = vrot.slane %v1374_v4, 5  ;;  %v1390_v23 = vshll.u32 %v6138_v28, 16 }
 0x196   : > { %v4385_v9 = vcombine.low %v1359_v15, %v1369_v12  ;;  %v2503_v30 = vrot.slane %v2502_v17, 4  ;;  %v1382_v5 = vrot.slane %v1380_v3, 5  ;;  %v2510_v51 = vshrl.u32 %v2338_v29, 16 }
 0x197   : > { %v1377_v50 = vor.u32 %v1376_v40, %v1373_v26  ;;  %v2498_v20 = vsel %vm5909_vm12, %v2493_v60, %v2497_v37  ;;  %v2513_v6 = vshll.u32 %v2338_v29, 16  ;;  %v2519_v15 = vshll.u32 %v6145_v39, 16 }
 0x198   : > { %4999 = vmatprep.mubr.bf16.mxu0 %v4385_v9  ;;  %v2508_v0 = vsel %vm5909_vm12, %v2503_v30, %v2507_v55  ;;  %v1387_v17 = vor.u32 %v1386_v56, %v1382_v5  ;;  %v1392_v3 = vrot.slane %v1390_v23, 5  ;;  %v2512_v12 = vrot.slane %v2510_v51, 4  ;;  %v2744_v23 = vld [vmem:[#allocation2 + $0x18] sm:$0xe] }
 0x199   : > { %v4505_v4 = vcombine.low %v2498_v20, %v2508_v0  ;;  %v1378_v16 = vrot.slane %v1377_v50, 4  ;;  %v2515_v26 = vrot.slane %v2513_v6, 5  ;;  %v2521_v44 = vrot.slane %v2519_v15, 5  ;;  %v2745_v20 = vld [vmem:[#allocation2 + $0x24] sm:$0xe] }
 0x19a   : > { %v2523_v40 = vshrl.u32 %v6145_v39, 16  ;;  %v1388_v37 = vrot.slane %v1387_v17, 4  ;;  %v2529_v60 = vshll.u32 %v6150_v13, 16  ;;  %v4515_v55 = vrot.slane %v2743_v2, 9 }
 0x19b   : > { %5127 = vmatprep.mubr.bf16.mxu1 %v4505_v4  ;;  %v1383_v9 = vsel %vm5909_vm12, %v1378_v16, %v1382_v5  ;;  %v2516_v29 = vor.u32 %v2515_v26, %v2512_v12  ;;  %v2777_v51 = vrot.slane %v5890_v52, 5  ;;  %v4395_v5 = vcombine.low %v5879_v42, %v5881_v43 }
 0x19c   : > { %v2525_v30 = vrot.slane %v2523_v40, 4  ;;  %v1393_v56 = vsel %vm5909_vm12, %v1388_v37, %v1392_v3  ;;  %v2531_v15 = vrot.slane %v2529_v60, 5  ;;  %v2791_v3 = vrot.slane %v5967_v18, 5 }
 0x19d   : > { %v4386_v0 = vcombine.low %v1383_v9, %v1393_v56  ;;  %v2517_v2 = vrot.slane %v2516_v29, 4  ;;  %v2778_v4 = vsel %vm6164_vm1, %v4515_v55, %v2777_v51  ;;  %v2779_v16 = vrot.slane %v2777_v51, 4  ;;  %v2746_v55 = vld [vmem:[#allocation2 + $0x30] sm:$0xe] }
 0x19e   : > { %v2526_v6 = vor.u32 %v2525_v30, %v2521_v44  ;;  %v6758_v12 = vrot.slane %v5929_v27, 5  ;;  %v2787_v43 = vrot.slane %v5940_v36, 5  ;;  %v6759_v26 = vrot.slane %v5892_v54, 5 }
 0x19f   : > { %5000 = vmatmul.mubr.bf16.gmra.mrb[32].mxu0 %v4386_v0  ;;  %v2522_v52 = vsel %vm5909_vm12, %v2517_v2, %v2521_v44  ;;  %v4516_v60 = vrot.slane %v2744_v23, 9  ;;  %v4517_v44 = vrot.slane %v2745_v20, 9  ;;  %v2793_v18 = vrot.slane %v2791_v3, 4  ;;  %v2747_v23 = vld [vmem:[#allocation2 + $0x3c] sm:$0xe]  ;;  %v5485_v0 = vld [vmem:[%s6741_s5 + $0x88] sm:$0xff]  }
 0x1a0   : > { %v2527_v17 = vrot.slane %v2526_v6, 4  ;;  %v2786_v42 = vrot.slane %v6758_v12, 4  ;;  %5019 = vmatprep.mubr.bf16.mxu0 %v4395_v5  ;;  %v2781_v40 = vsel %vm6164_vm1, %v2779_v16, %v6759_v26  ;;  %v2794_v30 = vrot.slane %v5971_v24, 5 }
 0x1a1   : > { %v4539_v37 = vcombine.low %v2778_v4, %v2781_v40  ;;  %v1813_v51 = vrot.slane %v5883_v45, 5  ;;  %v1820_v36 = vrot.slane %v5923_v21, 5  ;;  %v4396_v54 = vcombine.low %v5902_v63, %v5914_v7  ;;  %v5491_v40 = vld [vmem:[%s6741_s5 + $0x98] sm:$0xff]  }
 0x1a2   : > { %v2532_v9 = vsel %vm5909_vm12, %v2527_v17, %v2531_v15  ;;  %v2788_v56 = vsel %vm6164_vm1, %v2786_v42, %v2787_v43  ;;  %v4397_v5 = vcombine.low %v5948_v19, %v5955_v62  ;;  %v6760_v20 = vmov %v6758_v12  ;;  %v6209_v62 = vld [vmem:[#allocation2 + $0x48] sm:$0xe] }
 0x1a3   : > { %v4506_v29 = vcombine.low %v2522_v52, %v2532_v9  ;;  %v2785_v24 = vsel %vm6164_vm1, %v4516_v60, %v6760_v20  ;;  %v4518_v2 = vrot.slane %v2746_v55, 9  ;;  %v2798_v63 = vrot.slane %v5992_v59, 5  ;;  %v5486_v59 = vld [vmem:[%s6741_s5 + $0x188] sm:$0xff]  }
 0x1a4   : > { %v2805_v7 = vrot.slane %v6043_v14, 5  ;;  %v2792_v6 = vsel %vm6164_vm1, %v4517_v44, %v2791_v3  ;;  %v2795_v19 = vsel %vm6164_vm1, %v2793_v18, %v2794_v30  ;;  %v2801_v27 = vrot.slane %v6010_v22, 5  ;;  %v6218_v14 = vld [vmem:[#allocation2 + $0x54] sm:$0xe]  ;;  %v6220_v22 = vld [vmem:[#allocation2 + $0x60] sm:$0xe] }
 0x1a5   : > { %5128 = vmatmul.mubr.bf16.gmra.mrb[12].mxu1 %v4506_v29  ;;  %v4519_v15 = vrot.slane %v2747_v23, 9  ;;  %v2808_v4 = vrot.slane %v6051_v61, 5  ;;  %v2812_v16 = vrot.slane %v6074_v11, 5  ;;  %v4540_v52 = vcombine.low %v2785_v24, %v2788_v56  ;;  %v6246_v18 = vld [vmem:[#allocation2 + $0x4] sm:$0xf] }
 0x1a6   : > { %5147 = vmatprep.mubr.bf16.mxu1 %v4539_v37  ;;  %v4541_v17 = vcombine.low %v2792_v6, %v2795_v19  ;;  %v2800_v3 = vrot.slane %v2798_v63, 4  ;;  %v2807_v12 = vrot.slane %v2805_v7, 4  ;;  %v4398_v61 = vcombine.low %v5979_v32, %v5985_v47  ;;  %v5495_v23 = vld [vmem:[%s6741_s5 + $0xa0] sm:$0xff]  }
 0x1a7   : > { %5020 = vmatmul.mubr.bf16.vlgmr.msra.gmra.mrb[20].mxu0 %v4396_v54  ;;  %v2799_v42 = vsel %vm6164_vm1, %v4518_v2, %v2798_v63  ;;  %v4399_v43 = vcombine.low %v6016_v34, %v6021_v33  ;;  %v4520_v26 = vrot.slane %v6209_v62, 9  ;;  %v2814_v9 = vrot.slane %v2812_v16, 4  ;;  %v5490_v34 = vld [vmem:[%s6741_s5 + $0x190] sm:$0xff]   ;;  %v1781_v54 = vld [vmem:[#allocation2] sm:$0xe] }
 0x1a8   : > { %5036 = vmatpush3.bf16.msra.mxu0 %v6091_v49  ;;  %5023 = vmatprep.mubr.bf16.mxu0 %v4397_v5  ;;  %v5489_v49 = vld [vmem:[%s6741_s5 + $0x90] sm:$0xff]   ;;  %v2815_v32 = vrot.slane %v6086_v53, 5  ;;  %v4521_v37 = vrot.slane %v6218_v14, 9  ;;  %v2819_v60 = vrot.slane %v6122_v58, 5  ;;  %v2822_v44 = vrot.slane %v6126_v10, 5 }
 0x1a9   : > { %5037 = vmatprep.subr.bf16.mxu0 %v5485_v0  ;;  %v4522_v55 = vrot.slane %v6220_v22, 9  ;;  %v2826_v29 = vrot.slane %v6145_v39, 5  ;;  %v1810_v53 = vrot.slane %v6246_v18, 5  ;;  %v2802_v58 = vsel %vm6164_vm1, %v2800_v3, %v2801_v27  ;;  %v6267_v63 = vld [vmem:[#allocation2 + $0x10] sm:$0xf] }
 0x1aa   : > { %v2806_v30 = vsel %vm6164_vm1, %v4519_v15, %v2805_v7  ;;  %v2809_v10 = vsel %vm6164_vm1, %v2807_v12, %v2808_v4  ;;  %v4542_v56 = vcombine.low %v2799_v42, %v2802_v58  ;;  %v2821_v20 = vrot.slane %v2819_v60, 4  ;;  %v1784_v62 = vld [vmem:[#allocation2 + $0x24] sm:$0xe]  ;;  %v5497_v4 = vld [vmem:[%s6741_s5 + $0xa8] sm:$0xff]   ;;  %v6296_v12 = vld [vmem:[#allocation2 + $0x18] sm:$0xe] }
 0x1ab   : > { %v4543_v5 = vcombine.low %v2806_v30, %v2809_v10  ;;  %v2829_v24 = vrot.slane %v6150_v13, 5  ;;  %v4411_v2 = vrot.slane %v1781_v54, 9  ;;  %v1817_v7 = vrot.slane %v6267_v63, 5  ;;  %v5547_v58 = vld [vmem:[#allocation2 + $0x1c] sm:$0xf]  ;;  %v5502_v13 = vld [vmem:[%s6741_s5 + $0x1b0] sm:$0xff]  }
 0x1ac   : > { %5038 = vmatpush3.bf16.msra.mxu0 %v5485_v0  ;;  %v6265_v0 = vrot.slane %v2826_v29, 4  ;;  %v1831_v6 = vrot.slane %v5985_v47, 5  ;;  %v1812_v19 = vrot.slane %v1810_v53, 4  ;;  %v1834_v27 = vrot.slane %v5987_v48, 5  ;;  %v1786_v10 = vld [vmem:[#allocation2 + $0x3c] sm:$0xe] }
 0x1ad   : > { %5148 = vmatmul.mubr.bf16.vlgmr.msra.gmra.mrb[0].mxu1 %v4540_v52  ;;  %5039 = vmatprep.subr.bf16.mxu0 %v5489_v49  ;;  %v4400_v15 = vcombine.low %v6059_v41, %v6061_v25  ;;  %v4401_v52 = vcombine.low %v6098_v8, %v6103_v38  ;;  %v4414_v47 = vrot.slane %v1784_v62, 9  ;;  %v2813_v48 = vsel %vm6164_vm1, %v4520_v26, %v2812_v16  ;;  %v6761_v54 = vld [vmem:[#allocation3_spill] sm:$0xff]  ;;  %v1788_v63 = vld [vmem:[#allocation2 + $0x54] sm:$0xe] }
 0x1ae   : > { %5164 = vmatpush3.bf16.msra.mxu1 %v6117_v46  ;;  %5151 = vmatprep.mubr.bf16.mxu1 %v4541_v17  ;;  %v5492_v46 = vld [vmem:[%s6741_s5 + $0x198] sm:$0xff]   ;;  %v1833_v14 = vrot.slane %v1831_v6, 4  ;;  %v2816_v41 = vsel %vm6164_vm1, %v2814_v9, %v2815_v32  ;;  %v5496_v17 = vld [vmem:[%s6741_s5 + $0x1a0] sm:$0xff]   ;;  %v2820_v8 = vsel %vm6164_vm1, %v4521_v37, %v2819_v60  ;;  %v2823_v3 = vsel %vm6164_vm1, %v2821_v20, %v2822_v44  ;;  %v1785_v9 = vld [vmem:[#allocation2 + $0x30] sm:$0xe] }
 0x1af   : > { %5165 = vmatprep.subr.bf16.mxu1 %v5486_v59  ;;  %5024 = vmatmul.mubr.bf16.gmra.mrb[24].mxu0 %v4398_v61  ;;  %v6300_v11 = vsel %vm6164_vm1, %v4414_v47, %v1831_v6  ;;  %v1838_v42 = vrot.slane %v6021_v33, 5  ;;  %v4402_v26 = vcombine.low %v6128_v31, %v6130_v35  ;;  %v1841_v32 = vrot.slane %v6030_v57, 5  ;;  %v5498_v37 = vld [vmem:[%s6741_s5 + $0x1a8] sm:$0xff]   ;;  %v5501_v57 = vld [vmem:[%s6741_s5 + $0xb0] sm:$0xff]   ;;  %v5504_v47 = vld [vmem:[%s6741_s5 + $0x1b8] sm:$0xff]  }
 0x1b0   : > { %5040 = vmatpush3.bf16.msra.mxu0 %v5489_v49  ;;  %5027 = vmatprep.mubr.bf16.mxu0 %v4399_v43  ;;  %v6304_v16 = vsel %vm6164_vm1, %v1833_v14, %v1834_v27  ;;  %v4544_v43 = vcombine.low %v2813_v48, %v2816_v41  ;;  %v4545_v60 = vcombine.low %v2820_v8, %v2823_v3  ;;  %v1824_v30 = vrot.slane %v5547_v58, 5  ;;  %v6762_v27 = vld [vmem:[#allocation4_spill] sm:$0xff] }
 0x1b1   : > { %5041 = vmatprep.subr.bf16.mxu0 %v5491_v40  ;;  %v4438_v49 = vcombine.low %v6300_v11, %v6304_v16  ;;  %v1811_v33 = vsel %vm6164_vm1, %v4411_v2, %v1810_v53  ;;  %v1840_v31 = vrot.slane %v1838_v42, 4  ;;  %v1814_v44 = vsel %vm6164_vm1, %v1812_v19, %v1813_v51  ;;  %v5503_v51 = vld [vmem:[%s6741_s5 + $0xb8] sm:$0xff]   ;;  %v6428_v58 = vld [vmem:[#allocation2 + $0x20] sm:$0x1]  ;;  %v3290_v16 = vld [vmem:[#allocation2 + $0x30] sm:$0xf] }
 0x1b2   : > { %5166 = vmatpush3.bf16.msra.mxu1 %v5486_v59  ;;  %v6281_v59 = vld [vmem:[#allocation2 + $0xc] sm:$0xe]  ;;  %v1845_v18 = vrot.slane %v6061_v25, 5  ;;  %v1848_v53 = vrot.slane %v6761_v54, 5  ;;  %v2827_v25 = vsel %vm6164_vm1, %v4522_v55, %v2826_v29  ;;  %v2830_v39 = vsel %vm6164_vm1, %v6265_v0, %v2829_v24  ;;  %v1787_v0 = vld [vmem:[#allocation2 + $0x48] sm:$0xe] }
 0x1b3   : > { %5167 = vmatprep.subr.bf16.mxu1 %v5490_v34  ;;  %v4412_v61 = vrot.slane %v6281_v59, 9  ;;  %v6338_v45 = vsel %vm6164_vm1, %v1840_v31, %v1841_v32  ;;  %v4435_v22 = vcombine.low %v1811_v33, %v1814_v44  ;;  %v1826_v29 = vrot.slane %v1824_v30, 4  ;;  %v5508_v32 = vld [vmem:[%s6741_s5 + $0x1c0] sm:$0xff]   ;;  %v3284_v33 = vld [vmem:[#allocation2 + $0x18] sm:$0xf]  ;;  %v5512_v31 = vld [vmem:[%s6741_s5 + $0xd0] sm:$0xff]  }
 0x1b4   : > { %5042 = vmatpush3.bf16.msra.mxu0 %v5491_v40  ;;  %v1819_v40 = vrot.slane %v1817_v7, 4  ;;  %v1847_v6 = vrot.slane %v1845_v18, 4  ;;  %v1852_v62 = vrot.slane %v6103_v38, 5  ;;  %v4417_v38 = vrot.slane %v1787_v0, 9  ;;  %v5515_v44 = vld [vmem:[%s6741_s5 + $0xd8] sm:$0xff]  }
 0x1b5   : > { %5152 = vmatmul.mubr.bf16.gmra.mrb[4].mxu1 %v4542_v56  ;;  %5043 = vmatprep.subr.bf16.mxu0 %v5495_v23  ;;  %v4413_v56 = vrot.slane %v6296_v12, 9  ;;  %v1859_v41 = vrot.slane %v6130_v35, 5  ;;  %v4418_v3 = vrot.slane %v1788_v63, 9  ;;  %v5506_v35 = vld [vmem:[%s6741_s5 + $0xc0] sm:$0xff]  }
 0x1b6   : > { %5168 = vmatpush3.bf16.msra.mxu1 %v5490_v34  ;;  %5155 = vmatprep.mubr.bf16.mxu1 %v4543_v5  ;;  %v4415_v34 = vrot.slane %v1785_v9, 9  ;;  %v4416_v5 = vrot.slane %v1786_v10, 9  ;;  %v6362_v19 = vsel %vm6164_vm1, %v1847_v6, %v1848_v53  ;;  %v1854_v59 = vrot.slane %v1852_v62, 4 }
 0x1b7   : > { %5169 = vmatprep.subr.bf16.mxu1 %v5492_v46  ;;  %5028 = vmatmul.mubr.bf16.gmra.mrb[28].mxu0 %v4400_v15  ;;  %v1855_v15 = vrot.slane %v6762_v27, 5  ;;  %v1821_v14 = vsel %vm6164_vm1, %v1819_v40, %v1820_v36  ;;  %v1825_v48 = vsel %vm6164_vm1, %v4413_v56, %v1824_v30  ;;  %v6390_v21 = vsel %vm6164_vm1, %v4417_v38, %v1852_v62  ;;  %v5509_v40 = vld [vmem:[%s6741_s5 + $0xc8] sm:$0xff]   ;;  %v3287_v30 = vld [vmem:[#allocation2 + $0x24] sm:$0xf] }
 0x1b8   : > { %5044 = vmatpush3.bf16.msra.mxu0 %v5495_v23  ;;  %5031 = vmatprep.mubr.bf16.mxu0 %v4401_v52  ;;  %v5548_v23 = vld [vmem:[#allocation2 + $0x20] sm:$0x1]  ;;  %v6358_v55 = vsel %vm6164_vm1, %v4416_v5, %v1845_v18  ;;  %v1818_v52 = vsel %vm6164_vm1, %v4412_v61, %v1817_v7  ;;  %v1862_v7 = vrot.slane %v6138_v28, 5  ;;  %v1861_v12 = vrot.slane %v1859_v41, 4  ;;  %v6432_v56 = vld [vmem:[#allocation2 + $0x28] sm:$0xf] }
 0x1b9   : > { %5045 = vmatprep.subr.bf16.mxu0 %v5497_v4  ;;  %v1827_v20 = vrot.slane %v5548_v23, 5  ;;  %v4440_v24 = vcombine.low %v6358_v55, %v6362_v19  ;;  %v6394_v36 = vsel %vm6164_vm1, %v1854_v59, %v1855_v15  ;;  %v4436_v61 = vcombine.low %v1818_v52, %v1821_v14  ;;  %v5513_v5 = vld [vmem:[#allocation2 + $0x3c] sm:$0xff]   ;;  %v5524_v55 = vld [vmem:[%s6741_s5 + $0xf0] sm:$0xff]  }
 0x1ba   : > { %5170 = vmatpush3.bf16.msra.mxu1 %v5492_v46  ;;  %v6334_v46 = vsel %vm6164_vm1, %v4415_v34, %v1838_v42  ;;  %v4441_v28 = vcombine.low %v6390_v21, %v6394_v36  ;;  %v6403_v42 = vsel %vm6164_vm1, %v4418_v3, %v1859_v41  ;;  %v5510_v34 = vld [vmem:[%s6741_s5 + $0x1c8] sm:$0xff]   ;;  %v3309_v10 = vshrl.u32 %v3284_v33, 16  ;;  %v5520_v59 = vld [vmem:[%s6741_s5 + $0x1e0] sm:$0xff]  }
 0x1bb   : > { %5171 = vmatprep.subr.bf16.mxu1 %v5496_v17  ;;  %v4439_v2 = vcombine.low %v6334_v46, %v6338_v45  ;;  %v1828_v8 = vsel %vm6164_vm1, %v1826_v29, %v1827_v20  ;;  %v3312_v18 = vshll.u32 %v3284_v33, 16  ;;  %v3336_v23 = vshll.u32 %v3287_v30, 16  ;;  %v5517_v20 = vld [vmem:[#allocation2 + $0x48] sm:$0xff]  }
 0x1bc   : > { %5046 = vmatpush3.bf16.msra.mxu0 %v5497_v4  ;;  %v4546_v4 = vcombine.low %v2827_v25, %v2830_v39  ;;  %v5514_v25 = vld [vmem:[%s6741_s5 + $0x1d0] sm:$0xff]   ;;  %v3328_v6 = vshll.u32 %v6428_v58, 16  ;;  %v5516_v39 = vld [vmem:[%s6741_s5 + $0x1d8] sm:$0xff]   ;;  %v3342_v29 = vshll.u32 %v6432_v56, 16  ;;  %v3346_v11 = vshrl.u32 %v6432_v56, 16  ;;  %v5522_v33 = vld [vmem:[%s6741_s5 + $0x1e8] sm:$0xff]  }
 0x1bd   : > { %5156 = vmatmul.mubr.bf16.gmra.mrb[8].mxu1 %v4544_v43  ;;  %5047 = vmatprep.subr.bf16.mxu0 %v5501_v57  ;;  %v4437_v43 = vcombine.low %v1825_v48, %v1828_v8  ;;  %v3311_v62 = vrot.slane %v3309_v10, 4  ;;  %v6456_v46 = vld [vmem:[#allocation2 + $0x2c] sm:$0x1]  ;;  %v3357_v15 = vshrl.u32 %v3290_v16, 16 }
 0x1be   : > { %5172 = vmatpush3.bf16.msra.mxu1 %v5496_v17  ;;  %5159 = vmatprep.mubr.bf16.mxu1 %v4545_v60  ;;  %v5505_v17 = vld [vmem:[#allocation2 + $0x18] sm:$0xff]   ;;  %v5511_v60 = vld [vmem:[#allocation2 + $0x30] sm:$0xff]   ;;  %v6466_v14 = vrot.slane %v3342_v29, 5  ;;  %v3348_v48 = vrot.slane %v3346_v11, 4  ;;  %v6468_v63 = vrot.slane %v3328_v6, 5  ;;  %v3352_v41 = vshll.u32 %v6456_v46, 16 }
 0x1bf   : > { %5173 = vmatprep.subr.bf16.mxu1 %v5498_v37  ;;  %5032 = vmatmul.mubr.bf16.gmra.mrb[32].mxu0 %v4402_v26  ;;  %v6407_v26 = vsel %vm6164_vm1, %v1861_v12, %v1862_v7  ;;  %v3293_v7 = vld [vmem:[#allocation2 + $0x3c] sm:$0xf]  ;;  %v6472_v12 = vld [vmem:[#allocation2 + $0x40] sm:$0xf]  ;;  %v6493_v10 = vld [vmem:[#allocation2 + $0x4c] sm:$0xf] }
 0x1c0   : > { %5048 = vmatpush3.bf16.msra.mxu0 %v5501_v57  ;;  %5051 = vmatprep.mubr.bf16.mxu0 %v4435_v22  ;;  %v4442_v9 = vcombine.low %v6403_v42, %v6407_v26  ;;  %v6423_v57 = vld [vmem:[#allocation2 + $0x1c] sm:$0xf]  ;;  %v5518_v22 = vld [vmem:[%s6741_s5 + $0xe0] sm:$0xff]   ;;  %v3349_v19 = vor.u32 %v3348_v48, %v6466_v14 }
 0x1c1   : > { %5049 = vmatprep.subr.bf16.mxu0 %v5503_v51  ;;  %v3318_v54 = vshll.u32 %v6423_v57, 16  ;;  %v3322_v53 = vshrl.u32 %v6423_v57, 16  ;;  %v6511_v11 = vld [vmem:[#allocation2 + $0x44] sm:$0x1]  ;;  %v5528_v42 = vld [vmem:[%s6741_s5 + $0x1f8] sm:$0xff]  }
 0x1c2   : > { %5174 = vmatpush3.bf16.msra.mxu1 %v5498_v37  ;;  %v5507_v37 = vld [vmem:[#allocation2 + $0x24] sm:$0xff]   ;;  %v6507_v6 = vrot.slane %v3349_v19, 4 }
 0x1c3   : > { %5175 = vmatprep.subr.bf16.mxu1 %v5502_v13  ;;  %v6454_v0 = vrot.slane %v3318_v54, 5  ;;  %v3324_v27 = vrot.slane %v3322_v53, 4 }
 0x1c4   : > { %5050 = vmatpush3.bf16.msra.mxu0 %v5503_v51  ;;  %v3333_v51 = vshrl.u32 %v3287_v30, 16  ;;  %v3296_v30 = vld [vmem:[#allocation2 + $0x48] sm:$0xf] }
 0x1c5   : > { %5160 = vmatmul.mubr.bf16.gmra.mrb[12].mxu1 %v4546_v4  ;;  %5067 = vmatprep.subr.bf16.mxu0 %v5506_v35  ;;  %v3360_v4 = vshll.u32 %v3290_v16, 16  ;;  %v3325_v3 = vor.u32 %v3324_v27, %v6454_v0  ;;  %v3405_v54 = vshrl.u32 %v3296_v30, 16  ;;  %v3408_v53 = vshll.u32 %v3296_v30, 16 }
 0x1c6   : > { %5176 = vmatpush3.bf16.msra.mxu1 %v5502_v13  ;;  %5179 = vmatprep.mubr.bf16.mxu1 %v5505_v17  ;;  %v3314_v13 = vrot.slane %v3312_v18, 5  ;;  %v3335_v45 = vrot.slane %v3333_v51, 4  ;;  %v5519_v17 = vld [vmem:[#allocation2 + $0x54] sm:$0xff]   ;;  %v6497_v18 = vrot.slane %v3352_v41, 5 }
 0x1c7   : > { %5177 = vmatprep.subr.bf16.mxu1 %v5504_v47  ;;  %5052 = vmatmul.mubr.bf16.vlgmr.msra.gmra.mrb[20].mxu0 %v4436_v61  ;;  %v5523_v61 = vld [vmem:[#allocation2 + $0x60] sm:$0xff]   ;;  %v3326_v36 = vrot.slane %v3325_v3, 4  ;;  %v5526_v51 = vld [vmem:[%s6741_s5 + $0x1f0] sm:$0xff]   ;;  %v6529_v3 = vld [vmem:[#allocation2 + $0x58] sm:$0xf] }
 0x1c8   : > { %5068 = vmatpush3.bf16.msra.mxu0 %v5506_v35  ;;  %5055 = vmatprep.mubr.bf16.mxu0 %v4437_v43  ;;  %v3315_v8 = vor.u32 %v3314_v13, %v3311_v62  ;;  %v6477_v43 = vld [vmem:[#allocation2 + $0x38] sm:$0x1]  ;;  %v3299_v41 = vld [vmem:[#allocation2 + $0x54] sm:$0xf]  ;;  %v3442_v30 = vshrl.u32 %v6529_v3, 16 }
 0x1c9   : > { %5069 = vmatprep.subr.bf16.mxu0 %v5509_v40  ;;  %v3376_v29 = vshll.u32 %v6477_v43, 16  ;;  %v3432_v19 = vshll.u32 %v3299_v41, 16 }
 0x1ca   : > { %5178 = vmatpush3.bf16.msra.mxu1 %v5504_v47  ;;  %v5521_v47 = vld [vmem:[%s6741_s5 + $0xe8] sm:$0xff]   ;;  %v3316_v21 = vrot.slane %v3315_v8, 4 }
 0x1cb   : > { %5195 = vmatprep.subr.bf16.mxu1 %v5508_v32 }
 0x1cc   : > { %5070 = vmatpush3.bf16.msra.mxu0 %v5509_v40  ;;  %v3359_v40 = vrot.slane %v3357_v15, 4  ;;  %v3331_v15 = vsel %vm5909_vm12, %v3326_v36, %v6468_v63 }
 0x1cd   : > { %5180 = vmatmul.mubr.bf16.vlgmr.msra.gmra.mrb[0].mxu1 %v5507_v37  ;;  %5071 = vmatprep.subr.bf16.mxu0 %v5512_v31 }
 0x1ce   : > { %5196 = vmatpush3.bf16.msra.mxu1 %v5508_v32  ;;  %5183 = vmatprep.mubr.bf16.mxu1 %v5511_v60  ;;  %v3362_v32 = vrot.slane %v3360_v4, 5  ;;  %v6521_v4 = vld [vmem:[#allocation2 + $0x50] sm:$0x1] }
 0x1cf   : > { %5197 = vmatprep.subr.bf16.mxu1 %v5510_v34  ;;  %5056 = vmatmul.mubr.bf16.gmra.mrb[24].mxu0 %v4438_v49  ;;  %v6452_v49 = vld [vmem:[#allocation2 + $0x34] sm:$0xf] }
 0x1d0   : > { %5072 = vmatpush3.bf16.msra.mxu0 %v5512_v31  ;;  %5059 = vmatprep.mubr.bf16.mxu0 %v4439_v2  ;;  %v3338_v2 = vrot.slane %v3336_v23, 5  ;;  %v3366_v52 = vshll.u32 %v6452_v49, 16  ;;  %v3370_v38 = vshrl.u32 %v6452_v49, 16  ;;  %v3390_v31 = vshll.u32 %v6472_v12, 16  ;;  %v5527_v23 = vld [vmem:[%s6741_s5 + $0xf8] sm:$0xff]  }
 0x1d1   : > { %5073 = vmatprep.subr.bf16.mxu0 %v5515_v44 }
 0x1d2   : > { %5198 = vmatpush3.bf16.msra.mxu1 %v5510_v34  ;;  %v3339_v35 = vor.u32 %v3338_v2, %v3335_v45  ;;  %v6479_v37 = vrot.slane %v3366_v52, 5  ;;  %v3372_v60 = vrot.slane %v3370_v38, 4  ;;  %v3384_v34 = vshll.u32 %v3293_v7, 16  ;;  %v5525_v45 = vld [vmem:[#allocation2 + $0x6c] sm:$0xff]  }
 0x1d3   : > { %5199 = vmatprep.subr.bf16.mxu1 %v5514_v25  ;;  %v6513_v13 = vrot.slane %v3390_v31, 5  ;;  %v3321_v2 = vsel %vm5909_vm12, %v3316_v21, %v6454_v0  ;;  %v3407_v52 = vrot.slane %v3405_v54, 4  ;;  %v3410_v38 = vrot.slane %v3408_v53, 5  ;;  %v5531_v21 = vld [vmem:[%s6741_s5 + $0x200] sm:$0xff]  }
 0x1d4   : > { %5074 = vmatpush3.bf16.msra.mxu0 %v5515_v44  ;;  %v3394_v44 = vshrl.u32 %v6472_v12, 16  ;;  %v3386_v62 = vrot.slane %v3384_v34, 5  ;;  %v3400_v0 = vshll.u32 %v6511_v11, 16  ;;  %v4603_v63 = vcombine.low %v3321_v2, %v3331_v15 }
 0x1d5   : > { %5184 = vmatmul.mubr.bf16.gmra.mrb[4].mxu1 %v5513_v5  ;;  %5075 = vmatprep.subr.bf16.mxu0 %v5518_v22  ;;  %v3414_v5 = vshll.u32 %v6493_v10, 16 }
 0x1d6   : > { %5200 = vmatpush3.bf16.msra.mxu1 %v5514_v25  ;;  %5187 = vmatprep.mubr.bf16.mxu1 %v5517_v20  ;;  %v3418_v25 = vshrl.u32 %v6493_v10, 16  ;;  %v5529_v20 = vld [vmem:[#allocation2 + $0xc] sm:$0xff]   ;;  %v3396_v27 = vrot.slane %v3394_v44, 4  ;;  %v3402_v31 = vrot.slane %v3400_v0, 5  ;;  %v3438_v44 = vshll.u32 %v6529_v3, 16 }
 0x1d7   : > { %5201 = vmatprep.subr.bf16.mxu1 %v5516_v39  ;;  %5060 = vmatmul.mubr.bf16.gmra.mrb[28].mxu0 %v4440_v24  ;;  %v3381_v24 = vshrl.u32 %v3293_v7, 16 }
 0x1d8   : > { %5076 = vmatpush3.bf16.msra.mxu0 %v5518_v22  ;;  %5063 = vmatprep.mubr.bf16.mxu0 %v4441_v28  ;;  %v6495_v28 = vrot.slane %v3339_v35, 4  ;;  %v3373_v22 = vor.u32 %v3372_v60, %v6479_v37  ;;  %v3397_v35 = vor.u32 %v3396_v27, %v6513_v13  ;;  %v3411_v60 = vor.u32 %v3410_v38, %v3407_v52  ;;  %v3305_v38 = vld [vmem:[#allocation2 + $0x6c] sm:$0xf] }
 0x1d9   : > { %5077 = vmatprep.subr.bf16.mxu0 %v5521_v47  ;;  %v3383_v16 = vrot.slane %v3381_v24, 4  ;;  %v6545_v24 = vld [vmem:[#allocation2 + $0x64] sm:$0xf] }
 0x1da   : > { %5202 = vmatpush3.bf16.msra.mxu1 %v5516_v39  ;;  %v3363_v39 = vor.u32 %v3362_v32, %v3359_v40  ;;  %v3374_v7 = vrot.slane %v3373_v22, 4  ;;  %v3345_v26 = vsel %vm5909_vm12, %v6495_v28, %v6466_v14  ;;  %v3302_v40 = vld [vmem:[#allocation2 + $0x60] sm:$0xf]  ;;  %v5530_v32 = vld [vmem:[#allocation2 + $0x18] sm:$0xff]   ;;  %v5533_v14 = vld [vmem:[#allocation2 + $0x24] sm:$0xff]   ;;  %v3398_v53 = vrot.slane %v3397_v35, 4 }
 0x1db   : > { %5203 = vmatprep.subr.bf16.mxu1 %v5520_v59  ;;  %v3387_v8 = vor.u32 %v3386_v62, %v3383_v16  ;;  %v3456_v54 = vshll.u32 %v3302_v40, 16  ;;  %v3444_v16 = vrot.slane %v3442_v30, 4  ;;  %v5532_v62 = vld [vmem:[%s6741_s5 + $0x208] sm:$0xff]   ;;  %v3480_v35 = vshll.u32 %v3305_v38, 16 }
 0x1dc   : > { %5078 = vmatpush3.bf16.msra.mxu0 %v5521_v47  ;;  %v3420_v47 = vrot.slane %v3418_v25, 4  ;;  %v3364_v48 = vrot.slane %v3363_v39, 4  ;;  %v3462_v25 = vshll.u32 %v6545_v24, 16  ;;  %v3434_v39 = vrot.slane %v3432_v19, 5 }
 0x1dd   : > { %5188 = vmatmul.mubr.bf16.gmra.mrb[8].mxu1 %v5519_v17  ;;  %5079 = vmatprep.subr.bf16.mxu0 %v5524_v55  ;;  %v3378_v17 = vrot.slane %v3376_v29, 5  ;;  %v3388_v28 = vrot.slane %v3387_v8, 4  ;;  %v6561_v29 = vrot.slane %v3438_v44, 5  ;;  %v3458_v2 = vrot.slane %v3456_v54, 5 }
 0x1de   : > { %5204 = vmatpush3.bf16.msra.mxu1 %v5520_v59  ;;  %5191 = vmatprep.mubr.bf16.mxu1 %v5523_v61  ;;  %v6526_v59 = vrot.slane %v3414_v5, 5  ;;  %v3424_v61 = vshll.u32 %v6521_v4, 16  ;;  %v3369_v34 = vsel %vm5909_vm12, %v3364_v48, %v6479_v37  ;;  %v6557_v5 = vld [vmem:[#allocation2 + $0x5c] sm:$0x1]  ;;  %v6566_v15 = vrot.slane %v3462_v25, 5  ;;  %v5534_v48 = vld [vmem:[#allocation2 + $0x30] sm:$0xff]  }
 0x1df   : > { %5205 = vmatprep.subr.bf16.mxu1 %v5522_v33  ;;  %5064 = vmatmul.mubr.bf16.gmra.mrb[32].mxu0 %v4442_v9  ;;  %v3355_v9 = vsel %vm5909_vm12, %v6507_v6, %v6497_v18  ;;  %v3379_v36 = vsel %vm5909_vm12, %v3374_v7, %v3378_v17  ;;  %v3453_v18 = vshrl.u32 %v3302_v40, 16  ;;  %v3393_v0 = vsel %vm5909_vm12, %v3388_v28, %v6513_v13  ;;  %v6576_v7 = vld [vmem:[#allocation2 + $0x68] sm:$0x1]  ;;  %v5537_v17 = vld [vmem:[#allocation2 + $0x3c] sm:$0xff]  }
 0x1e0   : > { %5080 = vmatpush3.bf16.msra.mxu0 %v5524_v55  ;;  %5083 = vmatprep.mubr.bf16.mxu0 %v5529_v20  ;;  %v3429_v55 = vshrl.u32 %v3299_v41, 16  ;;  %v3426_v37 = vrot.slane %v3424_v61, 5  ;;  %v4604_v22 = vcombine.low %v3345_v26, %v3355_v9  ;;  %v4605_v27 = vcombine.low %v3369_v34, %v3379_v36  ;;  %v5536_v28 = vld [vmem:[%s6741_s5 + $0x218] sm:$0xff]   ;;  %v5538_v25 = vld [vmem:[#allocation2 + $0x48] sm:$0xff]  }
 0x1e1   : > { %5081 = vmatprep.subr.bf16.mxu0 %v5527_v23  ;;  %v3403_v41 = vsel %vm5909_vm12, %v3398_v53, %v3402_v31  ;;  %v3445_v9 = vor.u32 %v3444_v16, %v6561_v29  ;;  %v3477_v13 = vshrl.u32 %v3305_v38, 16  ;;  %v3482_v30 = vrot.slane %v3480_v35, 5  ;;  %v5539_v16 = vld [vmem:[%s6741_s5 + $0x220] sm:$0xff]  }
 0x1e2   : > { %5206 = vmatpush3.bf16.msra.mxu1 %v5522_v33  ;;  %v3421_v33 = vor.u32 %v3420_v47, %v6526_v59  ;;  %v3431_v6 = vrot.slane %v3429_v55, 4  ;;  %v6568_v47 = vld [vmem:[#allocation2 + $0x70] sm:$0xf]  ;;  %v4606_v55 = vcombine.low %v3393_v0, %v3403_v41  ;;  %v5540_v41 = vld [vmem:[%s6741_s5 + $0x228] sm:$0xff]   ;;  %v3711_v35 = vld [vmem:[#allocation2 + $0x24] sm:$0xe] }
 0x1e3   : > { %5207 = vmatprep.subr.bf16.mxu1 %v5526_v51  ;;  %v3486_v61 = vshll.u32 %v6568_v47, 16  ;;  %v3490_v40 = vshrl.u32 %v6568_v47, 16  ;;  %v3446_v34 = vrot.slane %v3445_v9, 4  ;;  %v3479_v44 = vrot.slane %v3477_v13, 4  ;;  %v5543_v9 = vld [vmem:[%s6741_s5 + $0x230] sm:$0xff]  }
 0x1e4   : > { %5082 = vmatpush3.bf16.msra.mxu0 %v5527_v23  ;;  %v3412_v23 = vrot.slane %v3411_v60, 4  ;;  %v3422_v20 = vrot.slane %v3421_v33, 4  ;;  %v3435_v26 = vor.u32 %v3434_v39, %v3431_v6  ;;  %v3472_v33 = vshll.u32 %v6576_v7, 16 }
 0x1e5   : > { %5192 = vmatmul.mubr.bf16.gmra.mrb[12].mxu1 %v5525_v45  ;;  %v3455_v45 = vrot.slane %v3453_v18, 4  ;;  %v3492_v36 = vrot.slane %v3490_v40, 4  ;;  %v3483_v6 = vor.u32 %v3482_v30, %v3479_v44  ;;  %v3712_v40 = vld [vmem:[#allocation2 + $0x30] sm:$0xe]  ;;  %v3713_v30 = vld [vmem:[#allocation2 + $0x3c] sm:$0xe] }
 0x1e6   : > { %5208 = vmatpush3.bf16.msra.mxu1 %v5526_v51  ;;  %5211 = vmatprep.mubr.bf16.mxu1 %v4603_v63  ;;  %v3466_v51 = vshrl.u32 %v6545_v24, 16  ;;  %v3448_v63 = vshll.u32 %v6557_v5, 16  ;;  %v3417_v8 = vsel %vm5909_vm12, %v3412_v23, %v6526_v59  ;;  %v3474_v53 = vrot.slane %v3472_v33, 5  ;;  %v5541_v23 = vld [vmem:[#allocation2 + $0x54] sm:$0xff]  }
 0x1e7   : > { %5209 = vmatprep.subr.bf16.mxu1 %v5528_v42  ;;  %5084 = vmatmul.mubr.bf16.vlgmr.msra.gmra.mrb[20].mxu0 %v5530_v32  ;;  %v5535_v32 = vld [vmem:[%s6741_s5 + $0x210] sm:$0xff]   ;;  %v3459_v59 = vor.u32 %v3458_v2, %v3455_v45  ;;  %v3710_v45 = vld [vmem:[#allocation2 + $0x18] sm:$0xe]  ;;  %v3484_v38 = vrot.slane %v3483_v6, 4 }
 0x1e8   : > { %5087 = vmatprep.mubr.bf16.mxu0 %v5533_v14  ;;  %v3468_v52 = vrot.slane %v3466_v51, 4  ;;  %v3436_v14 = vrot.slane %v3435_v26, 4  ;;  %v3450_v31 = vrot.slane %v3448_v63, 5  ;;  %v3751_v26 = vrot.slane %v6432_v56, 5  ;;  %v5544_v33 = vld [vmem:[%s6741_s5 + $0x238] sm:$0xff]  }
 0x1e9   : > { %v3460_v18 = vrot.slane %v3459_v59, 4  ;;  %v4620_v56 = vrot.slane %v3711_v35, 9 }
 0x1ea   : > { %5210 = vmatpush3.bf16.msra.mxu1 %v5528_v42  ;;  %v3427_v42 = vsel %vm5909_vm12, %v3422_v20, %v3426_v37  ;;  %v3469_v60 = vor.u32 %v3468_v52, %v6566_v15  ;;  %v6594_v37 = vld [vmem:[#allocation2 + $0x74] sm:$0x1]  ;;  %v3441_v51 = vsel %vm5909_vm12, %v3436_v14, %v6561_v29  ;;  %v3451_v20 = vsel %vm5909_vm12, %v3446_v34, %v3450_v31 }
 0x1eb   : > { %5227 = vmatprep.subr.bf16.mxu1 %v5531_v21  ;;  %v4607_v19 = vcombine.low %v3417_v8, %v3427_v42  ;;  %v4608_v2 = vcombine.low %v3441_v51, %v3451_v20  ;;  %v5542_v8 = vld [vmem:[#allocation2 + $0x60] sm:$0xff]   ;;  %v3753_v59 = vrot.slane %v3751_v26, 4  ;;  %v3761_v14 = vrot.slane %v6477_v43, 5 }
 0x1ec   : > { %v3470_v54 = vrot.slane %v3469_v60, 4  ;;  %v3754_v60 = vrot.slane %v6456_v46, 5  ;;  %v3765_v46 = vrot.slane %v6472_v12, 5  ;;  %v3772_v43 = vrot.slane %v6493_v10, 5 }
 0x1ed   : > { %5212 = vmatmul.mubr.bf16.vlgmr.msra.gmra.mrb[0].mxu1 %v4604_v22  ;;  %v3496_v22 = vshll.u32 %v6594_v37, 16  ;;  %v3775_v51 = vrot.slane %v6521_v4, 5  ;;  %v3779_v20 = vrot.slane %v6529_v3, 5  ;;  %v3716_v4 = vld [vmem:[#allocation2 + $0x60] sm:$0xe]  ;;  %v3789_v3 = vrot.slane %v6576_v7, 5 }
 0x1ee   : > { %5228 = vmatpush3.bf16.msra.mxu1 %v5531_v21  ;;  %5215 = vmatprep.mubr.bf16.mxu1 %v4605_v27  ;;  %v3488_v21 = vrot.slane %v3486_v61, 5  ;;  %v3475_v29 = vsel %vm5909_vm12, %v3470_v54, %v3474_v53  ;;  %v3744_v27 = vrot.slane %v6423_v57, 5  ;;  %v3758_v61 = vrot.slane %v6452_v49, 5 }
 0x1ef   : > { %5229 = vmatprep.subr.bf16.mxu1 %v5532_v62  ;;  %5088 = vmatmul.mubr.bf16.gmra.mrb[24].mxu0 %v5534_v48  ;;  %v3498_v0 = vrot.slane %v3496_v22, 5  ;;  %v3752_v49 = vsel %vm6164_vm1, %v4620_v56, %v3751_v26  ;;  %v3755_v34 = vsel %vm6164_vm1, %v3753_v59, %v3754_v60  ;;  %v3767_v54 = vrot.slane %v3765_v46, 4 }
 0x1f0   : > { %5091 = vmatprep.mubr.bf16.mxu0 %v5537_v17  ;;  %v3493_v39 = vor.u32 %v3492_v36, %v3488_v21  ;;  %v3746_v63 = vrot.slane %v3744_v27, 4  ;;  %v3747_v17 = vrot.slane %v6428_v58, 5  ;;  %v3489_v57 = vsel %vm5909_vm12, %v3484_v38, %v3488_v21  ;;  %v3714_v21 = vld [vmem:[#allocation2 + $0x48] sm:$0xe] }
 0x1f1   : > { %v4644_v36 = vcombine.low %v3752_v49, %v3755_v34  ;;  %v3768_v53 = vrot.slane %v6511_v11, 5  ;;  %v3774_v12 = vrot.slane %v3772_v43, 4  ;;  %v3786_v22 = vrot.slane %v6545_v24, 5 }
 0x1f2   : > { %5230 = vmatpush3.bf16.msra.mxu1 %v5532_v62  ;;  %v3465_v62 = vsel %vm5909_vm12, %v3460_v18, %v6566_v15  ;;  %v3494_v48 = vrot.slane %v3493_v39, 4  ;;  %v4619_v15 = vrot.slane %v3710_v45, 9  ;;  %v3748_v13 = vsel %vm6164_vm1, %v3746_v63, %v3747_v17  ;;  %v3715_v39 = vld [vmem:[#allocation2 + $0x54] sm:$0xe] }
 0x1f3   : > { %5231 = vmatprep.subr.bf16.mxu1 %v5535_v32  ;;  %v4609_v52 = vcombine.low %v3465_v62, %v3475_v29  ;;  %v4622_v18 = vrot.slane %v3713_v30, 9  ;;  %v3769_v10 = vsel %vm6164_vm1, %v3767_v54, %v3768_v53  ;;  %v3776_v11 = vsel %vm6164_vm1, %v3774_v12, %v3775_v51 }
 0x1f4   : > { %v3499_v42 = vsel %vm5909_vm12, %v3494_v48, %v3498_v0  ;;  %v3745_v58 = vsel %vm6164_vm1, %v4619_v15, %v3744_v27  ;;  %v4624_v29 = vrot.slane %v3715_v39, 9  ;;  %v3781_v27 = vrot.slane %v3779_v20, 4 }
 0x1f5   : > { %5216 = vmatmul.mubr.bf16.gmra.mrb[4].mxu1 %v4606_v55  ;;  %v4610_v1 = vcombine.low %v3489_v57, %v3499_v42  ;;  %v4621_v55 = vrot.slane %v3712_v40, 9  ;;  %v3782_v45 = vrot.slane %v6557_v5, 5  ;;  %v3793_v24 = vrot.slane %v6568_v47, 5 }
 0x1f6   : > { %5232 = vmatpush3.bf16.msra.mxu1 %v5535_v32  ;;  %5219 = vmatprep.mubr.bf16.mxu1 %v4607_v19  ;;  %v4643_v32 = vcombine.low %v3745_v58, %v3748_v13  ;;  %v3760_v19 = vrot.slane %v3758_v61, 4  ;;  %v3780_v38 = vsel %vm6164_vm1, %v4624_v29, %v3779_v20 }
 0x1f7   : > { %5233 = vmatprep.subr.bf16.mxu1 %v5536_v28  ;;  %5092 = vmatmul.mubr.bf16.gmra.mrb[28].mxu0 %v5538_v25  ;;  %v3759_v31 = vsel %vm6164_vm1, %v4621_v55, %v3758_v61  ;;  %v4623_v25 = vrot.slane %v3714_v21, 9  ;;  %v3783_v48 = vsel %vm6164_vm1, %v3781_v27, %v3782_v45  ;;  %v3795_v17 = vrot.slane %v3793_v24, 4 }
 0x1f8   : > { %5095 = vmatprep.mubr.bf16.mxu0 %v5541_v23  ;;  %v3762_v44 = vsel %vm6164_vm1, %v3760_v19, %v3761_v14  ;;  %v3766_v23 = vsel %vm6164_vm1, %v4622_v18, %v3765_v46  ;;  %v4648_v15 = vcombine.low %v3780_v38, %v3783_v48  ;;  %v6688_v14 = vld [vmem:[%s6742_s6] ss:$0 sm:$0xff] }
 0x1f9   : > { %v3773_v6 = vsel %vm6164_vm1, %v4623_v25, %v3772_v43 }
 0x1fa   : > { %5234 = vmatpush3.bf16.msra.mxu1 %v5536_v28  ;;  %v4645_v28 = vcombine.low %v3759_v31, %v3762_v44  ;;  %v4647_v62 = vcombine.low %v3773_v6, %v3776_v11 }
 0x1fb   : > { %5235 = vmatprep.subr.bf16.mxu1 %v5539_v16 }
 0x1fd   : > { %5220 = vmatmul.mubr.bf16.gmra.mrb[8].mxu1 %v4608_v2  ;;  %v4625_v2 = vrot.slane %v3716_v4, 9 }
 0x1fe   : > { %5236 = vmatpush3.bf16.msra.mxu1 %v5539_v16  ;;  %5223 = vmatprep.mubr.bf16.mxu1 %v4609_v52  ;;  %v4646_v16 = vcombine.low %v3766_v23, %v3769_v10  ;;  %v3788_v52 = vrot.slane %v3786_v22, 4 }
 0x1ff   : > { %5237 = vmatprep.subr.bf16.mxu1 %v5540_v41  ;;  %5096 = vmatmul.mubr.bf16.gmra.mrb[32].mxu0 %v5542_v8  ;;  %v3787_v0 = vsel %vm6164_vm1, %v4625_v2, %v3786_v22  ;;  %v3796_v8 = vrot.slane %v6594_v37, 5 }
 0x200   : > { %v3790_v5 = vsel %vm6164_vm1, %v3788_v52, %v3789_v3 }
 0x201   : > { %v4649_v63 = vcombine.low %v3787_v0, %v3790_v5  ;;  %v3797_v47 = vsel %vm6164_vm1, %v3795_v17, %v3796_v8 }
 0x202   : > { %5238 = vmatpush3.bf16.msra.mxu1 %v5540_v41  ;;  %v3717_v41 = vld [vmem:[#allocation2 + $0x6c] sm:$0xe] }
 0x203   : > { %5239 = vmatprep.subr.bf16.mxu1 %v5543_v9  ;;  %v4626_v7 = vrot.slane %v3717_v41, 9 }
 0x205   : > { %5224 = vmatmul.mubr.bf16.gmra.mrb[12].mxu1 %v4610_v1  ;;  %v3794_v57 = vsel %vm6164_vm1, %v4626_v7, %v3793_v24 }
 0x206   : > { %5240 = vmatpush3.bf16.msra.mxu1 %v5543_v9  ;;  %5243 = vmatprep.mubr.bf16.mxu1 %v4643_v32  ;;  %v4650_v42 = vcombine.low %v3794_v57, %v3797_v47 }
 0x207   : > { %5241 = vmatprep.subr.bf16.mxu1 %v5544_v33 }
 0x20a   : > { %5242 = vmatpush3.bf16.msra.mxu1 %v5544_v33 }
 0x20d   : > { %5244 = vmatmul.mubr.bf16.vlgmr.msra.gmra.mrb[0].mxu1 %v4644_v36 }
 0x20e   : > { %5247 = vmatprep.mubr.bf16.mxu1 %v4645_v28 }
 0x215   : > { %5248 = vmatmul.mubr.bf16.gmra.mrb[4].mxu1 %v4646_v16 }
 0x216   : > { %5251 = vmatprep.mubr.bf16.mxu1 %v4647_v62 }
 0x21d   : > { %5252 = vmatmul.mubr.bf16.gmra.mrb[8].mxu1 %v4648_v15 }
 0x21e   : > { %5255 = vmatprep.mubr.bf16.mxu1 %v4649_v63 }
 0x225   : > { %5256 = vmatmul.mubr.bf16.gmra.mrb[12].mxu1 %v4650_v42 }
 0x2ba   : > { %v5085_v26 = vpop.f32.mrb[20].mxu0 }
 0x2bb   : > { %v2238_v9 = vpop.f32.mrb[21].mxu0 }
 0x2bc   : > { %v5086_v58 = vpop.f32.mrb[22].mxu0 }
 0x2bd   : > { %v2241_v13 = vpop.f32.mrb[23].mxu0 }
 0x2c2   : > { %v5089_v35 = vpop.f32.mrb[24].mxu0 }
 0x2c3   : > { %v2254_v61 = vpop.f32.mrb[25].mxu0 }
 0x2c4   : > { %v5090_v40 = vpop.f32.mrb[26].mxu0 }
 0x2c5   : > { %v2257_v1 = vpop.f32.mrb[27].mxu0 }
 0x2ca   : > { %v5093_v32 = vpop.f32.mrb[28].mxu0 }
 0x2cb   : > { %v6671_v37 = vpop.f32.mrb[29].mxu0 }
 0x2cc   : > { %v6673_v56 = vpop.f32.mrb[30].mxu0 }
 0x2cd   : > { %v6675_v59 = vpop.f32.mrb[31].mxu0 }
 0x2d2   : > { %v6677_v60 = vpop.f32.mrb[32].mxu0 }
 0x2d3   : > { %v6679_v50 = vpop.f32.mrb[33].mxu0 }
 0x2d4   : > { %v6681_v33 = vpop.f32.mrb[34].mxu0 }
 0x2d5   : > { %v6683_v55 = vpop.f32.mrb[35].mxu0 }
 0x2e0   : > { %v5245_v19 = vpop.f32.mrb[0].mxu1 }
 0x2e1   : > { %v5259_v49 = vadd.f32 %v5245_v19, %v5085_v26  ;;  %v3929_v34 = vpop.f32.mrb[1].mxu1 }
 0x2e2   : > { %v5260_v46 = vadd.f32 %v3929_v34, %v2238_v9  ;;  %v5246_v31 = vpop.f32.mrb[2].mxu1 }
 0x2e3   : > { %v4017_v44 = vadd.f32 %v5259_v49, %v6688_v14  ;;  %v5261_v30 = vadd.f32 %v5246_v31, %v5086_v58  ;;  %v3932_v43 = vpop.f32.mrb[3].mxu1 }
 0x2e4   : > { %v4015_v21 = vadd.f32 %v5260_v46, %v6688_v14  ;;  %v5262_v36 = vadd.f32 %v3932_v43, %v2241_v13 }
 0x2e5   : > { %v4049_v28 = vmul.f32 0.1, %v4017_v44  ;;  %v4018_v18 = vadd.f32 %v5261_v30, %v6688_v14  ;;  %vm4033_vm2 = vcmp.gt.f32.partialorder %v4017_v44, 0.0 }
 0x2e6   : > { %v4047_v54 = vmul.f32 0.1, %v4015_v21  ;;  %v4016_v53 = vadd.f32 %v5262_v36, %v6688_v14  ;;  %vm4031_vm3 = vcmp.gt.f32.partialorder %v4015_v21, 0.0 }
 0x2e7   : > { %vm4034_vm4 = vcmp.gt.f32.partialorder %v4018_v18, 0.0  ;;  %v4050_v25 = vmul.f32 0.1, %v4018_v18  ;;  %v4065_v23 = vsel %vm4033_vm2, %v4017_v44, %v4049_v28 }
 0x2e8   : > { %vm4032_vm5 = vcmp.gt.f32.partialorder %v4016_v53, 0.0  ;;  %v4048_v12 = vmul.f32 0.1, %v4016_v53  ;;  %v5249_v51 = vpop.f32.mrb[4].mxu1  ;;  %v4063_v11 = vsel %vm4031_vm3, %v4015_v21, %v4047_v54 }
 0x2e9   : > { %v4066_v10 = vsel %vm4034_vm4, %v4018_v18, %v4050_v25  ;;  %v5263_v20 = vadd.f32 %v5249_v51, %v5089_v35  ;;  %v3945_v6 = vpop.f32.mrb[5].mxu1 }
 0x2ea   : > { %v4734_v39 = vpack.c.bf16 %v4066_v10, %v4065_v23  ;;  %v4064_v22 = vsel %vm4032_vm5, %v4016_v53, %v4048_v12  ;;  %v5264_v4 = vadd.f32 %v3945_v6, %v2254_v61  ;;  %v5250_v16 = vpop.f32.mrb[6].mxu1 }
 0x2eb   : > { %v4729_v62 = vpack.c.bf16 %v4064_v22, %v4063_v11  ;;  %v4021_v29 = vadd.f32 %v5263_v20, %v6688_v14  ;;  %v5265_v27 = vadd.f32 %v5250_v16, %v5090_v40  ;;  %v3948_v45 = vpop.f32.mrb[7].mxu1 }
 0x2ec   : > { %4766 = vst [vmem:[%s5692_s20 + $0x8] sm:$0xff] %v4734_v39   ;;  %v4019_v2 = vadd.f32 %v5264_v4, %v6688_v14  ;;  %v5266_v52 = vadd.f32 %v3948_v45, %v2257_v1 }
 0x2ed   : > { %4730 = vst [vmem:[%s5692_s20] sm:$0xff] %v4729_v62   ;;  %v4053_v3 = vmul.f32 0.1, %v4021_v29  ;;  %v4022_v38 = vadd.f32 %v5265_v27, %v6688_v14  ;;  %vm4037_vm6 = vcmp.gt.f32.partialorder %v4021_v29, 0.0 }
 0x2ee   : > { %v4051_v48 = vmul.f32 0.1, %v4019_v2  ;;  %v4020_v24 = vadd.f32 %v5266_v52, %v6688_v14  ;;  %vm4035_vm7 = vcmp.gt.f32.partialorder %v4019_v2, 0.0 }
 0x2ef   : > { %vm4038_vm8 = vcmp.gt.f32.partialorder %v4022_v38, 0.0  ;;  %v4054_v0 = vmul.f32 0.1, %v4022_v38  ;;  %v4069_v15 = vsel %vm4037_vm6, %v4021_v29, %v4053_v3 }
 0x2f0   : > { %vm4036_vm10 = vcmp.gt.f32.partialorder %v4020_v24, 0.0  ;;  %v4052_v5 = vmul.f32 0.1, %v4020_v24  ;;  %v5253_v41 = vpop.f32.mrb[8].mxu1  ;;  %v4067_v8 = vsel %vm4035_vm7, %v4019_v2, %v4051_v48 }
 0x2f1   : > { %v4070_v63 = vsel %vm4038_vm8, %v4022_v38, %v4054_v0  ;;  %v5267_v7 = vadd.f32 %v5253_v41, %v5093_v32  ;;  %v3961_v17 = vpop.f32.mrb[9].mxu1 }
 0x2f2   : > { %v4744_v57 = vpack.c.bf16 %v4070_v63, %v4069_v15  ;;  %v4068_v47 = vsel %vm4036_vm10, %v4020_v24, %v4052_v5  ;;  %v5268_v42 = vadd.f32 %v3961_v17, %v6671_v37  ;;  %v5254_v26 = vpop.f32.mrb[10].mxu1 }
 0x2f3   : > { %v4739_v9 = vpack.c.bf16 %v4068_v47, %v4067_v8  ;;  %v4025_v58 = vadd.f32 %v5267_v7, %v6688_v14  ;;  %v5269_v13 = vadd.f32 %v5254_v26, %v6673_v56  ;;  %v3964_v35 = vpop.f32.mrb[11].mxu1 }
 0x2f4   : > { %4768 = vst [vmem:[%s5692_s20 + $0x18] sm:$0xff] %v4744_v57   ;;  %v4023_v61 = vadd.f32 %v5268_v42, %v6688_v14  ;;  %v5270_v40 = vadd.f32 %v3964_v35, %v6675_v59 }
 0x2f5   : > { %4767 = vst [vmem:[%s5692_s20 + $0x10] sm:$0xff] %v4739_v9   ;;  %v4057_v1 = vmul.f32 0.1, %v4025_v58  ;;  %v4026_v32 = vadd.f32 %v5269_v13, %v6688_v14  ;;  %vm4041_vm13 = vcmp.gt.f32.partialorder %v4025_v58, 0.0 }
 0x2f6   : > { %v4055_v19 = vmul.f32 0.1, %v4023_v61  ;;  %v4024_v37 = vadd.f32 %v5270_v40, %v6688_v14  ;;  %vm4039_vm14 = vcmp.gt.f32.partialorder %v4023_v61, 0.0 }
 0x2f7   : > { %vm4042_vm9 = vcmp.gt.f32.partialorder %v4026_v32, 0.0  ;;  %v4058_v49 = vmul.f32 0.1, %v4026_v32  ;;  %v4073_v46 = vsel %vm4041_vm13, %v4025_v58, %v4057_v1 }
 0x2f8   : > { %vm4040_vm11 = vcmp.gt.f32.partialorder %v4024_v37, 0.0  ;;  %v4056_v56 = vmul.f32 0.1, %v4024_v37  ;;  %v5257_v34 = vpop.f32.mrb[12].mxu1  ;;  %v4071_v30 = vsel %vm4039_vm14, %v4023_v61, %v4055_v19 }
 0x2f9   : > { %v4074_v31 = vsel %vm4042_vm9, %v4026_v32, %v4058_v49  ;;  %v5271_v59 = vadd.f32 %v5257_v34, %v6677_v60  ;;  %v3977_v44 = vpop.f32.mrb[13].mxu1 }
 0x2fa   : > { %v4754_v43 = vpack.c.bf16 %v4074_v31, %v4073_v46  ;;  %v4072_v21 = vsel %vm4040_vm11, %v4024_v37, %v4056_v56  ;;  %v5272_v36 = vadd.f32 %v3977_v44, %v6679_v50  ;;  %v5258_v28 = vpop.f32.mrb[14].mxu1 }
 0x2fb   : > { %v4749_v18 = vpack.c.bf16 %v4072_v21, %v4071_v30  ;;  %v4029_v54 = vadd.f32 %v5271_v59, %v6688_v14  ;;  %v5273_v53 = vadd.f32 %v5258_v28, %v6681_v33  ;;  %v3980_v25 = vpop.f32.mrb[15].mxu1 }
 0x2fc   : > { %4770 = vst [vmem:[%s5692_s20 + $0x28] sm:$0xff] %v4754_v43   ;;  %v4027_v12 = vadd.f32 %v5272_v36, %v6688_v14  ;;  %v5274_v51 = vadd.f32 %v3980_v25, %v6683_v55 }
 0x2fd   : > { %4769 = vst [vmem:[%s5692_s20 + $0x20] sm:$0xff] %v4749_v18   ;;  %v4061_v60 = vmul.f32 0.1, %v4029_v54  ;;  %v4030_v23 = vadd.f32 %v5273_v53, %v6688_v14  ;;  %vm4045_vm12 = vcmp.gt.f32.partialorder %v4029_v54, 0.0 }
 0x2fe   : > { %v4059_v50 = vmul.f32 0.1, %v4027_v12  ;;  %v4028_v10 = vadd.f32 %v5274_v51, %v6688_v14  ;;  %vm4043_vm15 = vcmp.gt.f32.partialorder %v4027_v12, 0.0 }
 0x2ff   : > { %vm4046_vm0 = vcmp.gt.f32.partialorder %v4030_v23, 0.0  ;;  %v4062_v20 = vmul.f32 0.1, %v4030_v23  ;;  %v4077_v6 = vsel %vm4045_vm12, %v4029_v54, %v4061_v60 }
 0x300   : > { %vm4044_vm1 = vcmp.gt.f32.partialorder %v4028_v10, 0.0  ;;  %v4060_v33 = vmul.f32 0.1, %v4028_v10  ;;  %v4075_v39 = vsel %vm4043_vm15, %v4027_v12, %v4059_v50 }
 0x301   : > { %v4078_v11 = vsel %vm4046_vm0, %v4030_v23, %v4062_v20 }
 0x302   : > { %v4764_v22 = vpack.c.bf16 %v4078_v11, %v4077_v6  ;;  %v4076_v55 = vsel %vm4044_vm1, %v4028_v10, %v4060_v33 }
 0x303   : > { %v4759_v4 = vpack.c.bf16 %v4076_v55, %v4075_v39 }
 0x304   : > { %4772 = vst [vmem:[%s5692_s20 + $0x38] sm:$0xff] %v4764_v22  }
 0x305   : > { %4771 = vst [vmem:[%s5692_s20 + $0x30] sm:$0xff] %v4759_v4  }
 0x306 PF: > { %s17_s28 = sadd.s32 1, %s5587_s28   ;;  %s6763_s24 = smov %s5579_s26 }
 0x307   : > { %p14_p12 = scmp.ge.s32.totalorder %s17_s28, 6   ;;  %s6764_s25 = smov %s5583_s27 }
 0x308   : > { %s6765_s26 = smov %s6768_s29  ;;  %s6766_s27 = smov %s6772_s30 }
 0x309   :  { %16 = sbr.rel (!%p14_p12) target bundleno = 3 (0x3), region = 103 }

// kernel: residual_block_forward.3
= control target key start
LH: loop header
LB: loop body
LE: loop exit
PB: predicated region body
PF: predicated region fallthrough
CT: control target
= control target key end

     0   :  { %s5815_s27 = smov 0   ;;  %s5817_s28 = smov 0   ;;  %s6935_s0 = inlined_call_operand.vmem [shape: bf16[2,18,16,128], index: 0, kind: input, shape index: {}, may-alias: {0,1,2}]   ;;  %s6936_s1 = inlined_call_operand.vmem [shape: bf16[2,18,16,128], index: 1, kind: input, shape index: {}, may-alias: {0,1,2}]   ;;  %s6937_s2 = inlined_call_operand.vmem [shape: bf16[2,18,16,128], index: 2, kind: input, shape index: {}, may-alias: {0,1,2}]   ;;  %s6938_s3 = inlined_call_operand.vmem [shape: bf16[128,128], index: 3, kind: input, shape index: {}]   ;;  %s6939_s4 = inlined_call_operand.vmem [shape: f32[1,128], index: 4, kind: input, shape index: {}]   ;;  %s6940_s5 = inlined_call_operand.vmem [shape: bf16[9,128,128], index: 5, kind: input, shape index: {}]   ;;  %s6941_s6 = inlined_call_operand.vmem [shape: f32[1,128], index: 6, kind: input, shape index: {}]   ;;  %s6942_s7 = inlined_call_operand.vmem [shape: bf16[2,16,16,128], index: 7, kind: input, shape index: {}]   ;;  %s6943_s8 = inlined_call_operand.vmem [shape: bf16[2,16,16,128], index: 8, kind: output, shape index: {}]  }
   0x1   :  { %6946 = sst [smem:[#allocation5_spill]] %s6935_s0  ;;  %s5819_s29 = smov 0  }
   0x2   :  { %s5821_s30 = smov 0   ;;  %s5823_s9 = smov 0  }
   0x3 LB: > { %s27_s10 = sadd.s32 1, %s5757_s29  ;;  %s30_s11 = sadd.s32 1, %s5761_s30  ;;  %s5765_s9 = sphi %s5823_s9, %s18_s9   ;;  %s5761_s30 = sphi %s5821_s30, %s6968_s30   ;;  %s5757_s29 = sphi %s5819_s29, %s6967_s29   ;;  %s5753_s28 = sphi %s5817_s28, %s6966_s28   ;;  %s5749_s27 = sphi %s5815_s27, %s6965_s27  }
   0x4   : > { %p28_p0 = scmp.ge.s32.totalorder %s27_s10, 2  ;;  %p4443_p1 = scmp.ge.s32.totalorder %s5765_s9, 1 }
   0x5   : > { %p364_p2 = scmp.lt.s32.totalorder %s5765_s9, 5 }
   0x6   : > { %s6970_s10 = smov (%p28_p0, %s27_s10), 0  ;;  %s6972_s11 = smov (!%p28_p0, %s30_s11), %s5761_s30 }
   0x7   : > { %p365_p3 = pnand %p4443_p1, %p364_p2  ;;  %p32_p4 = scmp.ge.s32.totalorder %s6972_s11, 2 }
   0x9   : > { %s6974_s11 = smov (%p32_p4, %s6972_s11), 0  ;;  %368 = sbr.rel (%p365_p3) target bundleno = 776 (0x308), region = 52 }
  0x10   : > { %v5609_v0 = vld [vmem:[%s6938_s3] sm:$0xff]   ;;  %s4444_s14 = sshll.u32 %s5749_s27, 3  ;;  %v5610_v1 = vld [vmem:[%s6938_s3 + $0x8] sm:$0xff]   ;;  %p452_p5 = scmp.lt.s32.totalorder %s5753_s28, 1  ;;  %v5611_v2 = vld [vmem:[%s6938_s3 + $0x10] sm:$0xff]   ;;  %v5767_v18 = vmov 0  }
  0x11   : > { %5113 = vmatprep.subr.bf16.mxu0 %v5609_v0  ;;  %p454_p6 = scmp.lt.s32.totalorder %s4444_s14, 17  ;;  %p498_p7 = scmp.lt.s32.totalorder %s4444_s14, 15  ;;  %v5612_v3 = vld [vmem:[%s6938_s3 + $0x18] sm:$0xff]   ;;  %v5613_v5 = vld [vmem:[%s6938_s3 + $0x20] sm:$0xff]   ;;  %v5614_v6 = vld [vmem:[%s6938_s3 + $0x28] sm:$0xff]   ;;  %vm1135_vm1 = vcmask 1043456  }
  0x12   : > { %5114 = vmatpush3.bf16.msra.mxu0 %v5609_v0  ;;  %s6976_s28 = smov (!%p452_p5, %s5753_s28), 1  ;;  %s6947_s0 = sld [smem:[#allocation5_spill]]  ;;  %v5615_v7 = vld [vmem:[%s6938_s3 + $0x30] sm:$0xff]   ;;  %v5616_v8 = vld [vmem:[%s6938_s3 + $0x38] sm:$0xff]   ;;  %845 = vst [vmem:[#allocation2 + $0xc] sm:$0xf] %v5767_v18 }
  0x13   : > { %5115 = vmatprep.subr.bf16.mxu0 %v5610_v1  ;;  %s455_s19 = scalar_select %p454_p6, %s4444_s14, 17  ;;  %842 = vst [vmem:[#allocation2] sm:$0xf] %v5767_v18  ;;  %843 = vst [vmem:[#allocation2 + $0x4] sm:$0xf] %v5767_v18  ;;  %vm1142_vm8 = vcmask 1040384  }
  0x14   : > { %s5857_s20 = smul.u32 36, %s6976_s28  ;;  %s4455_s26 = sshll.u32 %s6976_s28, 5  ;;  %844 = vst [vmem:[#allocation2 + $0x8] sm:$0x1] %v5767_v18  ;;  %846 = vst [vmem:[#allocation2 + $0x10] sm:$0xf] %v5767_v18 }
  0x15   : > { %s4445_s21 = sshll.u32 %s455_s19, 1  ;;  %s4826_s16 = sadd.s32 8, %s4444_s14  ;;  %847 = vst [vmem:[#allocation2 + $0x14] sm:$0x1] %v5767_v18  ;;  %848 = vst [vmem:[#allocation2 + $0x18] sm:$0xf] %v5767_v18 }
  0x16   : > { %5116 = vmatpush3.bf16.msra.mxu0 %v5610_v1  ;;  %s458_s22 = sadd.s32 %s5857_s20, %s4445_s21  ;;  %s6978_s14 = smov (!%p498_p7, %s4444_s14), 15  ;;  %849 = vst [vmem:[#allocation2 + $0x1c] sm:$0xf] %v5767_v18  ;;  %850 = vst [vmem:[#allocation2 + $0x20] sm:$0x1] %v5767_v18 }
  0x17   : > { %5117 = vmatprep.subr.bf16.mxu0 %v5611_v2  ;;  %s4446_s25 = sshll.u32 %s458_s22, 2  ;;  %s4454_s19 = sshll.u32 %s6978_s14, 1  ;;  %851 = vst [vmem:[#allocation2 + $0x24] sm:$0xf] %v5767_v18  ;;  %852 = vst [vmem:[#allocation2 + $0x28] sm:$0xf] %v5767_v18 }
  0x18   : > { %s5866_s15 = scalar_lea.vmem %s6947_s0, %s4446_s25  ;;  %p471_p8 = scmp.lt.s32.totalorder %s4826_s16, 17  ;;  %853 = vst [vmem:[#allocation2 + $0x2c] sm:$0x1] %v5767_v18  ;;  %854 = vst [vmem:[#allocation2 + $0x30] sm:$0xf] %v5767_v18 }
  0x19   : > { %v5617_v4 = vld [vmem:[%s5866_s15] sm:$0xff]   ;;  %s502_s28 = sadd.s32 %s4455_s26, %s4454_s19  ;;  %s482_s22 = sadd.s32 1, %s4826_s16  ;;  %v5618_v9 = vld [vmem:[%s5866_s15 + $0x8] sm:$0xff]   ;;  %v5619_v10 = vld [vmem:[%s5866_s15 + $0x10] sm:$0xff]   ;;  %855 = vst [vmem:[#allocation2 + $0x34] sm:$0xf] %v5767_v18 }
  0x1a   : > { %5118 = vmatpush3.bf16.msra.mxu0 %v5611_v2  ;;  %5129 = vmatprep.mubr.bf16.mxu0 %v5617_v4  ;;  %s4456_s21 = sshll.u32 %s502_s28, 2  ;;  %s6980_s16 = smov (!%p471_p8, %s4826_s16), 17  ;;  %v5620_v11 = vld [vmem:[%s5866_s15 + $0x18] sm:$0xff]   ;;  %v5621_v12 = vld [vmem:[%s5866_s15 + $0x20] sm:$0xff]   ;;  %v5622_v13 = vld [vmem:[%s5866_s15 + $0x28] sm:$0xff]  }
  0x1b   : > { %5119 = vmatprep.subr.bf16.mxu0 %v5612_v3  ;;  %s5875_s25 = scalar_lea.vmem %s6942_s7, %s4456_s21  ;;  %s5880_s0 = scalar_lea.vmem %s6943_s8, %s4456_s21  ;;  %v5623_v14 = vld [vmem:[%s5866_s15 + $0x30] sm:$0xff]   ;;  %v5624_v15 = vld [vmem:[%s5866_s15 + $0x38] sm:$0xff]   ;;  %856 = vst [vmem:[#allocation2 + $0x38] sm:$0x1] %v5767_v18  ;;  %857 = vst [vmem:[#allocation2 + $0x3c] sm:$0xf] %v5767_v18 }
  0x1c   : > { %s4448_s14 = sshll.u32 %s6980_s16, 1  ;;  %p485_p9 = scmp.lt.s32.totalorder %s482_s22, 17  ;;  %858 = vst [vmem:[#allocation2 + $0x40] sm:$0xf] %v5767_v18  ;;  %859 = vst [vmem:[#allocation2 + $0x44] sm:$0x1] %v5767_v18 }
  0x1d   : > { %s475_s26 = sadd.s32 %s5857_s20, %s4448_s14  ;;  %860 = vst [vmem:[#allocation2 + $0x48] sm:$0xf] %v5767_v18  ;;  %861 = vst [vmem:[#allocation2 + $0x4c] sm:$0xf] %v5767_v18  ;;  %v5909_v19 = vld [vmem:[%s6939_s4] ss:$0 sm:$0xff] }
  0x1e   : > { %5120 = vmatpush3.bf16.msra.mxu0 %v5612_v3  ;;  %s4449_s21 = sshll.u32 %s475_s26, 2  ;;  %s6982_s22 = smov (!%p485_p9, %s482_s22), 17  ;;  %862 = vst [vmem:[#allocation2 + $0x50] sm:$0x1] %v5767_v18  ;;  %863 = vst [vmem:[#allocation2 + $0x54] sm:$0xf] %v5767_v18 }
  0x1f   : > { %5121 = vmatprep.subr.bf16.mxu0 %v5613_v5  ;;  %s477_s12 = scalar_lea.vmem %s6936_s1, %s4449_s21  ;;  %s4451_s17 = sshll.u32 %s6982_s22, 1  ;;  %864 = vst [vmem:[#allocation2 + $0x58] sm:$0xf] %v5767_v18  ;;  %865 = vst [vmem:[#allocation2 + $0x5c] sm:$0x1] %v5767_v18 }
  0x20   : > { %s489_s18 = sadd.s32 %s5857_s20, %s4451_s17  ;;  %v5625_v16 = vld [vmem:[%s477_s12] sm:$0xff]   ;;  %866 = vst [vmem:[#allocation2 + $0x60] sm:$0xf] %v5767_v18  ;;  %867 = vst [vmem:[#allocation2 + $0x64] sm:$0xf] %v5767_v18  ;;  %p4500_p10 = scmp.ne.s32.totalorder %s5749_s27, 0 }
  0x21   : > { %s4452_s14 = sshll.u32 %s489_s18, 2  ;;  %868 = vst [vmem:[#allocation2 + $0x68] sm:$0x1] %v5767_v18  ;;  %869 = vst [vmem:[#allocation2 + $0x6c] sm:$0xf] %v5767_v18 }
  0x22   : > { %5122 = vmatpush3.bf16.msra.mxu0 %v5613_v5  ;;  %s491_s28 = scalar_lea.vmem %s6937_s2, %s4452_s14  ;;  %870 = vst [vmem:[#allocation2 + $0x70] sm:$0xf] %v5767_v18  ;;  %871 = vst [vmem:[#allocation2 + $0x74] sm:$0x1] %v5767_v18  ;;  %vm1136_vm2 = vsmask.f32 7938 }
  0x23   : > { %5123 = vmatprep.subr.bf16.mxu0 %v5614_v6  ;;  %v5626_v17 = vld [vmem:[%s491_s28] sm:$0xff]   ;;  %vm932_vm5 = vsmask.f32 256  ;;  %vm933_vm7 = vsmask.f32 4368  ;;  %vm5919_vm9 = vmand %vm1135_vm1, %vm1136_vm2 }
  0x24   : > { %v1147_v48 = vld [vmem:[#allocation2 + $0xc] sm:$0xf]  ;;  %v1138_v60 = vld [vmem:[#allocation2] sm:$0xf]  ;;  %vm5925_vm11 = vmor %vm932_vm5, %vm933_vm7 }
  0x25   : > { %vm5931_vm12 = vmand %vm1142_vm8, %vm932_vm5  ;;  %v1151_v3 = vld [vmem:[#allocation2 + $0x14] sm:$0x1] }
  0x26   : > { %5124 = vmatpush3.bf16.msra.mxu0 %v5614_v6 }
  0x27   : > { %5125 = vmatprep.subr.bf16.mxu0 %v5615_v7 }
  0x2a   : > { %5126 = vmatpush3.bf16.msra.mxu0 %v5615_v7 }
  0x2b   : > { %5127 = vmatprep.subr.bf16.mxu0 %v5616_v8 }
  0x2e   : > { %5128 = vmatpush3.bf16.msra.mxu0 %v5616_v8  ;;  %v1144_v8 = vld [vmem:[#allocation2 + $0x8] sm:$0x1] }
  0x31   : > { %5130 = vmatmul.mubr.bf16.vlgmr.msra.gmra.mrb[0].mxu0 %v5618_v9 }
  0x32   : > { %5133 = vmatprep.mubr.bf16.mxu0 %v5619_v10 }
  0x39   : > { %5134 = vmatmul.mubr.bf16.gmra.mrb[4].mxu0 %v5620_v11 }
  0x3a   : > { %5137 = vmatprep.mubr.bf16.mxu0 %v5621_v12 }
  0x41   : > { %5138 = vmatmul.mubr.bf16.gmra.mrb[8].mxu0 %v5622_v13 }
  0x42   : > { %5141 = vmatprep.mubr.bf16.mxu0 %v5623_v14 }
  0x49   : > { %5142 = vmatmul.mubr.bf16.gmra.mrb[12].mxu0 %v5624_v15 }
  0x4a   : > { %5145 = vmatprep.mubr.bf16.mxu0 %v5625_v16 }
  0x51   : > { %5146 = vmatmul.mubr.bf16.gmra.mrb[16].mxu0 %v5626_v17 }
 0x104   : > { %v5131_v20 = vpop.f32.mrb[0].mxu0 }
 0x105   : > { %v712_v21 = vadd.f32 %v5131_v20, %v5909_v19  ;;  %v703_v22 = vpop.f32.mrb[1].mxu0 }
 0x106   : > { %v704_v23 = vadd.f32 %v5909_v19, %v703_v22  ;;  %v5132_v24 = vpop.f32.mrb[2].mxu0 }
 0x107   : > { %vm784_vm0 = vcmp.gt.f32.partialorder %v712_v21, 0.0  ;;  %v804_v25 = vmul.f32 0.1, %v712_v21  ;;  %v715_v26 = vadd.f32 %v5132_v24, %v5909_v19  ;;  %v706_v27 = vpop.f32.mrb[3].mxu0 }
 0x108   : > { %vm782_vm3 = vcmp.gt.f32.partialorder %v704_v23, 0.0  ;;  %v802_v28 = vmul.f32 0.1, %v704_v23  ;;  %v707_v29 = vadd.f32 %v5909_v19, %v706_v27 }
 0x109   : > { %v824_v30 = vsel %vm784_vm0, %v712_v21, %v804_v25  ;;  %vm785_vm4 = vcmp.gt.f32.partialorder %v715_v26, 0.0  ;;  %v805_v31 = vmul.f32 0.1, %v715_v26 }
 0x10a   : > { %v4831_v32 = vpack.c.bf16 %v824_v30, %v824_v30  ;;  %v822_v33 = vsel %vm782_vm3, %v704_v23, %v802_v28  ;;  %vm783_vm6 = vcmp.gt.f32.partialorder %v707_v29, 0.0  ;;  %v803_v34 = vmul.f32 0.1, %v707_v29 }
 0x10b   : > { %v4829_v35 = vpack.c.bf16 %v822_v33, %v822_v33  ;;  %v825_v36 = vsel %vm785_vm4, %v715_v26, %v805_v31 }
 0x10c   : > { %v953_v37 = vshrl.u32 %v4831_v32, 16  ;;  %v956_v38 = vshll.u32 %v4831_v32, 16  ;;  %v4832_v39 = vpack.c.bf16 %v825_v36, %v825_v36  ;;  %v823_v40 = vsel %vm783_vm6, %v707_v29, %v803_v34  ;;  %v5135_v41 = vpop.f32.mrb[4].mxu0  ;;  %v1161_v34 = vld [vmem:[#allocation2 + $0x24] sm:$0xf] }
 0x10d   : > { %v936_v42 = vshrl.u32 %v4829_v35, 16  ;;  %v939_v43 = vshll.u32 %v4829_v35, 16  ;;  %v4830_v44 = vpack.c.bf16 %v823_v40, %v823_v40  ;;  %v728_v45 = vadd.f32 %v5135_v41, %v5909_v19  ;;  %v719_v46 = vpop.f32.mrb[5].mxu0 }
 0x10e   : > { %v955_v47 = vrot.slane %v953_v37, 7  ;;  %v961_v49 = vshrl.u32 %v4832_v39, 16  ;;  %v964_v50 = vshll.u32 %v4832_v39, 16  ;;  %v720_v51 = vadd.f32 %v5909_v19, %v719_v46  ;;  %v5136_v52 = vpop.f32.mrb[6].mxu0 }
 0x10f   : > { %v938_v54 = vrot.slane %v936_v42, 7  ;;  %v944_v55 = vshrl.u32 %v4830_v44, 16  ;;  %v947_v56 = vshll.u32 %v4830_v44, 16  ;;  %vm788_vm10 = vcmp.gt.f32.partialorder %v728_v45, 0.0  ;;  %v722_v57 = vpop.f32.mrb[7].mxu0 }
 0x110   : > { %v958_v58 = vor.u32 %v956_v38, %v955_v47  ;;  %v959_v59 = vrot.slane %v955_v47, 4  ;;  %v963_v62 = vrot.slane %v961_v49, 7  ;;  %v808_v63 = vmul.f32 0.1, %v728_v45  ;;  %v1154_v47 = vld [vmem:[#allocation2 + $0x18] sm:$0xf] }
 0x111   : > { %v941_v0 = vor.u32 %v939_v43, %v938_v54  ;;  %v942_v1 = vrot.slane %v938_v54, 4  ;;  %v946_v4 = vrot.slane %v944_v55, 7  ;;  %vm786_vm13 = vcmp.gt.f32.partialorder %v720_v51, 0.0 }
 0x112   : > { %v1148_v5 = vsel %vm5919_vm9, %v958_v58, %v1147_v48  ;;  %v966_v6 = vor.u32 %v964_v50, %v963_v62  ;;  %v968_v7 = vrot.slane %v963_v62, 4  ;;  %v828_v9 = vsel %vm788_vm10, %v728_v45, %v808_v63 }
 0x113   : > { %1149 = vst [vmem:[#allocation2 + $0xc] sm:$0xf] %v1148_v5  ;;  %v1139_v10 = vsel %vm5919_vm9, %v941_v0, %v1138_v60  ;;  %v949_v11 = vor.u32 %v947_v56, %v946_v4  ;;  %v951_v12 = vrot.slane %v946_v4, 4  ;;  %v4835_v13 = vpack.c.bf16 %v828_v9, %v828_v9 }
 0x114   : > { %1140 = vst [vmem:[#allocation2] sm:$0xf] %v1139_v10  ;;  %v967_v14 = vsel %vm5925_vm11, %v959_v59, %v966_v6  ;;  %v1152_v15 = vsel %vm5931_vm12, %v968_v7, %v1151_v3  ;;  %v806_v16 = vmul.f32 0.1, %v720_v51  ;;  %v731_v17 = vadd.f32 %v5136_v52, %v5909_v19  ;;  %v5139_v18 = vpop.f32.mrb[8].mxu0 }
 0x115   : > { %1150 = vst [vmem:[#allocation2 + $0x10] sm:$0xf] %v967_v14  ;;  %1153 = vst [vmem:[#allocation2 + $0x14] sm:$0x1] %v1152_v15  ;;  %v950_v20 = vsel %vm5925_vm11, %v942_v1, %v949_v11  ;;  %v1145_v21 = vsel %vm5931_vm12, %v951_v12, %v1144_v8  ;;  %v987_v22 = vshrl.u32 %v4835_v13, 16  ;;  %v990_v23 = vshll.u32 %v4835_v13, 16 }
 0x116   : > { %v735_v24 = vpop.f32.mrb[9].mxu0  ;;  %1141 = vst [vmem:[#allocation2 + $0x4] sm:$0xf] %v950_v20  ;;  %1146 = vst [vmem:[#allocation2 + $0x8] sm:$0x1] %v1145_v21  ;;  %v826_v25 = vsel %vm786_vm13, %v720_v51, %v806_v16  ;;  %vm789_vm14 = vcmp.gt.f32.partialorder %v731_v17, 0.0  ;;  %v723_v27 = vadd.f32 %v5909_v19, %v722_v57  ;;  %v744_v31 = vadd.f32 %v5139_v18, %v5909_v19 }
 0x117   : > { %v809_v26 = vmul.f32 0.1, %v731_v17  ;;  %v5140_v28 = vpop.f32.mrb[10].mxu0  ;;  %v989_v29 = vrot.slane %v987_v22, 7  ;;  %v4833_v30 = vpack.c.bf16 %v826_v25, %v826_v25  ;;  %v736_v32 = vadd.f32 %v5909_v19, %v735_v24  ;;  %v1165_v3 = vld [vmem:[#allocation2 + $0x2c] sm:$0x1] }
 0x118   : > { %v5953_v33 = vpop.f32.mrb[11].mxu0  ;;  %vm787_vm15 = vcmp.gt.f32.partialorder %v723_v27, 0.0  ;;  %v807_v36 = vmul.f32 0.1, %v723_v27  ;;  %v747_v37 = vadd.f32 %v5140_v28, %v5909_v19  ;;  %vm792_vm0 = vcmp.gt.f32.partialorder %v744_v31, 0.0 }
 0x119   : > { %v829_v35 = vsel %vm789_vm14, %v731_v17, %v809_v26  ;;  %v992_v38 = vor.u32 %v990_v23, %v989_v29  ;;  %v993_v39 = vrot.slane %v989_v29, 4  ;;  %v970_v40 = vshrl.u32 %v4833_v30, 16  ;;  %v1158_v10 = vld [vmem:[#allocation2 + $0x20] sm:$0x1]  ;;  %v1175_v24 = vld [vmem:[#allocation2 + $0x3c] sm:$0xf] }
 0x11a   : > { %v973_v41 = vshll.u32 %v4833_v30, 16  ;;  %v4836_v42 = vpack.c.bf16 %v829_v35, %v829_v35  ;;  %v827_v43 = vsel %vm787_vm15, %v723_v27, %v807_v36  ;;  %v812_v44 = vmul.f32 0.1, %v744_v31  ;;  %v1168_v28 = vld [vmem:[#allocation2 + $0x30] sm:$0xf] }
 0x11b   : > { %v1162_v45 = vsel %vm5919_vm9, %v992_v38, %v1161_v34  ;;  %v972_v46 = vrot.slane %v970_v40, 7  ;;  %v4834_v48 = vpack.c.bf16 %v827_v43, %v827_v43  ;;  %vm790_vm1 = vcmp.gt.f32.partialorder %v736_v32, 0.0 }
 0x11c   : > { %1163 = vst [vmem:[#allocation2 + $0x24] sm:$0xf] %v1162_v45  ;;  %v995_v49 = vshrl.u32 %v4836_v42, 16  ;;  %v998_v50 = vshll.u32 %v4836_v42, 16  ;;  %v832_v51 = vsel %vm792_vm0, %v744_v31, %v812_v44  ;;  %v810_v52 = vmul.f32 0.1, %v736_v32 }
 0x11d   : > { %v5143_v54 = vpop.f32.mrb[12].mxu0  ;;  %v975_v55 = vor.u32 %v973_v41, %v972_v46  ;;  %v976_v56 = vrot.slane %v972_v46, 4  ;;  %v978_v57 = vshrl.u32 %v4834_v48, 16  ;;  %v981_v58 = vshll.u32 %v4834_v48, 16  ;;  %v1179_v46 = vld [vmem:[#allocation2 + $0x44] sm:$0x1] }
 0x11e   : > { %v751_v59 = vpop.f32.mrb[13].mxu0  ;;  %v997_v60 = vrot.slane %v995_v49, 7  ;;  %v4839_v62 = vpack.c.bf16 %v832_v51, %v832_v51  ;;  %v830_v63 = vsel %vm790_vm1, %v736_v32, %v810_v52  ;;  %vm793_vm2 = vcmp.gt.f32.partialorder %v747_v37, 0.0 }
 0x11f   : > { %v5144_v0 = vpop.f32.mrb[14].mxu0  ;;  %v1155_v1 = vsel %vm5919_vm9, %v975_v55, %v1154_v47  ;;  %v980_v4 = vrot.slane %v978_v57, 7  ;;  %v4837_v5 = vpack.c.bf16 %v830_v63, %v830_v63  ;;  %v813_v6 = vmul.f32 0.1, %v747_v37 }
 0x120   : > { %v754_v7 = vpop.f32.mrb[15].mxu0  ;;  %1156 = vst [vmem:[#allocation2 + $0x18] sm:$0xf] %v1155_v1  ;;  %v1000_v8 = vor.u32 %v998_v50, %v997_v60  ;;  %v1002_v9 = vrot.slane %v997_v60, 4  ;;  %v1021_v11 = vshrl.u32 %v4839_v62, 16  ;;  %v1024_v12 = vshll.u32 %v4839_v62, 16 }
 0x121   : > { %v983_v13 = vor.u32 %v981_v58, %v980_v4  ;;  %v985_v14 = vrot.slane %v980_v4, 4  ;;  %v1004_v15 = vshrl.u32 %v4837_v5, 16  ;;  %v1007_v16 = vshll.u32 %v4837_v5, 16 }
 0x122   : > { %v1001_v17 = vsel %vm5925_vm11, %v993_v39, %v1000_v8  ;;  %v1166_v18 = vsel %vm5931_vm12, %v1002_v9, %v1165_v3  ;;  %v1023_v20 = vrot.slane %v1021_v11, 7  ;;  %v833_v21 = vsel %vm793_vm2, %v747_v37, %v813_v6  ;;  %v1172_v6 = vld [vmem:[#allocation2 + $0x38] sm:$0x1] }
 0x123   : > { %1164 = vst [vmem:[#allocation2 + $0x28] sm:$0xf] %v1001_v17  ;;  %1167 = vst [vmem:[#allocation2 + $0x2c] sm:$0x1] %v1166_v18  ;;  %v984_v22 = vsel %vm5925_vm11, %v976_v56, %v983_v13  ;;  %v1159_v23 = vsel %vm5931_vm12, %v985_v14, %v1158_v10  ;;  %v5969_v25 = vrot.slane %v1004_v15, 7  ;;  %v4840_v26 = vpack.c.bf16 %v833_v21, %v833_v21 }
 0x124   : > { %1157 = vst [vmem:[#allocation2 + $0x1c] sm:$0xf] %v984_v22  ;;  %1160 = vst [vmem:[#allocation2 + $0x20] sm:$0x1] %v1159_v23  ;;  %v1026_v27 = vor.u32 %v1024_v12, %v1023_v20  ;;  %v739_v29 = vadd.f32 %v5909_v19, %v5953_v33  ;;  %v760_v30 = vadd.f32 %v5143_v54, %v5909_v19  ;;  %v5147_v31 = vpop.f32.mrb[16].mxu0  ;;  %v1027_v32 = vrot.slane %v1023_v20, 4 }
 0x125   : > { %v1009_v34 = vor.u32 %v1007_v16, %v5969_v25  ;;  %v1029_v35 = vshrl.u32 %v4840_v26, 16  ;;  %v1032_v36 = vshll.u32 %v4840_v26, 16  ;;  %v5975_v37 = vpop.f32.mrb[17].mxu0  ;;  %v752_v43 = vadd.f32 %v5909_v19, %v751_v59  ;;  %v1189_v13 = vld [vmem:[#allocation2 + $0x54] sm:$0xf] }
 0x126   : > { %v1176_v38 = vsel %vm5919_vm9, %v1026_v27, %v1175_v24  ;;  %vm791_vm3 = vcmp.gt.f32.partialorder %v739_v29, 0.0  ;;  %v811_v39 = vmul.f32 0.1, %v739_v29  ;;  %vm796_vm4 = vcmp.gt.f32.partialorder %v760_v30, 0.0  ;;  %v5979_v40 = vpop.f32.mrb[18].mxu0 }
 0x127   : > { %1177 = vst [vmem:[#allocation2 + $0x3c] sm:$0xf] %v1176_v38  ;;  %v1169_v33 = vsel %vm5919_vm9, %v1009_v34, %v1168_v28  ;;  %v1031_v41 = vrot.slane %v1029_v35, 7  ;;  %v816_v42 = vmul.f32 0.1, %v760_v30  ;;  %v5984_v44 = vpop.f32.mrb[19].mxu0  ;;  %v763_v48 = vadd.f32 %v5144_v0, %v5909_v19 }
 0x128   : > { %v1010_v45 = vrot.slane %v5969_v25, 4  ;;  %1170 = vst [vmem:[#allocation2 + $0x30] sm:$0xf] %v1169_v33  ;;  %v831_v47 = vsel %vm791_vm3, %v739_v29, %v811_v39  ;;  %v755_v49 = vadd.f32 %v5909_v19, %v754_v7  ;;  %vm794_vm5 = vcmp.gt.f32.partialorder %v752_v43, 0.0  ;;  %v1182_v26 = vld [vmem:[#allocation2 + $0x48] sm:$0xf] }
 0x129   : > { %v1034_v50 = vor.u32 %v1032_v36, %v1031_v41  ;;  %v1036_v51 = vrot.slane %v1031_v41, 4  ;;  %v4838_v52 = vpack.c.bf16 %v831_v47, %v831_v47  ;;  %v836_v54 = vsel %vm796_vm4, %v760_v30, %v816_v42  ;;  %v1193_v33 = vld [vmem:[#allocation2 + $0x5c] sm:$0x1]  ;;  %v1186_v47 = vld [vmem:[#allocation2 + $0x50] sm:$0x1] }
 0x12a   : > { %v4843_v55 = vpack.c.bf16 %v836_v54, %v836_v54  ;;  %v814_v56 = vmul.f32 0.1, %v752_v43  ;;  %v776_v57 = vadd.f32 %v5147_v31, %v5909_v19  ;;  %vm797_vm6 = vcmp.gt.f32.partialorder %v763_v48, 0.0 }
 0x12b   : > { %v1035_v58 = vsel %vm5925_vm11, %v1027_v32, %v1034_v50  ;;  %v1180_v59 = vsel %vm5931_vm12, %v1036_v51, %v1179_v46  ;;  %v1012_v60 = vshrl.u32 %v4838_v52, 16  ;;  %v1015_v62 = vshll.u32 %v4838_v52, 16 }
 0x12c   : > { %1178 = vst [vmem:[#allocation2 + $0x40] sm:$0xf] %v1035_v58  ;;  %1181 = vst [vmem:[#allocation2 + $0x44] sm:$0x1] %v1180_v59  ;;  %v1055_v63 = vshrl.u32 %v4843_v55, 16  ;;  %v834_v0 = vsel %vm794_vm5, %v752_v43, %v814_v56  ;;  %vm795_vm7 = vcmp.gt.f32.partialorder %v755_v49, 0.0  ;;  %v768_v36 = vadd.f32 %v5909_v19, %v5975_v37 }
 0x12d   : > { %v817_v1 = vmul.f32 0.1, %v763_v48  ;;  %v1014_v3 = vrot.slane %v1012_v60, 7  ;;  %v4841_v4 = vpack.c.bf16 %v834_v0, %v834_v0  ;;  %v815_v5 = vmul.f32 0.1, %v755_v49 }
 0x12e   : > { %v1057_v7 = vrot.slane %v1055_v63, 7  ;;  %v1058_v8 = vshll.u32 %v4843_v55, 16  ;;  %v820_v10 = vmul.f32 0.1, %v776_v57  ;;  %vm800_vm8 = vcmp.gt.f32.partialorder %v776_v57, 0.0 }
 0x12f   : > { %v837_v9 = vsel %vm797_vm6, %v763_v48, %v817_v1  ;;  %v1017_v11 = vor.u32 %v1015_v62, %v1014_v3  ;;  %v1019_v12 = vrot.slane %v1014_v3, 4  ;;  %v1038_v14 = vshrl.u32 %v4841_v4, 16  ;;  %v1203_v55 = vld [vmem:[#allocation2 + $0x6c] sm:$0xf] }
 0x130   : > { %v1060_v15 = vor.u32 %v1058_v8, %v1057_v7  ;;  %v1041_v16 = vshll.u32 %v4841_v4, 16  ;;  %v4844_v17 = vpack.c.bf16 %v837_v9, %v837_v9  ;;  %v835_v18 = vsel %vm795_vm7, %v755_v49, %v815_v5  ;;  %v1196_v8 = vld [vmem:[#allocation2 + $0x60] sm:$0xf] }
 0x131   : > { %v1018_v20 = vsel %vm5925_vm11, %v1010_v45, %v1017_v11  ;;  %v1173_v21 = vsel %vm5931_vm12, %v1019_v12, %v1172_v6  ;;  %v1040_v22 = vrot.slane %v1038_v14, 7  ;;  %v4842_v23 = vpack.c.bf16 %v835_v18, %v835_v18  ;;  %v1207_v14 = vld [vmem:[#allocation2 + $0x74] sm:$0x1] }
 0x132   : > { %1171 = vst [vmem:[#allocation2 + $0x34] sm:$0xf] %v1018_v20  ;;  %1174 = vst [vmem:[#allocation2 + $0x38] sm:$0x1] %v1173_v21  ;;  %v1061_v24 = vrot.slane %v1057_v7, 4  ;;  %v1190_v25 = vsel %vm5919_vm9, %v1060_v15, %v1189_v13  ;;  %v1063_v27 = vshrl.u32 %v4844_v17, 16  ;;  %v840_v28 = vsel %vm800_vm8, %v776_v57, %v820_v10 }
 0x133   : > { %1191 = vst [vmem:[#allocation2 + $0x54] sm:$0xf] %v1190_v25  ;;  %v1043_v29 = vor.u32 %v1041_v16, %v1040_v22  ;;  %v1044_v30 = vrot.slane %v1040_v22, 4  ;;  %v1066_v31 = vshll.u32 %v4844_v17, 16  ;;  %v1046_v32 = vshrl.u32 %v4842_v23, 16 }
 0x134   : > { %v1065_v34 = vrot.slane %v1063_v27, 7  ;;  %v4847_v35 = vpack.c.bf16 %v840_v28, %v840_v28  ;;  %v779_v38 = vadd.f32 %v5979_v40, %v5909_v19  ;;  %v1049_v42 = vshll.u32 %v4842_v23, 16  ;;  %v1200_v22 = vld [vmem:[#allocation2 + $0x68] sm:$0x1] }
 0x135   : > { %v1183_v39 = vsel %vm5919_vm9, %v1043_v29, %v1182_v26  ;;  %v1048_v41 = vrot.slane %v1046_v32, 7  ;;  %v771_v43 = vadd.f32 %v5909_v19, %v5984_v44  ;;  %vm798_vm10 = vcmp.gt.f32.partialorder %v768_v36, 0.0 }
 0x136   : > { %1184 = vst [vmem:[#allocation2 + $0x48] sm:$0xf] %v1183_v39  ;;  %v1068_v45 = vor.u32 %v1066_v31, %v1065_v34  ;;  %v1070_v46 = vrot.slane %v1065_v34, 4  ;;  %v1089_v48 = vshrl.u32 %v4847_v35, 16  ;;  %v1092_v49 = vshll.u32 %v4847_v35, 16 }
 0x137   : > { %v1051_v50 = vor.u32 %v1049_v42, %v1048_v41  ;;  %v1053_v37 = vrot.slane %v1048_v41, 4  ;;  %v818_v51 = vmul.f32 0.1, %v768_v36  ;;  %vm801_vm13 = vcmp.gt.f32.partialorder %v779_v38, 0.0 }
 0x138   : > { %v1069_v40 = vsel %vm5925_vm11, %v1061_v24, %v1068_v45  ;;  %v1194_v52 = vsel %vm5931_vm12, %v1070_v46, %v1193_v33  ;;  %v1091_v54 = vrot.slane %v1089_v48, 7  ;;  %v821_v57 = vmul.f32 0.1, %v779_v38 }
 0x139   : > { %1192 = vst [vmem:[#allocation2 + $0x58] sm:$0xf] %v1069_v40  ;;  %1195 = vst [vmem:[#allocation2 + $0x5c] sm:$0x1] %v1194_v52  ;;  %v1052_v19 = vsel %vm5925_vm11, %v1044_v30, %v1051_v50  ;;  %v1187_v44 = vsel %vm5931_vm12, %v1053_v37, %v1186_v47  ;;  %v838_v56 = vsel %vm798_vm10, %v768_v36, %v818_v51  ;;  %vm799_vm14 = vcmp.gt.f32.partialorder %v771_v43, 0.0 }
 0x13a   : > { %1185 = vst [vmem:[#allocation2 + $0x4c] sm:$0xf] %v1052_v19  ;;  %1188 = vst [vmem:[#allocation2 + $0x50] sm:$0x1] %v1187_v44  ;;  %v1094_v58 = vor.u32 %v1092_v49, %v1091_v54  ;;  %v4845_v59 = vpack.c.bf16 %v838_v56, %v838_v56  ;;  %v841_v60 = vsel %vm801_vm13, %v779_v38, %v821_v57  ;;  %v819_v62 = vmul.f32 0.1, %v771_v43 }
 0x13b   : > { %v4848_v1 = vpack.c.bf16 %v841_v60, %v841_v60  ;;  %v1095_v13 = vrot.slane %v1091_v54, 4  ;;  %v5768_v28 = vmov (!%p4500_p10), 0  }
 0x13c   : > { %v1204_v63 = vsel %vm5919_vm9, %v1094_v58, %v1203_v55  ;;  %v1072_v0 = vshrl.u32 %v4845_v59, 16  ;;  %v839_v3 = vsel %vm799_vm14, %v771_v43, %v819_v62  ;;  %v1075_v5 = vshll.u32 %v4845_v59, 16  ;;  %1214 = vst [vmem:[#allocation2] sm:$0xf] (!%p4500_p10), %v5768_v28  ;;  %1215 = vst [vmem:[#allocation2 + $0x4] sm:$0xf] (!%p4500_p10), %v5768_v28 }
 0x13d   : > { %1205 = vst [vmem:[#allocation2 + $0x6c] sm:$0xf] %v1204_v63  ;;  %v1097_v6 = vshrl.u32 %v4848_v1, 16  ;;  %v4846_v7 = vpack.c.bf16 %v839_v3, %v839_v3  ;;  %v1100_v11 = vshll.u32 %v4848_v1, 16  ;;  %1216 = vst [vmem:[#allocation2 + $0x8] sm:$0x1] (!%p4500_p10), %v5768_v28 }
 0x13e   : > { %v1074_v4 = vrot.slane %v1072_v0, 7 }
 0x13f   : > { %v1099_v10 = vrot.slane %v1097_v6, 7  ;;  %v1080_v12 = vshrl.u32 %v4846_v7, 16  ;;  %v1083_v15 = vshll.u32 %v4846_v7, 16 }
 0x140   : > { %v1077_v9 = vor.u32 %v1075_v5, %v1074_v4  ;;  %v1078_v21 = vrot.slane %v1074_v4, 4  ;;  %1213 = sbr.rel (%p4500_p10) target bundleno = 327 (0x147), region = 56 }
 0x141   : > { %v1102_v17 = vor.u32 %v1100_v11, %v1099_v10  ;;  %v1104_v18 = vrot.slane %v1099_v10, 4  ;;  %v1082_v20 = vrot.slane %v1080_v12, 7 }
 0x142   : > { %v1197_v16 = vsel %vm5919_vm9, %v1077_v9, %v1196_v8 }
 0x143   : > { %1198 = vst [vmem:[#allocation2 + $0x60] sm:$0xf] %v1197_v16  ;;  %v1103_v23 = vsel %vm5925_vm11, %v1095_v13, %v1102_v17  ;;  %v1208_v24 = vsel %vm5931_vm12, %v1104_v18, %v1207_v14  ;;  %v1085_v25 = vor.u32 %v1083_v15, %v1082_v20  ;;  %v1087_v26 = vrot.slane %v1082_v20, 4 }
 0x144   : > { %1206 = vst [vmem:[#allocation2 + $0x70] sm:$0xf] %v1103_v23  ;;  %1209 = vst [vmem:[#allocation2 + $0x74] sm:$0x1] %v1208_v24 }
 0x145   : > { %v1086_v53 = vsel %vm5925_vm11, %v1078_v21, %v1085_v25  ;;  %v1201_v27 = vsel %vm5931_vm12, %v1087_v26, %v1200_v22 }
 0x146   : > { %1199 = vst [vmem:[#allocation2 + $0x64] sm:$0xf] %v1086_v53  ;;  %1202 = vst [vmem:[#allocation2 + $0x68] sm:$0x1] %v1201_v27 }
 0x147 PF: > { %p4501_p11 = scmp.ne.s32.totalorder %s5749_s27, 1 }
 0x148   : > { %v5769_v29 = vmov (!%p4501_p11), 0  }
 0x149   : > { %1220 = sbr.rel (%p4501_p11) target bundleno = 336 (0x150), region = 60  ;;  %1222 = vst [vmem:[#allocation2 + $0x6c] sm:$0xf] (!%p4501_p11), %v5769_v29  ;;  %1223 = vst [vmem:[#allocation2 + $0x70] sm:$0xf] (!%p4501_p11), %v5769_v29 }
 0x14a   : > { %1224 = vst [vmem:[#allocation2 + $0x74] sm:$0x1] (!%p4501_p11), %v5769_v29 }
 0x150 PF: > { %v5627_v61 = vld [vmem:[%s6940_s5 + $0x40] sm:$0xff]   ;;  %v5629_v30 = vld [vmem:[%s6940_s5 + $0x48] sm:$0xff]   ;;  %v5631_v32 = vld [vmem:[%s6940_s5 + $0x50] sm:$0xff]   ;;  %vm1265_vm9 = vsmask.f32 3328  ;;  %vm1871_vm15 = vcmask 1042432  }
 0x151   : > { %v5628_v2 = vld [vmem:[%s6940_s5 + $0x100] sm:$0xff]   ;;  %5149 = vmatprep.subr.bf16.mxu0 %v5627_v61  ;;  %v5630_v31 = vld [vmem:[%s6940_s5 + $0x108] sm:$0xff]   ;;  %v5632_v34 = vld [vmem:[%s6940_s5 + $0x110] sm:$0xff]   ;;  %vm1266_vm11 = vsmask.f32 7440  ;;  %vm1872_vm0 = vcmask 1046532  }
 0x152   : > { %5277 = vmatprep.subr.bf16.mxu1 %v5628_v2  ;;  %5150 = vmatpush3.bf16.msra.mxu0 %v5627_v61  ;;  %v5633_v35 = vld [vmem:[%s6940_s5 + $0x58] sm:$0xff]   ;;  %v5635_v38 = vld [vmem:[%s6940_s5 + $0x60] sm:$0xff]   ;;  %v5637_v33 = vld [vmem:[%s6940_s5 + $0x68] sm:$0xff]  }
 0x153   : > { %5278 = vmatpush3.bf16.msra.mxu1 %v5628_v2  ;;  %5151 = vmatprep.subr.bf16.mxu0 %v5629_v30  ;;  %v5634_v36 = vld [vmem:[%s6940_s5 + $0x118] sm:$0xff]   ;;  %v5636_v39 = vld [vmem:[%s6940_s5 + $0x120] sm:$0xff]   ;;  %v5638_v41 = vld [vmem:[%s6940_s5 + $0x128] sm:$0xff]  }
 0x154   : > { %5279 = vmatprep.subr.bf16.mxu1 %v5630_v31  ;;  %v6067_v42 = vld [vmem:[#allocation2] sm:$0xf]  ;;  %v6069_v43 = vld [vmem:[#allocation2 + $0x4] sm:$0xf]  ;;  %v6071_v45 = vld [vmem:[#allocation2 + $0x8] sm:$0x1] }
 0x155   : > { %v1269_v46 = vshrl.u32 %v6067_v42, 16  ;;  %v1272_v47 = vshll.u32 %v6067_v42, 16  ;;  %v1278_v48 = vshll.u32 %v6069_v43, 16  ;;  %v1282_v49 = vshrl.u32 %v6069_v43, 16  ;;  %v2383_v37 = vld [vmem:[#allocation2 + $0xc] sm:$0xf]  ;;  %vm6097_vm12 = vmor %vm1265_vm9, %vm1266_vm11 }
 0x156   : > { %5152 = vmatpush3.bf16.msra.mxu0 %v5629_v30  ;;  %v1288_v50 = vshll.u32 %v6071_v45, 16  ;;  %v6078_v52 = vld [vmem:[#allocation2 + $0x10] sm:$0xf]  ;;  %v6080_v54 = vld [vmem:[#allocation2 + $0x14] sm:$0x1]  ;;  %v2408_v56 = vshrl.u32 %v2383_v37, 16  ;;  %vm6352_vm1 = vmor %vm1871_vm15, %vm1872_vm0 }
 0x157   : > { %5280 = vmatpush3.bf16.msra.mxu1 %v5630_v31  ;;  %5153 = vmatprep.subr.bf16.mxu0 %v5631_v32  ;;  %v1271_v51 = vrot.slane %v1269_v46, 4  ;;  %v1274_v40 = vrot.slane %v1272_v47, 5  ;;  %v5639_v19 = vld [vmem:[%s6940_s5 + $0x70] sm:$0xff]   ;;  %v1280_v44 = vrot.slane %v1278_v48, 5  ;;  %v1284_v55 = vrot.slane %v1282_v49, 4  ;;  %v5641_v0 = vld [vmem:[%s6940_s5 + $0x78] sm:$0xff]  }
 0x158   : > { %5281 = vmatprep.subr.bf16.mxu1 %v5632_v34  ;;  %v5640_v57 = vld [vmem:[%s6940_s5 + $0x130] sm:$0xff]   ;;  %v2411_v59 = vshll.u32 %v2383_v37, 16  ;;  %v2417_v60 = vshll.u32 %v6078_v52, 16  ;;  %v2421_v62 = vshrl.u32 %v6078_v52, 16  ;;  %v6090_v63 = vld [vmem:[#allocation2 + $0xc] sm:$0xf] }
 0x159   : > { %v1275_v58 = vor.u32 %v1274_v40, %v1271_v51  ;;  %v1285_v3 = vor.u32 %v1284_v55, %v1280_v44  ;;  %v1290_v4 = vrot.slane %v1288_v50, 5  ;;  %v2410_v5 = vrot.slane %v2408_v56, 4  ;;  %v6102_v7 = vld [vmem:[#allocation2 + $0x10] sm:$0xf]  ;;  %v5642_v16 = vld [vmem:[%s6940_s5 + $0x138] sm:$0xff]   ;;  %v5643_v30 = vld [vmem:[%s6940_s5] sm:$0xff]  }
 0x15a   : > { %5154 = vmatpush3.bf16.msra.mxu0 %v5631_v32  ;;  %v2427_v6 = vshll.u32 %v6080_v54, 16  ;;  %v2413_v9 = vrot.slane %v2411_v59, 5  ;;  %v2419_v10 = vrot.slane %v2417_v60, 5  ;;  %v2423_v11 = vrot.slane %v2421_v62, 4  ;;  %v6111_v21 = vld [vmem:[#allocation2 + $0x14] sm:$0x1] }
 0x15b   : > { %5282 = vmatpush3.bf16.msra.mxu1 %v5632_v34  ;;  %5155 = vmatprep.subr.bf16.mxu0 %v5633_v35  ;;  %v1276_v8 = vrot.slane %v1275_v58, 4  ;;  %v1286_v12 = vrot.slane %v1285_v3, 4  ;;  %v1293_v14 = vshrl.u32 %v6090_v63, 16  ;;  %v1296_v15 = vshll.u32 %v6090_v63, 16  ;;  %v2386_v23 = vld [vmem:[#allocation2 + $0x18] sm:$0xf] }
 0x15c   : > { %5283 = vmatprep.subr.bf16.mxu1 %v5634_v36  ;;  %v2429_v13 = vrot.slane %v2427_v6, 5  ;;  %v2414_v18 = vor.u32 %v2413_v9, %v2410_v5  ;;  %v2424_v20 = vor.u32 %v2423_v11, %v2419_v10  ;;  %v1302_v22 = vshll.u32 %v6102_v7, 16  ;;  %v6117_v27 = vld [vmem:[#allocation2 + $0x1c] sm:$0xf]  ;;  %v6125_v31 = vld [vmem:[%s6940_s5 + $0x140] sm:$0xff]  }
 0x15d   : > { %v1281_v17 = vsel %vm6097_vm12, %v1276_v8, %v1280_v44  ;;  %v1291_v24 = vsel %vm6097_vm12, %v1286_v12, %v1290_v4  ;;  %v1295_v25 = vrot.slane %v1293_v14, 4  ;;  %v1298_v26 = vrot.slane %v1296_v15, 5  ;;  %v6143_v62 = vld [vmem:[#allocation2 + $0x1c] sm:$0xf]  ;;  %v2389_v8 = vld [vmem:[#allocation2 + $0x24] sm:$0xf] }
 0x15e   : > { %5156 = vmatpush3.bf16.msra.mxu0 %v5633_v35  ;;  %v1306_v53 = vshrl.u32 %v6102_v7, 16  ;;  %v4518_v28 = vcombine.low %v1281_v17, %v1291_v24  ;;  %v2415_v29 = vrot.slane %v2414_v18, 4  ;;  %v2425_v61 = vrot.slane %v2424_v20, 4  ;;  %v5645_v12 = vld [vmem:[%s6940_s5 + $0x8] sm:$0xff]  }
 0x15f   : > { %5284 = vmatpush3.bf16.msra.mxu1 %v5634_v36  ;;  %5157 = vmatprep.subr.bf16.mxu0 %v5635_v38  ;;  %v1304_v2 = vrot.slane %v1302_v22, 5  ;;  %v1299_v32 = vor.u32 %v1298_v26, %v1295_v25  ;;  %v1312_v35 = vshll.u32 %v6111_v21, 16  ;;  %v6128_v36 = vld [vmem:[#allocation2 + $0x20] sm:$0x1]  ;;  %v2441_v51 = vshll.u32 %v6117_v27, 16  ;;  %v5647_v26 = vld [vmem:[%s6940_s5 + $0x10] sm:$0xff]  }
 0x160   : > { %5285 = vmatprep.subr.bf16.mxu1 %v5636_v39  ;;  %v1308_v34 = vrot.slane %v1306_v53, 4  ;;  %5165 = vmatprep.mubr.bf16.mxu0 %v4518_v28  ;;  %v2445_v40 = vshrl.u32 %v6117_v27, 16  ;;  %v1326_v15 = vshll.u32 %v6143_v62, 16  ;;  %v6155_v18 = vld [vmem:[#allocation2 + $0x28] sm:$0xf]  ;;  %v2456_v25 = vshrl.u32 %v2389_v8, 16 }
 0x161   : > { %v1300_v47 = vrot.slane %v1299_v32, 4  ;;  %v1314_v49 = vrot.slane %v1312_v35, 5  ;;  %v2443_v59 = vrot.slane %v2441_v51, 5  ;;  %v6159_v24 = vld [vmem:[#allocation2 + $0x2c] sm:$0x1] }
 0x162   : > { %5158 = vmatpush3.bf16.msra.mxu0 %v5635_v38  ;;  %v2420_v38 = vsel %vm6097_vm12, %v2415_v29, %v2419_v10  ;;  %v1309_v48 = vor.u32 %v1308_v34, %v1304_v2  ;;  %v2447_v60 = vrot.slane %v2445_v40, 4  ;;  %v5646_v53 = vld [vmem:[%s6940_s5 + $0x148] sm:$0xff]   ;;  %v1328_v28 = vrot.slane %v1326_v15, 5  ;;  %v6167_v32 = vld [vmem:[#allocation2 + $0x24] sm:$0xf] }
 0x163   : > { %5286 = vmatpush3.bf16.msra.mxu1 %v5636_v39  ;;  %5159 = vmatprep.subr.bf16.mxu0 %v5637_v33  ;;  %v2430_v39 = vsel %vm6097_vm12, %v2425_v61, %v2429_v13  ;;  %v1305_v55 = vsel %vm6097_vm12, %v1300_v47, %v1304_v2  ;;  %v2459_v2 = vshll.u32 %v2389_v8, 16  ;;  %v6173_v47 = vld [vmem:[#allocation2 + $0x28] sm:$0xf]  ;;  %v1341_v51 = vshrl.u32 %v6167_v32, 16  ;;  %v2392_v40 = vld [vmem:[#allocation2 + $0x30] sm:$0xf] }
 0x164   : > { %5287 = vmatprep.subr.bf16.mxu1 %v5638_v41  ;;  %v4638_v46 = vcombine.low %v2420_v38, %v2430_v39  ;;  %v1310_v56 = vrot.slane %v1309_v48, 4  ;;  %v2448_v11 = vor.u32 %v2447_v60, %v2443_v59  ;;  %v2458_v38 = vrot.slane %v2456_v25, 4  ;;  %v6175_v48 = vld [vmem:[#allocation2 + $0x2c] sm:$0x1]  ;;  %v5648_v60 = vld [vmem:[%s6940_s5 + $0x150] sm:$0xff]   ;;  %v5649_v8 = vld [vmem:[%s6940_s5 + $0x18] sm:$0xff]  }
 0x165   : > { %v2465_v39 = vshll.u32 %v6155_v18, 16  ;;  %v1360_v15 = vshll.u32 %v6175_v48, 16  ;;  %v5650_v25 = vld [vmem:[%s6940_s5 + $0x158] sm:$0xff]  }
 0x166   : > { %5160 = vmatpush3.bf16.msra.mxu0 %v5637_v33  ;;  %v2432_v33 = vshrl.u32 %v2386_v23, 16  ;;  %5293 = vmatprep.mubr.bf16.mxu1 %v4638_v46  ;;  %v1315_v3 = vsel %vm6097_vm12, %v1310_v56, %v1314_v49  ;;  %v2449_v22 = vrot.slane %v2448_v11, 4  ;;  %v2469_v46 = vshrl.u32 %v6155_v18, 16 }
 0x167   : > { %5288 = vmatpush3.bf16.msra.mxu1 %v5638_v41  ;;  %5161 = vmatprep.subr.bf16.mxu0 %v5639_v19  ;;  %v2435_v41 = vshll.u32 %v2386_v23, 16  ;;  %v4519_v9 = vcombine.low %v1305_v55, %v1315_v3 }
 0x168   : > { %5289 = vmatprep.subr.bf16.mxu1 %v5640_v57  ;;  %v2434_v50 = vrot.slane %v2432_v33, 4 }
 0x169   : > { %v2437_v37 = vrot.slane %v2435_v41, 5  ;;  %v2461_v41 = vrot.slane %v2459_v2, 5 }
 0x16a   : > { %5162 = vmatpush3.bf16.msra.mxu0 %v5639_v19  ;;  %v6136_v19 = vld [vmem:[#allocation2 + $0x18] sm:$0xf] }
 0x16b   : > { %5290 = vmatpush3.bf16.msra.mxu1 %v5640_v57  ;;  %5163 = vmatprep.subr.bf16.mxu0 %v5641_v0  ;;  %v2451_v57 = vshll.u32 %v6128_v36, 16  ;;  %v2438_v58 = vor.u32 %v2437_v37, %v2434_v50  ;;  %v1317_v6 = vshrl.u32 %v6136_v19, 16  ;;  %v1320_v13 = vshll.u32 %v6136_v19, 16 }
 0x16c   : > { %5291 = vmatprep.subr.bf16.mxu1 %v5642_v16  ;;  %v2467_v50 = vrot.slane %v2465_v39, 5  ;;  %v2475_v37 = vshll.u32 %v6159_v24, 16  ;;  %v2462_v56 = vor.u32 %v2461_v41, %v2458_v38 }
 0x16d   : > { %v2453_v4 = vrot.slane %v2451_v57, 5  ;;  %v2439_v10 = vrot.slane %v2438_v58, 4  ;;  %v1319_v14 = vrot.slane %v1317_v6, 4  ;;  %v1322_v23 = vrot.slane %v1320_v13, 5 }
 0x16e   : > { %5164 = vmatpush3.bf16.msra.mxu0 %v5641_v0  ;;  %v1259_v0 = vld [vmem:[#allocation2 + $0x20] sm:$0x1]  ;;  %v2471_v57 = vrot.slane %v2469_v46, 4  ;;  %v1344_v58 = vshll.u32 %v6167_v32, 16  ;;  %v2477_v3 = vrot.slane %v2475_v37, 5  ;;  %v1350_v6 = vshll.u32 %v6173_v47, 16 }
 0x16f   : > { %5292 = vmatpush3.bf16.msra.mxu1 %v5642_v16  ;;  %5181 = vmatprep.subr.bf16.mxu0 %v5643_v30  ;;  %v1330_v16 = vshrl.u32 %v6143_v62, 16  ;;  %v1336_v17 = vshll.u32 %v1259_v0, 16  ;;  %v2444_v20 = vsel %vm6097_vm12, %v2439_v10, %v2443_v59  ;;  %v2454_v34 = vsel %vm6097_vm12, %v2449_v22, %v2453_v4  ;;  %v6180_v59 = vld [vmem:[#allocation2 + $0x34] sm:$0xf]  ;;  %v6198_v22 = vld [vmem:[#allocation2 + $0x38] sm:$0x1] }
 0x170   : > { %5309 = vmatprep.subr.bf16.mxu1 %v6125_v31  ;;  %v1323_v35 = vor.u32 %v1322_v23, %v1319_v14  ;;  %v4639_v33 = vcombine.low %v2444_v20, %v2454_v34  ;;  %v1343_v4 = vrot.slane %v1341_v51, 4  ;;  %v2463_v10 = vrot.slane %v2462_v56, 4  ;;  %v6204_v34 = vld [vmem:[#allocation2 + $0x30] sm:$0xf] }
 0x171   : > { %5166 = vmatmul.mubr.bf16.vlgmr.msra.gmra.mrb[20].mxu0 %v4519_v9  ;;  %v1332_v29 = vrot.slane %v1330_v16, 4  ;;  %v1338_v61 = vrot.slane %v1336_v17, 5  ;;  %v2472_v11 = vor.u32 %v2471_v57, %v2467_v50  ;;  %v1352_v13 = vrot.slane %v1350_v6, 5  ;;  %v6218_v57 = vld [vmem:[#allocation2 + $0x38] sm:$0x1] }
 0x172   : > { %5182 = vmatpush3.bf16.msra.mxu0 %v5643_v30  ;;  %v1324_v49 = vrot.slane %v1323_v35, 4  ;;  %5294 = vmatmul.mubr.bf16.vlgmr.msra.gmra.mrb[0].mxu1 %v4639_v33  ;;  %v1354_v14 = vshrl.u32 %v6173_v47, 16  ;;  %v2468_v16 = vsel %vm6097_vm12, %v2463_v10, %v2467_v50  ;;  %v2480_v23 = vshrl.u32 %v2392_v40, 16  ;;  %v6209_v33 = vld [vmem:[#allocation2 + $0x34] sm:$0xf] }
 0x173   : > { %5183 = vmatprep.subr.bf16.mxu0 %v5645_v12  ;;  %v1333_v30 = vor.u32 %v1332_v29, %v1328_v28  ;;  %5310 = vmatpush3.bf16.msra.mxu1 %v6125_v31  ;;  %v2473_v17 = vrot.slane %v2472_v11, 4  ;;  %v1362_v29 = vrot.slane %v1360_v15, 5  ;;  %v2489_v2 = vshll.u32 %v6180_v59, 16  ;;  %v2395_v10 = vld [vmem:[#allocation2 + $0x3c] sm:$0xf] }
 0x174   : > { %v1329_v0 = vsel %vm6097_vm12, %v1324_v49, %v1328_v28  ;;  %5311 = vmatprep.subr.bf16.mxu1 %v5646_v53  ;;  %v1356_v28 = vrot.slane %v1354_v14, 4  ;;  %v2482_v39 = vrot.slane %v2480_v23, 4  ;;  %v2499_v51 = vshll.u32 %v6198_v22, 16  ;;  %v6231_v14 = vld [vmem:[#allocation2 + $0x40] sm:$0xf]  ;;  %v5655_v23 = vld [vmem:[%s6940_s5 + $0x30] sm:$0xff]  }
 0x175   : > { %v1334_v55 = vrot.slane %v1333_v30, 4  ;;  %v2478_v35 = vsel %vm6097_vm12, %v2473_v17, %v2477_v3  ;;  %v2491_v49 = vrot.slane %v2489_v2, 5  ;;  %v5653_v3 = vld [vmem:[%s6940_s5 + $0x28] sm:$0xff]   ;;  %v2504_v2 = vshrl.u32 %v2395_v10, 16 }
 0x176   : > { %5184 = vmatpush3.bf16.msra.mxu0 %v5645_v12  ;;  %v1346_v12 = vrot.slane %v1344_v58, 5  ;;  %v4640_v30 = vcombine.low %v2468_v16, %v2478_v35  ;;  %v1357_v41 = vor.u32 %v1356_v28, %v1352_v13  ;;  %v1368_v58 = vshll.u32 %v6204_v34, 16 }
 0x177   : > { %5185 = vmatprep.subr.bf16.mxu0 %v5647_v26  ;;  %v1339_v9 = vsel %vm6097_vm12, %v1334_v55, %v1338_v61  ;;  %5312 = vmatpush3.bf16.msra.mxu1 %v5646_v53  ;;  %v2483_v61 = vshll.u32 %v2392_v40, 16  ;;  %v5651_v53 = vld [vmem:[%s6940_s5 + $0x20] sm:$0xff]   ;;  %v1365_v40 = vshrl.u32 %v6204_v34, 16  ;;  %v2501_v6 = vrot.slane %v2499_v51, 5 }
 0x178   : > { %v4520_v31 = vcombine.low %v1329_v0, %v1339_v9  ;;  %v1347_v20 = vor.u32 %v1346_v12, %v1343_v4  ;;  %5313 = vmatprep.subr.bf16.mxu1 %v5648_v60  ;;  %5297 = vmatprep.mubr.bf16.mxu1 %v4640_v30  ;;  %v1358_v55 = vrot.slane %v1357_v41, 4  ;;  %v1374_v0 = vshll.u32 %v6209_v33, 16  ;;  %v6247_v41 = vld [vmem:[#allocation2 + $0x3c] sm:$0xf]  ;;  %v6251_v51 = vld [vmem:[#allocation2 + $0x44] sm:$0x1] }
 0x179   : > { %v2485_v46 = vrot.slane %v2483_v61, 5  ;;  %v1378_v9 = vshrl.u32 %v6209_v33, 16  ;;  %v6239_v61 = vld [vmem:[#allocation2 + $0x44] sm:$0x1]  ;;  %v2507_v35 = vshll.u32 %v2395_v10, 16  ;;  %v2513_v30 = vshll.u32 %v6231_v14, 16 }
 0x17a   : > { %5186 = vmatpush3.bf16.msra.mxu0 %v5647_v26  ;;  %5169 = vmatprep.mubr.bf16.mxu0 %v4520_v31  ;;  %v1348_v38 = vrot.slane %v1347_v20, 4  ;;  %v2493_v26 = vshrl.u32 %v6180_v59, 16  ;;  %v1363_v11 = vsel %vm6097_vm12, %v1358_v55, %v1362_v29  ;;  %v1370_v31 = vrot.slane %v1368_v58, 5  ;;  %6956 = vst [vmem:[#allocation3_spill] sm:$0xff] %v6251_v51 }
 0x17b   : > { %5187 = vmatprep.subr.bf16.mxu0 %v5649_v8  ;;  %v2486_v56 = vor.u32 %v2485_v46, %v2482_v39  ;;  %5314 = vmatpush3.bf16.msra.mxu1 %v5648_v60  ;;  %v5652_v60 = vld [vmem:[%s6940_s5 + $0x160] sm:$0xff]   ;;  %v1380_v17 = vrot.slane %v1378_v9, 4  ;;  %v1384_v20 = vshll.u32 %v6218_v57, 16  ;;  %v2517_v58 = vshrl.u32 %v6231_v14, 16 }
 0x17c   : > { %v1353_v50 = vsel %vm6097_vm12, %v1348_v38, %v1352_v13  ;;  %v2495_v37 = vrot.slane %v2493_v26, 4  ;;  %5315 = vmatprep.subr.bf16.mxu1 %v5650_v25  ;;  %v1376_v13 = vrot.slane %v1374_v0, 5  ;;  %v5654_v38 = vld [vmem:[%s6940_s5 + $0x168] sm:$0xff]   ;;  %v2523_v0 = vshll.u32 %v6239_v61, 16 }
 0x17d   : > { %v2487_v12 = vrot.slane %v2486_v56, 4  ;;  %v4521_v15 = vcombine.low %v1353_v50, %v1363_v11  ;;  %v2506_v50 = vrot.slane %v2504_v2, 4  ;;  %v2515_v56 = vrot.slane %v2513_v30, 5  ;;  %v6262_v11 = vld [vmem:[#allocation2 + $0x4c] sm:$0xf] }
 0x17e   : > { %5188 = vmatpush3.bf16.msra.mxu0 %v5649_v8  ;;  %v2496_v4 = vor.u32 %v2495_v37, %v2491_v49  ;;  %v1367_v8 = vrot.slane %v1365_v40, 4  ;;  %v1381_v26 = vor.u32 %v1380_v17, %v1376_v13  ;;  %v2509_v37 = vrot.slane %v2507_v35, 5  ;;  %v5657_v40 = vld [vmem:[%s6940_s5 + $0x38] sm:$0xff]  }
 0x17f   : > { %5189 = vmatprep.subr.bf16.mxu0 %v5651_v53  ;;  %v2492_v28 = vsel %vm6097_vm12, %v2487_v12, %v2491_v49  ;;  %5316 = vmatpush3.bf16.msra.mxu1 %v5650_v25  ;;  %v6249_v25 = vld [vmem:[#allocation2 + $0x40] sm:$0xf]  ;;  %v1389_v9 = vshrl.u32 %v6247_v41, 16  ;;  %v1392_v10 = vshll.u32 %v6247_v41, 16 }
 0x180   : > { %v2497_v16 = vrot.slane %v2496_v4, 4  ;;  %v1371_v29 = vor.u32 %v1370_v31, %v1367_v8  ;;  %5170 = vmatmul.mubr.bf16.gmra.mrb[24].mxu0 %v4521_v15  ;;  %5317 = vmatprep.subr.bf16.mxu1 %v5652_v60  ;;  %v1382_v55 = vrot.slane %v1381_v26, 4  ;;  %v2398_v4 = vld [vmem:[#allocation2 + $0x48] sm:$0xf]  ;;  %v2510_v8 = vor.u32 %v2509_v37, %v2506_v50 }
 0x181   : > { %v2519_v31 = vrot.slane %v2517_v58, 4  ;;  %v2525_v15 = vrot.slane %v2523_v0, 5  ;;  %v1402_v35 = vshrl.u32 %v6249_v25, 16  ;;  %v2528_v30 = vshrl.u32 %v2398_v4, 16 }
 0x182   : > { %5190 = vmatpush3.bf16.msra.mxu0 %v5651_v53  ;;  %v2502_v39 = vsel %vm6097_vm12, %v2497_v16, %v2501_v6  ;;  %v1386_v53 = vrot.slane %v1384_v20, 5  ;;  %v1372_v49 = vrot.slane %v1371_v29, 4  ;;  %v1398_v16 = vshll.u32 %v6249_v25, 16 }
 0x183   : > { %5191 = vmatprep.subr.bf16.mxu0 %v5653_v3  ;;  %v4641_v46 = vcombine.low %v2492_v28, %v2502_v39  ;;  %5318 = vmatpush3.bf16.msra.mxu1 %v5652_v60  ;;  %v2511_v17 = vrot.slane %v2510_v8, 4  ;;  %v1391_v20 = vrot.slane %v1389_v9, 4  ;;  %v5656_v28 = vld [vmem:[%s6940_s5 + $0x170] sm:$0xff]   ;;  %v2520_v29 = vor.u32 %v2519_v31, %v2515_v56  ;;  %v6286_v8 = vld [vmem:[#allocation2 + $0x48] sm:$0xf] }
 0x184   : > { %v1377_v6 = vsel %vm6097_vm12, %v1372_v49, %v1376_v13  ;;  %v1387_v12 = vsel %vm6097_vm12, %v1382_v55, %v1386_v53  ;;  %v1394_v13 = vrot.slane %v1392_v10, 5  ;;  %5319 = vmatprep.subr.bf16.mxu1 %v5654_v38  ;;  %v1400_v2 = vrot.slane %v1398_v16, 5  ;;  %v6274_v53 = vld [vmem:[#allocation2 + $0x50] sm:$0x1]  ;;  %v6279_v49 = vld [vmem:[%s6940_s5 + $0x80] sm:$0xff]  }
 0x185   : > { %5298 = vmatmul.mubr.bf16.gmra.mrb[4].mxu1 %v4641_v46  ;;  %v1408_v39 = vshll.u32 %v6251_v51, 16  ;;  %v2516_v60 = vsel %vm6097_vm12, %v2511_v17, %v2515_v56  ;;  %v2531_v46 = vshll.u32 %v2398_v4, 16  ;;  %v2521_v50 = vrot.slane %v2520_v29, 4  ;;  %v5658_v56 = vld [vmem:[%s6940_s5 + $0x178] sm:$0xff]   ;;  %v2401_v29 = vld [vmem:[#allocation2 + $0x54] sm:$0xf] }
 0x186   : > { %5192 = vmatpush3.bf16.msra.mxu0 %v5653_v3  ;;  %v4522_v3 = vcombine.low %v1377_v6, %v1387_v12  ;;  %v1395_v26 = vor.u32 %v1394_v13, %v1391_v20  ;;  %v1404_v37 = vrot.slane %v1402_v35, 4  ;;  %v2530_v0 = vrot.slane %v2528_v30, 4  ;;  %v6295_v13 = vld [vmem:[#allocation2 + $0x50] sm:$0x1] }
 0x187   : > { %5193 = vmatprep.subr.bf16.mxu0 %v5655_v23  ;;  %v1410_v55 = vrot.slane %v1408_v39, 5  ;;  %5320 = vmatpush3.bf16.msra.mxu1 %v5654_v38  ;;  %v2533_v6 = vrot.slane %v2531_v46, 5  ;;  %v2541_v4 = vshrl.u32 %v6262_v11, 16  ;;  %v2526_v9 = vsel %vm6097_vm12, %v2521_v50, %v2525_v15  ;;  %v6291_v38 = vld [vmem:[#allocation2 + $0x4c] sm:$0xf]  ;;  %6957 = vst [vmem:[#allocation4_spill] sm:$0xff] %v6295_v13 }
 0x188   : > { %5173 = vmatprep.mubr.bf16.mxu0 %v4522_v3  ;;  %v1396_v58 = vrot.slane %v1395_v26, 4  ;;  %5321 = vmatprep.subr.bf16.mxu1 %v5656_v28  ;;  %v1405_v10 = vor.u32 %v1404_v37, %v1400_v2  ;;  %v2547_v31 = vshll.u32 %v6274_v53, 16  ;;  %v4642_v16 = vcombine.low %v2516_v60, %v2526_v9  ;;  %v6305_v46 = vld [vmem:[%s6940_s5 + $0x180] sm:$0xff]  }
 0x189   : > { %v2534_v17 = vor.u32 %v2533_v6, %v2530_v0  ;;  %v2543_v20 = vrot.slane %v2541_v4, 4  ;;  %v1413_v39 = vshrl.u32 %v6286_v8, 16  ;;  %v1416_v26 = vshll.u32 %v6286_v8, 16 }
 0x18a   : > { %5194 = vmatpush3.bf16.msra.mxu0 %v5655_v23  ;;  %v2537_v23 = vshll.u32 %v6262_v11, 16  ;;  %v1401_v3 = vsel %vm6097_vm12, %v1396_v58, %v1400_v2  ;;  %v1406_v35 = vrot.slane %v1405_v10, 4  ;;  %v2549_v15 = vrot.slane %v2547_v31, 5  ;;  %5301 = vmatprep.mubr.bf16.mxu1 %v4642_v16  ;;  %v6310_v58 = vld [vmem:[#allocation2 + $0x58] sm:$0xf] }
 0x18b   : > { %5195 = vmatprep.subr.bf16.mxu0 %v5657_v40  ;;  %5322 = vmatpush3.bf16.msra.mxu1 %v5656_v28  ;;  %v1422_v30 = vshll.u32 %v6291_v38, 16  ;;  %v1426_v2 = vshrl.u32 %v6291_v38, 16  ;;  %v1415_v37 = vrot.slane %v1413_v39, 4  ;;  %v1432_v28 = vshll.u32 %v6295_v13, 16  ;;  %v6314_v10 = vld [vmem:[#allocation2 + $0x5c] sm:$0x1] }
 0x18c   : > { %v2539_v12 = vrot.slane %v2537_v23, 5  ;;  %5323 = vmatprep.subr.bf16.mxu1 %v5658_v56  ;;  %v1411_v50 = vsel %vm6097_vm12, %v1406_v35, %v1410_v55  ;;  %v1418_v23 = vrot.slane %v1416_v26, 5  ;;  %v6316_v31 = vld [vmem:[#allocation2 + $0x54] sm:$0xf]  ;;  %v2552_v55 = vshrl.u32 %v2401_v29, 16 }
 0x18d   : > { %v4523_v0 = vcombine.low %v1401_v3, %v1411_v50  ;;  %v1424_v9 = vrot.slane %v1422_v30, 5  ;;  %v6318_v35 = vld [vmem:[#allocation2 + $0x58] sm:$0xf]  ;;  %v2555_v39 = vshll.u32 %v2401_v29, 16  ;;  %v2565_v26 = vshrl.u32 %v6310_v58, 16 }
 0x18e   : > { %5196 = vmatpush3.bf16.msra.mxu0 %v5657_v40  ;;  %v2535_v40 = vrot.slane %v2534_v17, 4  ;;  %v2544_v60 = vor.u32 %v2543_v20, %v2539_v12  ;;  %v1419_v16 = vor.u32 %v1418_v23, %v1415_v37  ;;  %v1428_v17 = vrot.slane %v1426_v2, 4  ;;  %v2404_v29 = vld [vmem:[#allocation2 + $0x60] sm:$0xf]  ;;  %v6338_v13 = vld [vmem:[#allocation2 + $0x68] sm:$0x1] }
 0x18f   : > { %5213 = vmatprep.subr.bf16.mxu0 %v6279_v49  ;;  %v1434_v20 = vrot.slane %v1432_v28, 5  ;;  %5324 = vmatpush3.bf16.msra.mxu1 %v5658_v56  ;;  %v2554_v2 = vrot.slane %v2552_v55, 4  ;;  %v2557_v50 = vrot.slane %v2555_v39, 5  ;;  %v2567_v56 = vrot.slane %v2565_v26, 4  ;;  %v6326_v28 = vld [vmem:[#allocation2 + $0x5c] sm:$0x1] }
 0x190   : > { %v2540_v6 = vsel %vm6097_vm12, %v2535_v40, %v2539_v12  ;;  %v2545_v4 = vrot.slane %v2544_v60, 4  ;;  %5174 = vmatmul.mubr.bf16.gmra.mrb[28].mxu0 %v4523_v0  ;;  %v2561_v12 = vshll.u32 %v6310_v58, 16  ;;  %5341 = vmatprep.subr.bf16.mxu1 %v6305_v46  ;;  %v1420_v60 = vrot.slane %v1419_v16, 4  ;;  %v6333_v39 = vld [vmem:[#allocation2 + $0x64] sm:$0xf] }
 0x191   : > { %v1429_v30 = vor.u32 %v1428_v17, %v1424_v9  ;;  %v2571_v23 = vshll.u32 %v6314_v10, 16  ;;  %v2558_v16 = vor.u32 %v2557_v50, %v2554_v2  ;;  %v1450_v44 = vshrl.u32 %v6318_v35, 16  ;;  %v2809_v2 = vld [vmem:[#allocation2 + $0xc] sm:$0xe] }
 0x192   : > { %v2550_v3 = vsel %vm6097_vm12, %v2545_v4, %v2549_v15  ;;  %v2563_v37 = vrot.slane %v2561_v12, 5  ;;  %v1425_v15 = vsel %vm6097_vm12, %v1420_v60, %v1424_v9  ;;  %v1440_v4 = vshll.u32 %v6316_v31, 16 }
 0x193   : > { %v4643_v40 = vcombine.low %v2540_v6, %v2550_v3  ;;  %v1430_v0 = vrot.slane %v1429_v30, 4  ;;  %v1437_v6 = vshrl.u32 %v6316_v31, 16  ;;  %v2573_v55 = vrot.slane %v2571_v23, 5 }
 0x194   : > { %v2568_v17 = vor.u32 %v2567_v56, %v2563_v37  ;;  %v1446_v3 = vshll.u32 %v6318_v35, 16  ;;  %v2559_v60 = vrot.slane %v2558_v16, 4  ;;  %v1452_v56 = vrot.slane %v1450_v44, 4 }
 0x195   : > { %5302 = vmatmul.mubr.bf16.gmra.mrb[8].mxu1 %v4643_v40  ;;  %v1435_v12 = vsel %vm6097_vm12, %v1430_v0, %v1434_v20  ;;  %v1439_v26 = vrot.slane %v1437_v6, 4  ;;  %v1442_v40 = vrot.slane %v1440_v4, 5  ;;  %v1456_v23 = vshll.u32 %v6326_v28, 16 }
 0x196   : > { %v4524_v9 = vcombine.low %v1425_v15, %v1435_v12  ;;  %v2569_v30 = vrot.slane %v2568_v17, 4  ;;  %v1448_v5 = vrot.slane %v1446_v3, 5  ;;  %v2576_v51 = vshrl.u32 %v2404_v29, 16 }
 0x197   : > { %v1443_v50 = vor.u32 %v1442_v40, %v1439_v26  ;;  %v2564_v20 = vsel %vm6097_vm12, %v2559_v60, %v2563_v37  ;;  %v2579_v6 = vshll.u32 %v2404_v29, 16  ;;  %v2585_v15 = vshll.u32 %v6333_v39, 16 }
 0x198   : > { %5177 = vmatprep.mubr.bf16.mxu0 %v4524_v9  ;;  %v2574_v0 = vsel %vm6097_vm12, %v2569_v30, %v2573_v55  ;;  %v1453_v17 = vor.u32 %v1452_v56, %v1448_v5  ;;  %v1458_v3 = vrot.slane %v1456_v23, 5  ;;  %v2578_v12 = vrot.slane %v2576_v51, 4  ;;  %v2810_v23 = vld [vmem:[#allocation2 + $0x18] sm:$0xe] }
 0x199   : > { %v4644_v4 = vcombine.low %v2564_v20, %v2574_v0  ;;  %v1444_v16 = vrot.slane %v1443_v50, 4  ;;  %v2581_v26 = vrot.slane %v2579_v6, 5  ;;  %v2587_v44 = vrot.slane %v2585_v15, 5  ;;  %v2811_v20 = vld [vmem:[#allocation2 + $0x24] sm:$0xe] }
 0x19a   : > { %v2589_v40 = vshrl.u32 %v6333_v39, 16  ;;  %v1454_v37 = vrot.slane %v1453_v17, 4  ;;  %v2595_v60 = vshll.u32 %v6338_v13, 16  ;;  %v4654_v55 = vrot.slane %v2809_v2, 9 }
 0x19b   : > { %5305 = vmatprep.mubr.bf16.mxu1 %v4644_v4  ;;  %v1449_v9 = vsel %vm6097_vm12, %v1444_v16, %v1448_v5  ;;  %v2582_v29 = vor.u32 %v2581_v26, %v2578_v12  ;;  %v2843_v51 = vrot.slane %v6078_v52, 5  ;;  %v4534_v5 = vcombine.low %v6067_v42, %v6069_v43 }
 0x19c   : > { %v2591_v30 = vrot.slane %v2589_v40, 4  ;;  %v1459_v56 = vsel %vm6097_vm12, %v1454_v37, %v1458_v3  ;;  %v2597_v15 = vrot.slane %v2595_v60, 5  ;;  %v2857_v3 = vrot.slane %v6155_v18, 5 }
 0x19d   : > { %v4525_v0 = vcombine.low %v1449_v9, %v1459_v56  ;;  %v2583_v2 = vrot.slane %v2582_v29, 4  ;;  %v2844_v4 = vsel %vm6352_vm1, %v4654_v55, %v2843_v51  ;;  %v2845_v16 = vrot.slane %v2843_v51, 4  ;;  %v2812_v55 = vld [vmem:[#allocation2 + $0x30] sm:$0xe] }
 0x19e   : > { %v2592_v6 = vor.u32 %v2591_v30, %v2587_v44  ;;  %v6960_v12 = vrot.slane %v6117_v27, 5  ;;  %v2853_v43 = vrot.slane %v6128_v36, 5  ;;  %v6961_v26 = vrot.slane %v6080_v54, 5 }
 0x19f   : > { %5178 = vmatmul.mubr.bf16.gmra.mrb[32].mxu0 %v4525_v0  ;;  %v2588_v52 = vsel %vm6097_vm12, %v2583_v2, %v2587_v44  ;;  %v4655_v60 = vrot.slane %v2810_v23, 9  ;;  %v4656_v44 = vrot.slane %v2811_v20, 9  ;;  %v2859_v18 = vrot.slane %v2857_v3, 4  ;;  %v2813_v23 = vld [vmem:[#allocation2 + $0x3c] sm:$0xe]  ;;  %v5663_v0 = vld [vmem:[%s6940_s5 + $0x88] sm:$0xff]  }
 0x1a0   : > { %v2593_v17 = vrot.slane %v2592_v6, 4  ;;  %v2852_v42 = vrot.slane %v6960_v12, 4  ;;  %5197 = vmatprep.mubr.bf16.mxu0 %v4534_v5  ;;  %v2847_v40 = vsel %vm6352_vm1, %v2845_v16, %v6961_v26  ;;  %v2860_v30 = vrot.slane %v6159_v24, 5 }
 0x1a1   : > { %v4678_v37 = vcombine.low %v2844_v4, %v2847_v40  ;;  %v1879_v51 = vrot.slane %v6071_v45, 5  ;;  %v1886_v36 = vrot.slane %v6111_v21, 5  ;;  %v4535_v54 = vcombine.low %v6090_v63, %v6102_v7  ;;  %v5669_v40 = vld [vmem:[%s6940_s5 + $0x98] sm:$0xff]  }
 0x1a2   : > { %v2598_v9 = vsel %vm6097_vm12, %v2593_v17, %v2597_v15  ;;  %v2854_v56 = vsel %vm6352_vm1, %v2852_v42, %v2853_v43  ;;  %v4536_v5 = vcombine.low %v6136_v19, %v6143_v62  ;;  %v6962_v20 = vmov %v6960_v12  ;;  %v6397_v62 = vld [vmem:[#allocation2 + $0x48] sm:$0xe] }
 0x1a3   : > { %v4645_v29 = vcombine.low %v2588_v52, %v2598_v9  ;;  %v2851_v24 = vsel %vm6352_vm1, %v4655_v60, %v6962_v20  ;;  %v4657_v2 = vrot.slane %v2812_v55, 9  ;;  %v2864_v63 = vrot.slane %v6180_v59, 5  ;;  %v5664_v59 = vld [vmem:[%s6940_s5 + $0x188] sm:$0xff]  }
 0x1a4   : > { %v2871_v7 = vrot.slane %v6231_v14, 5  ;;  %v2858_v6 = vsel %vm6352_vm1, %v4656_v44, %v2857_v3  ;;  %v2861_v19 = vsel %vm6352_vm1, %v2859_v18, %v2860_v30  ;;  %v2867_v27 = vrot.slane %v6198_v22, 5  ;;  %v6406_v14 = vld [vmem:[#allocation2 + $0x54] sm:$0xe]  ;;  %v6408_v22 = vld [vmem:[#allocation2 + $0x60] sm:$0xe] }
 0x1a5   : > { %5306 = vmatmul.mubr.bf16.gmra.mrb[12].mxu1 %v4645_v29  ;;  %v4658_v15 = vrot.slane %v2813_v23, 9  ;;  %v2874_v4 = vrot.slane %v6239_v61, 5  ;;  %v2878_v16 = vrot.slane %v6262_v11, 5  ;;  %v4679_v52 = vcombine.low %v2851_v24, %v2854_v56  ;;  %v6434_v18 = vld [vmem:[#allocation2 + $0x4] sm:$0xf] }
 0x1a6   : > { %5325 = vmatprep.mubr.bf16.mxu1 %v4678_v37  ;;  %v4680_v17 = vcombine.low %v2858_v6, %v2861_v19  ;;  %v2866_v3 = vrot.slane %v2864_v63, 4  ;;  %v2873_v12 = vrot.slane %v2871_v7, 4  ;;  %v4537_v61 = vcombine.low %v6167_v32, %v6173_v47  ;;  %v5673_v23 = vld [vmem:[%s6940_s5 + $0xa0] sm:$0xff]  }
 0x1a7   : > { %5198 = vmatmul.mubr.bf16.vlgmr.msra.gmra.mrb[20].mxu0 %v4535_v54  ;;  %v2865_v42 = vsel %vm6352_vm1, %v4657_v2, %v2864_v63  ;;  %v4538_v43 = vcombine.low %v6204_v34, %v6209_v33  ;;  %v4659_v26 = vrot.slane %v6397_v62, 9  ;;  %v2880_v9 = vrot.slane %v2878_v16, 4  ;;  %v5668_v34 = vld [vmem:[%s6940_s5 + $0x190] sm:$0xff]   ;;  %v1847_v54 = vld [vmem:[#allocation2] sm:$0xe] }
 0x1a8   : > { %5214 = vmatpush3.bf16.msra.mxu0 %v6279_v49  ;;  %5201 = vmatprep.mubr.bf16.mxu0 %v4536_v5  ;;  %v5667_v49 = vld [vmem:[%s6940_s5 + $0x90] sm:$0xff]   ;;  %v2881_v32 = vrot.slane %v6274_v53, 5  ;;  %v4660_v37 = vrot.slane %v6406_v14, 9  ;;  %v2885_v60 = vrot.slane %v6310_v58, 5  ;;  %v2888_v44 = vrot.slane %v6314_v10, 5 }
 0x1a9   : > { %5215 = vmatprep.subr.bf16.mxu0 %v5663_v0  ;;  %v4661_v55 = vrot.slane %v6408_v22, 9  ;;  %v2892_v29 = vrot.slane %v6333_v39, 5  ;;  %v1876_v53 = vrot.slane %v6434_v18, 5  ;;  %v2868_v58 = vsel %vm6352_vm1, %v2866_v3, %v2867_v27  ;;  %v6455_v63 = vld [vmem:[#allocation2 + $0x10] sm:$0xf] }
 0x1aa   : > { %v2872_v30 = vsel %vm6352_vm1, %v4658_v15, %v2871_v7  ;;  %v2875_v10 = vsel %vm6352_vm1, %v2873_v12, %v2874_v4  ;;  %v4681_v56 = vcombine.low %v2865_v42, %v2868_v58  ;;  %v2887_v20 = vrot.slane %v2885_v60, 4  ;;  %v1850_v62 = vld [vmem:[#allocation2 + $0x24] sm:$0xe]  ;;  %v5675_v4 = vld [vmem:[%s6940_s5 + $0xa8] sm:$0xff]   ;;  %v6484_v12 = vld [vmem:[#allocation2 + $0x18] sm:$0xe] }
 0x1ab   : > { %v4682_v5 = vcombine.low %v2872_v30, %v2875_v10  ;;  %v2895_v24 = vrot.slane %v6338_v13, 5  ;;  %v4550_v2 = vrot.slane %v1847_v54, 9  ;;  %v1883_v7 = vrot.slane %v6455_v63, 5  ;;  %v5725_v58 = vld [vmem:[#allocation2 + $0x1c] sm:$0xf]  ;;  %v5680_v13 = vld [vmem:[%s6940_s5 + $0x1b0] sm:$0xff]  }
 0x1ac   : > { %5216 = vmatpush3.bf16.msra.mxu0 %v5663_v0  ;;  %v6453_v0 = vrot.slane %v2892_v29, 4  ;;  %v1897_v6 = vrot.slane %v6173_v47, 5  ;;  %v1878_v19 = vrot.slane %v1876_v53, 4  ;;  %v1900_v27 = vrot.slane %v6175_v48, 5  ;;  %v1852_v10 = vld [vmem:[#allocation2 + $0x3c] sm:$0xe] }
 0x1ad   : > { %5326 = vmatmul.mubr.bf16.vlgmr.msra.gmra.mrb[0].mxu1 %v4679_v52  ;;  %5217 = vmatprep.subr.bf16.mxu0 %v5667_v49  ;;  %v4539_v15 = vcombine.low %v6247_v41, %v6249_v25  ;;  %v4540_v52 = vcombine.low %v6286_v8, %v6291_v38  ;;  %v4553_v47 = vrot.slane %v1850_v62, 9  ;;  %v2879_v48 = vsel %vm6352_vm1, %v4659_v26, %v2878_v16  ;;  %v6963_v54 = vld [vmem:[#allocation3_spill] sm:$0xff]  ;;  %v1854_v63 = vld [vmem:[#allocation2 + $0x54] sm:$0xe] }
 0x1ae   : > { %5342 = vmatpush3.bf16.msra.mxu1 %v6305_v46  ;;  %5329 = vmatprep.mubr.bf16.mxu1 %v4680_v17  ;;  %v5670_v46 = vld [vmem:[%s6940_s5 + $0x198] sm:$0xff]   ;;  %v1899_v14 = vrot.slane %v1897_v6, 4  ;;  %v2882_v41 = vsel %vm6352_vm1, %v2880_v9, %v2881_v32  ;;  %v5674_v17 = vld [vmem:[%s6940_s5 + $0x1a0] sm:$0xff]   ;;  %v2886_v8 = vsel %vm6352_vm1, %v4660_v37, %v2885_v60  ;;  %v2889_v3 = vsel %vm6352_vm1, %v2887_v20, %v2888_v44  ;;  %v1851_v9 = vld [vmem:[#allocation2 + $0x30] sm:$0xe] }
 0x1af   : > { %5343 = vmatprep.subr.bf16.mxu1 %v5664_v59  ;;  %5202 = vmatmul.mubr.bf16.gmra.mrb[24].mxu0 %v4537_v61  ;;  %v6488_v11 = vsel %vm6352_vm1, %v4553_v47, %v1897_v6  ;;  %v1904_v42 = vrot.slane %v6209_v33, 5  ;;  %v4541_v26 = vcombine.low %v6316_v31, %v6318_v35  ;;  %v1907_v32 = vrot.slane %v6218_v57, 5  ;;  %v5676_v37 = vld [vmem:[%s6940_s5 + $0x1a8] sm:$0xff]   ;;  %v5679_v57 = vld [vmem:[%s6940_s5 + $0xb0] sm:$0xff]   ;;  %v5682_v47 = vld [vmem:[%s6940_s5 + $0x1b8] sm:$0xff]  }
 0x1b0   : > { %5218 = vmatpush3.bf16.msra.mxu0 %v5667_v49  ;;  %5205 = vmatprep.mubr.bf16.mxu0 %v4538_v43  ;;  %v6492_v16 = vsel %vm6352_vm1, %v1899_v14, %v1900_v27  ;;  %v4683_v43 = vcombine.low %v2879_v48, %v2882_v41  ;;  %v4684_v60 = vcombine.low %v2886_v8, %v2889_v3  ;;  %v1890_v30 = vrot.slane %v5725_v58, 5  ;;  %v6964_v27 = vld [vmem:[#allocation4_spill] sm:$0xff] }
 0x1b1   : > { %5219 = vmatprep.subr.bf16.mxu0 %v5669_v40  ;;  %v4577_v49 = vcombine.low %v6488_v11, %v6492_v16  ;;  %v1877_v33 = vsel %vm6352_vm1, %v4550_v2, %v1876_v53  ;;  %v1906_v31 = vrot.slane %v1904_v42, 4  ;;  %v1880_v44 = vsel %vm6352_vm1, %v1878_v19, %v1879_v51  ;;  %v5681_v51 = vld [vmem:[%s6940_s5 + $0xb8] sm:$0xff]   ;;  %v6616_v58 = vld [vmem:[#allocation2 + $0x20] sm:$0x1]  ;;  %v3356_v16 = vld [vmem:[#allocation2 + $0x30] sm:$0xf] }
 0x1b2   : > { %5344 = vmatpush3.bf16.msra.mxu1 %v5664_v59  ;;  %v6469_v59 = vld [vmem:[#allocation2 + $0xc] sm:$0xe]  ;;  %v1911_v18 = vrot.slane %v6249_v25, 5  ;;  %v1914_v53 = vrot.slane %v6963_v54, 5  ;;  %v2893_v25 = vsel %vm6352_vm1, %v4661_v55, %v2892_v29  ;;  %v2896_v39 = vsel %vm6352_vm1, %v6453_v0, %v2895_v24  ;;  %v1853_v0 = vld [vmem:[#allocation2 + $0x48] sm:$0xe] }
 0x1b3   : > { %5345 = vmatprep.subr.bf16.mxu1 %v5668_v34  ;;  %v4551_v61 = vrot.slane %v6469_v59, 9  ;;  %v6526_v45 = vsel %vm6352_vm1, %v1906_v31, %v1907_v32  ;;  %v4574_v22 = vcombine.low %v1877_v33, %v1880_v44  ;;  %v1892_v29 = vrot.slane %v1890_v30, 4  ;;  %v5686_v32 = vld [vmem:[%s6940_s5 + $0x1c0] sm:$0xff]   ;;  %v3350_v33 = vld [vmem:[#allocation2 + $0x18] sm:$0xf]  ;;  %v5690_v31 = vld [vmem:[%s6940_s5 + $0xd0] sm:$0xff]  }
 0x1b4   : > { %5220 = vmatpush3.bf16.msra.mxu0 %v5669_v40  ;;  %v1885_v40 = vrot.slane %v1883_v7, 4  ;;  %v1913_v6 = vrot.slane %v1911_v18, 4  ;;  %v1918_v62 = vrot.slane %v6291_v38, 5  ;;  %v4556_v38 = vrot.slane %v1853_v0, 9  ;;  %v5693_v44 = vld [vmem:[%s6940_s5 + $0xd8] sm:$0xff]  }
 0x1b5   : > { %5330 = vmatmul.mubr.bf16.gmra.mrb[4].mxu1 %v4681_v56  ;;  %5221 = vmatprep.subr.bf16.mxu0 %v5673_v23  ;;  %v4552_v56 = vrot.slane %v6484_v12, 9  ;;  %v1925_v41 = vrot.slane %v6318_v35, 5  ;;  %v4557_v3 = vrot.slane %v1854_v63, 9  ;;  %v5684_v35 = vld [vmem:[%s6940_s5 + $0xc0] sm:$0xff]  }
 0x1b6   : > { %5346 = vmatpush3.bf16.msra.mxu1 %v5668_v34  ;;  %5333 = vmatprep.mubr.bf16.mxu1 %v4682_v5  ;;  %v4554_v34 = vrot.slane %v1851_v9, 9  ;;  %v4555_v5 = vrot.slane %v1852_v10, 9  ;;  %v6550_v19 = vsel %vm6352_vm1, %v1913_v6, %v1914_v53  ;;  %v1920_v59 = vrot.slane %v1918_v62, 4 }
 0x1b7   : > { %5347 = vmatprep.subr.bf16.mxu1 %v5670_v46  ;;  %5206 = vmatmul.mubr.bf16.gmra.mrb[28].mxu0 %v4539_v15  ;;  %v1921_v15 = vrot.slane %v6964_v27, 5  ;;  %v1887_v14 = vsel %vm6352_vm1, %v1885_v40, %v1886_v36  ;;  %v1891_v48 = vsel %vm6352_vm1, %v4552_v56, %v1890_v30  ;;  %v6578_v21 = vsel %vm6352_vm1, %v4556_v38, %v1918_v62  ;;  %v5687_v40 = vld [vmem:[%s6940_s5 + $0xc8] sm:$0xff]   ;;  %v3353_v30 = vld [vmem:[#allocation2 + $0x24] sm:$0xf] }
 0x1b8   : > { %5222 = vmatpush3.bf16.msra.mxu0 %v5673_v23  ;;  %5209 = vmatprep.mubr.bf16.mxu0 %v4540_v52  ;;  %v5726_v23 = vld [vmem:[#allocation2 + $0x20] sm:$0x1]  ;;  %v6546_v55 = vsel %vm6352_vm1, %v4555_v5, %v1911_v18  ;;  %v1884_v52 = vsel %vm6352_vm1, %v4551_v61, %v1883_v7  ;;  %v1928_v7 = vrot.slane %v6326_v28, 5  ;;  %v1927_v12 = vrot.slane %v1925_v41, 4  ;;  %v6620_v56 = vld [vmem:[#allocation2 + $0x28] sm:$0xf] }
 0x1b9   : > { %5223 = vmatprep.subr.bf16.mxu0 %v5675_v4  ;;  %v1893_v20 = vrot.slane %v5726_v23, 5  ;;  %v4579_v24 = vcombine.low %v6546_v55, %v6550_v19  ;;  %v6582_v36 = vsel %vm6352_vm1, %v1920_v59, %v1921_v15  ;;  %v4575_v61 = vcombine.low %v1884_v52, %v1887_v14  ;;  %v5691_v5 = vld [vmem:[#allocation2 + $0x3c] sm:$0xff]   ;;  %v5702_v55 = vld [vmem:[%s6940_s5 + $0xf0] sm:$0xff]  }
 0x1ba   : > { %5348 = vmatpush3.bf16.msra.mxu1 %v5670_v46  ;;  %v6522_v46 = vsel %vm6352_vm1, %v4554_v34, %v1904_v42  ;;  %v4580_v28 = vcombine.low %v6578_v21, %v6582_v36  ;;  %v6591_v42 = vsel %vm6352_vm1, %v4557_v3, %v1925_v41  ;;  %v5688_v34 = vld [vmem:[%s6940_s5 + $0x1c8] sm:$0xff]   ;;  %v3375_v10 = vshrl.u32 %v3350_v33, 16  ;;  %v5698_v59 = vld [vmem:[%s6940_s5 + $0x1e0] sm:$0xff]  }
 0x1bb   : > { %5349 = vmatprep.subr.bf16.mxu1 %v5674_v17  ;;  %v4578_v2 = vcombine.low %v6522_v46, %v6526_v45  ;;  %v1894_v8 = vsel %vm6352_vm1, %v1892_v29, %v1893_v20  ;;  %v3378_v18 = vshll.u32 %v3350_v33, 16  ;;  %v3402_v23 = vshll.u32 %v3353_v30, 16  ;;  %v5695_v20 = vld [vmem:[#allocation2 + $0x48] sm:$0xff]  }
 0x1bc   : > { %5224 = vmatpush3.bf16.msra.mxu0 %v5675_v4  ;;  %v4685_v4 = vcombine.low %v2893_v25, %v2896_v39  ;;  %v5692_v25 = vld [vmem:[%s6940_s5 + $0x1d0] sm:$0xff]   ;;  %v3394_v6 = vshll.u32 %v6616_v58, 16  ;;  %v5694_v39 = vld [vmem:[%s6940_s5 + $0x1d8] sm:$0xff]   ;;  %v3408_v29 = vshll.u32 %v6620_v56, 16  ;;  %v3412_v11 = vshrl.u32 %v6620_v56, 16  ;;  %v5700_v33 = vld [vmem:[%s6940_s5 + $0x1e8] sm:$0xff]  }
 0x1bd   : > { %5334 = vmatmul.mubr.bf16.gmra.mrb[8].mxu1 %v4683_v43  ;;  %5225 = vmatprep.subr.bf16.mxu0 %v5679_v57  ;;  %v4576_v43 = vcombine.low %v1891_v48, %v1894_v8  ;;  %v3377_v62 = vrot.slane %v3375_v10, 4  ;;  %v6644_v46 = vld [vmem:[#allocation2 + $0x2c] sm:$0x1]  ;;  %v3423_v15 = vshrl.u32 %v3356_v16, 16 }
 0x1be   : > { %5350 = vmatpush3.bf16.msra.mxu1 %v5674_v17  ;;  %5337 = vmatprep.mubr.bf16.mxu1 %v4684_v60  ;;  %v5683_v17 = vld [vmem:[#allocation2 + $0x18] sm:$0xff]   ;;  %v5689_v60 = vld [vmem:[#allocation2 + $0x30] sm:$0xff]   ;;  %v6654_v14 = vrot.slane %v3408_v29, 5  ;;  %v3414_v48 = vrot.slane %v3412_v11, 4  ;;  %v6656_v63 = vrot.slane %v3394_v6, 5  ;;  %v3418_v41 = vshll.u32 %v6644_v46, 16 }
 0x1bf   : > { %5351 = vmatprep.subr.bf16.mxu1 %v5676_v37  ;;  %5210 = vmatmul.mubr.bf16.gmra.mrb[32].mxu0 %v4541_v26  ;;  %v6595_v26 = vsel %vm6352_vm1, %v1927_v12, %v1928_v7  ;;  %v3359_v7 = vld [vmem:[#allocation2 + $0x3c] sm:$0xf]  ;;  %v6660_v12 = vld [vmem:[#allocation2 + $0x40] sm:$0xf]  ;;  %v6681_v10 = vld [vmem:[#allocation2 + $0x4c] sm:$0xf] }
 0x1c0   : > { %5226 = vmatpush3.bf16.msra.mxu0 %v5679_v57  ;;  %5229 = vmatprep.mubr.bf16.mxu0 %v4574_v22  ;;  %v4581_v9 = vcombine.low %v6591_v42, %v6595_v26  ;;  %v6611_v57 = vld [vmem:[#allocation2 + $0x1c] sm:$0xf]  ;;  %v5696_v22 = vld [vmem:[%s6940_s5 + $0xe0] sm:$0xff]   ;;  %v3415_v19 = vor.u32 %v3414_v48, %v6654_v14 }
 0x1c1   : > { %5227 = vmatprep.subr.bf16.mxu0 %v5681_v51  ;;  %v3384_v54 = vshll.u32 %v6611_v57, 16  ;;  %v3388_v53 = vshrl.u32 %v6611_v57, 16  ;;  %v6699_v11 = vld [vmem:[#allocation2 + $0x44] sm:$0x1]  ;;  %v5706_v42 = vld [vmem:[%s6940_s5 + $0x1f8] sm:$0xff]  }
 0x1c2   : > { %5352 = vmatpush3.bf16.msra.mxu1 %v5676_v37  ;;  %v5685_v37 = vld [vmem:[#allocation2 + $0x24] sm:$0xff]   ;;  %v6695_v6 = vrot.slane %v3415_v19, 4 }
 0x1c3   : > { %5353 = vmatprep.subr.bf16.mxu1 %v5680_v13  ;;  %v6642_v0 = vrot.slane %v3384_v54, 5  ;;  %v3390_v27 = vrot.slane %v3388_v53, 4 }
 0x1c4   : > { %5228 = vmatpush3.bf16.msra.mxu0 %v5681_v51  ;;  %v3399_v51 = vshrl.u32 %v3353_v30, 16  ;;  %v3362_v30 = vld [vmem:[#allocation2 + $0x48] sm:$0xf] }
 0x1c5   : > { %5338 = vmatmul.mubr.bf16.gmra.mrb[12].mxu1 %v4685_v4  ;;  %5245 = vmatprep.subr.bf16.mxu0 %v5684_v35  ;;  %v3426_v4 = vshll.u32 %v3356_v16, 16  ;;  %v3391_v3 = vor.u32 %v3390_v27, %v6642_v0  ;;  %v3471_v54 = vshrl.u32 %v3362_v30, 16  ;;  %v3474_v53 = vshll.u32 %v3362_v30, 16 }
 0x1c6   : > { %5354 = vmatpush3.bf16.msra.mxu1 %v5680_v13  ;;  %5357 = vmatprep.mubr.bf16.mxu1 %v5683_v17  ;;  %v3380_v13 = vrot.slane %v3378_v18, 5  ;;  %v3401_v45 = vrot.slane %v3399_v51, 4  ;;  %v5697_v17 = vld [vmem:[#allocation2 + $0x54] sm:$0xff]   ;;  %v6685_v18 = vrot.slane %v3418_v41, 5 }
 0x1c7   : > { %5355 = vmatprep.subr.bf16.mxu1 %v5682_v47  ;;  %5230 = vmatmul.mubr.bf16.vlgmr.msra.gmra.mrb[20].mxu0 %v4575_v61  ;;  %v5701_v61 = vld [vmem:[#allocation2 + $0x60] sm:$0xff]   ;;  %v3392_v36 = vrot.slane %v3391_v3, 4  ;;  %v5704_v51 = vld [vmem:[%s6940_s5 + $0x1f0] sm:$0xff]   ;;  %v6717_v3 = vld [vmem:[#allocation2 + $0x58] sm:$0xf] }
 0x1c8   : > { %5246 = vmatpush3.bf16.msra.mxu0 %v5684_v35  ;;  %5233 = vmatprep.mubr.bf16.mxu0 %v4576_v43  ;;  %v3381_v8 = vor.u32 %v3380_v13, %v3377_v62  ;;  %v6665_v43 = vld [vmem:[#allocation2 + $0x38] sm:$0x1]  ;;  %v3365_v41 = vld [vmem:[#allocation2 + $0x54] sm:$0xf]  ;;  %v3508_v30 = vshrl.u32 %v6717_v3, 16 }
 0x1c9   : > { %5247 = vmatprep.subr.bf16.mxu0 %v5687_v40  ;;  %v3442_v29 = vshll.u32 %v6665_v43, 16  ;;  %v3498_v19 = vshll.u32 %v3365_v41, 16 }
 0x1ca   : > { %5356 = vmatpush3.bf16.msra.mxu1 %v5682_v47  ;;  %v5699_v47 = vld [vmem:[%s6940_s5 + $0xe8] sm:$0xff]   ;;  %v3382_v21 = vrot.slane %v3381_v8, 4 }
 0x1cb   : > { %5373 = vmatprep.subr.bf16.mxu1 %v5686_v32 }
 0x1cc   : > { %5248 = vmatpush3.bf16.msra.mxu0 %v5687_v40  ;;  %v3425_v40 = vrot.slane %v3423_v15, 4  ;;  %v3397_v15 = vsel %vm6097_vm12, %v3392_v36, %v6656_v63 }
 0x1cd   : > { %5358 = vmatmul.mubr.bf16.vlgmr.msra.gmra.mrb[0].mxu1 %v5685_v37  ;;  %5249 = vmatprep.subr.bf16.mxu0 %v5690_v31 }
 0x1ce   : > { %5374 = vmatpush3.bf16.msra.mxu1 %v5686_v32  ;;  %5361 = vmatprep.mubr.bf16.mxu1 %v5689_v60  ;;  %v3428_v32 = vrot.slane %v3426_v4, 5  ;;  %v6709_v4 = vld [vmem:[#allocation2 + $0x50] sm:$0x1] }
 0x1cf   : > { %5375 = vmatprep.subr.bf16.mxu1 %v5688_v34  ;;  %5234 = vmatmul.mubr.bf16.gmra.mrb[24].mxu0 %v4577_v49  ;;  %v6640_v49 = vld [vmem:[#allocation2 + $0x34] sm:$0xf] }
 0x1d0   : > { %5250 = vmatpush3.bf16.msra.mxu0 %v5690_v31  ;;  %5237 = vmatprep.mubr.bf16.mxu0 %v4578_v2  ;;  %v3404_v2 = vrot.slane %v3402_v23, 5  ;;  %v3432_v52 = vshll.u32 %v6640_v49, 16  ;;  %v3436_v38 = vshrl.u32 %v6640_v49, 16  ;;  %v3456_v31 = vshll.u32 %v6660_v12, 16  ;;  %v5705_v23 = vld [vmem:[%s6940_s5 + $0xf8] sm:$0xff]  }
 0x1d1   : > { %5251 = vmatprep.subr.bf16.mxu0 %v5693_v44 }
 0x1d2   : > { %5376 = vmatpush3.bf16.msra.mxu1 %v5688_v34  ;;  %v3405_v35 = vor.u32 %v3404_v2, %v3401_v45  ;;  %v6667_v37 = vrot.slane %v3432_v52, 5  ;;  %v3438_v60 = vrot.slane %v3436_v38, 4  ;;  %v3450_v34 = vshll.u32 %v3359_v7, 16  ;;  %v5703_v45 = vld [vmem:[#allocation2 + $0x6c] sm:$0xff]  }
 0x1d3   : > { %5377 = vmatprep.subr.bf16.mxu1 %v5692_v25  ;;  %v6701_v13 = vrot.slane %v3456_v31, 5  ;;  %v3387_v2 = vsel %vm6097_vm12, %v3382_v21, %v6642_v0  ;;  %v3473_v52 = vrot.slane %v3471_v54, 4  ;;  %v3476_v38 = vrot.slane %v3474_v53, 5  ;;  %v5709_v21 = vld [vmem:[%s6940_s5 + $0x200] sm:$0xff]  }
 0x1d4   : > { %5252 = vmatpush3.bf16.msra.mxu0 %v5693_v44  ;;  %v3460_v44 = vshrl.u32 %v6660_v12, 16  ;;  %v3452_v62 = vrot.slane %v3450_v34, 5  ;;  %v3466_v0 = vshll.u32 %v6699_v11, 16  ;;  %v4742_v63 = vcombine.low %v3387_v2, %v3397_v15 }
 0x1d5   : > { %5362 = vmatmul.mubr.bf16.gmra.mrb[4].mxu1 %v5691_v5  ;;  %5253 = vmatprep.subr.bf16.mxu0 %v5696_v22  ;;  %v3480_v5 = vshll.u32 %v6681_v10, 16 }
 0x1d6   : > { %5378 = vmatpush3.bf16.msra.mxu1 %v5692_v25  ;;  %5365 = vmatprep.mubr.bf16.mxu1 %v5695_v20  ;;  %v3484_v25 = vshrl.u32 %v6681_v10, 16  ;;  %v5707_v20 = vld [vmem:[#allocation2 + $0xc] sm:$0xff]   ;;  %v3462_v27 = vrot.slane %v3460_v44, 4  ;;  %v3468_v31 = vrot.slane %v3466_v0, 5  ;;  %v3504_v44 = vshll.u32 %v6717_v3, 16 }
 0x1d7   : > { %5379 = vmatprep.subr.bf16.mxu1 %v5694_v39  ;;  %5238 = vmatmul.mubr.bf16.gmra.mrb[28].mxu0 %v4579_v24  ;;  %v3447_v24 = vshrl.u32 %v3359_v7, 16 }
 0x1d8   : > { %5254 = vmatpush3.bf16.msra.mxu0 %v5696_v22  ;;  %5241 = vmatprep.mubr.bf16.mxu0 %v4580_v28  ;;  %v6683_v28 = vrot.slane %v3405_v35, 4  ;;  %v3439_v22 = vor.u32 %v3438_v60, %v6667_v37  ;;  %v3463_v35 = vor.u32 %v3462_v27, %v6701_v13  ;;  %v3477_v60 = vor.u32 %v3476_v38, %v3473_v52  ;;  %v3371_v38 = vld [vmem:[#allocation2 + $0x6c] sm:$0xf] }
 0x1d9   : > { %5255 = vmatprep.subr.bf16.mxu0 %v5699_v47  ;;  %v3449_v16 = vrot.slane %v3447_v24, 4  ;;  %v6733_v24 = vld [vmem:[#allocation2 + $0x64] sm:$0xf] }
 0x1da   : > { %5380 = vmatpush3.bf16.msra.mxu1 %v5694_v39  ;;  %v3429_v39 = vor.u32 %v3428_v32, %v3425_v40  ;;  %v3440_v7 = vrot.slane %v3439_v22, 4  ;;  %v3411_v26 = vsel %vm6097_vm12, %v6683_v28, %v6654_v14  ;;  %v3368_v40 = vld [vmem:[#allocation2 + $0x60] sm:$0xf]  ;;  %v5708_v32 = vld [vmem:[#allocation2 + $0x18] sm:$0xff]   ;;  %v5711_v14 = vld [vmem:[#allocation2 + $0x24] sm:$0xff]   ;;  %v3464_v53 = vrot.slane %v3463_v35, 4 }
 0x1db   : > { %5381 = vmatprep.subr.bf16.mxu1 %v5698_v59  ;;  %v3453_v8 = vor.u32 %v3452_v62, %v3449_v16  ;;  %v3522_v54 = vshll.u32 %v3368_v40, 16  ;;  %v3510_v16 = vrot.slane %v3508_v30, 4  ;;  %v5710_v62 = vld [vmem:[%s6940_s5 + $0x208] sm:$0xff]   ;;  %v3546_v35 = vshll.u32 %v3371_v38, 16 }
 0x1dc   : > { %5256 = vmatpush3.bf16.msra.mxu0 %v5699_v47  ;;  %v3486_v47 = vrot.slane %v3484_v25, 4  ;;  %v3430_v48 = vrot.slane %v3429_v39, 4  ;;  %v3528_v25 = vshll.u32 %v6733_v24, 16  ;;  %v3500_v39 = vrot.slane %v3498_v19, 5 }
 0x1dd   : > { %5366 = vmatmul.mubr.bf16.gmra.mrb[8].mxu1 %v5697_v17  ;;  %5257 = vmatprep.subr.bf16.mxu0 %v5702_v55  ;;  %v3444_v17 = vrot.slane %v3442_v29, 5  ;;  %v3454_v28 = vrot.slane %v3453_v8, 4  ;;  %v6749_v29 = vrot.slane %v3504_v44, 5  ;;  %v3524_v2 = vrot.slane %v3522_v54, 5 }
 0x1de   : > { %5382 = vmatpush3.bf16.msra.mxu1 %v5698_v59  ;;  %5369 = vmatprep.mubr.bf16.mxu1 %v5701_v61  ;;  %v6714_v59 = vrot.slane %v3480_v5, 5  ;;  %v3490_v61 = vshll.u32 %v6709_v4, 16  ;;  %v3435_v34 = vsel %vm6097_vm12, %v3430_v48, %v6667_v37  ;;  %v6745_v5 = vld [vmem:[#allocation2 + $0x5c] sm:$0x1]  ;;  %v6754_v15 = vrot.slane %v3528_v25, 5  ;;  %v5712_v48 = vld [vmem:[#allocation2 + $0x30] sm:$0xff]  }
 0x1df   : > { %5383 = vmatprep.subr.bf16.mxu1 %v5700_v33  ;;  %5242 = vmatmul.mubr.bf16.gmra.mrb[32].mxu0 %v4581_v9  ;;  %v3421_v9 = vsel %vm6097_vm12, %v6695_v6, %v6685_v18  ;;  %v3445_v36 = vsel %vm6097_vm12, %v3440_v7, %v3444_v17  ;;  %v3519_v18 = vshrl.u32 %v3368_v40, 16  ;;  %v3459_v0 = vsel %vm6097_vm12, %v3454_v28, %v6701_v13  ;;  %v6764_v7 = vld [vmem:[#allocation2 + $0x68] sm:$0x1]  ;;  %v5715_v17 = vld [vmem:[#allocation2 + $0x3c] sm:$0xff]  }
 0x1e0   : > { %5258 = vmatpush3.bf16.msra.mxu0 %v5702_v55  ;;  %5261 = vmatprep.mubr.bf16.mxu0 %v5707_v20  ;;  %v3495_v55 = vshrl.u32 %v3365_v41, 16  ;;  %v3492_v37 = vrot.slane %v3490_v61, 5  ;;  %v4743_v22 = vcombine.low %v3411_v26, %v3421_v9  ;;  %v4744_v27 = vcombine.low %v3435_v34, %v3445_v36  ;;  %v5714_v28 = vld [vmem:[%s6940_s5 + $0x218] sm:$0xff]   ;;  %v5716_v25 = vld [vmem:[#allocation2 + $0x48] sm:$0xff]  }
 0x1e1   : > { %5259 = vmatprep.subr.bf16.mxu0 %v5705_v23  ;;  %v3469_v41 = vsel %vm6097_vm12, %v3464_v53, %v3468_v31  ;;  %v3511_v9 = vor.u32 %v3510_v16, %v6749_v29  ;;  %v3543_v13 = vshrl.u32 %v3371_v38, 16  ;;  %v3548_v30 = vrot.slane %v3546_v35, 5  ;;  %v5717_v16 = vld [vmem:[%s6940_s5 + $0x220] sm:$0xff]  }
 0x1e2   : > { %5384 = vmatpush3.bf16.msra.mxu1 %v5700_v33  ;;  %v3487_v33 = vor.u32 %v3486_v47, %v6714_v59  ;;  %v3497_v6 = vrot.slane %v3495_v55, 4  ;;  %v6756_v47 = vld [vmem:[#allocation2 + $0x70] sm:$0xf]  ;;  %v4745_v55 = vcombine.low %v3459_v0, %v3469_v41  ;;  %v5718_v41 = vld [vmem:[%s6940_s5 + $0x228] sm:$0xff]   ;;  %v3777_v35 = vld [vmem:[#allocation2 + $0x24] sm:$0xe] }
 0x1e3   : > { %5385 = vmatprep.subr.bf16.mxu1 %v5704_v51  ;;  %v3552_v61 = vshll.u32 %v6756_v47, 16  ;;  %v3556_v40 = vshrl.u32 %v6756_v47, 16  ;;  %v3512_v34 = vrot.slane %v3511_v9, 4  ;;  %v3545_v44 = vrot.slane %v3543_v13, 4  ;;  %v5721_v9 = vld [vmem:[%s6940_s5 + $0x230] sm:$0xff]  }
 0x1e4   : > { %5260 = vmatpush3.bf16.msra.mxu0 %v5705_v23  ;;  %v3478_v23 = vrot.slane %v3477_v60, 4  ;;  %v3488_v20 = vrot.slane %v3487_v33, 4  ;;  %v3501_v26 = vor.u32 %v3500_v39, %v3497_v6  ;;  %v3538_v33 = vshll.u32 %v6764_v7, 16 }
 0x1e5   : > { %5370 = vmatmul.mubr.bf16.gmra.mrb[12].mxu1 %v5703_v45  ;;  %v3521_v45 = vrot.slane %v3519_v18, 4  ;;  %v3558_v36 = vrot.slane %v3556_v40, 4  ;;  %v3549_v6 = vor.u32 %v3548_v30, %v3545_v44  ;;  %v3778_v40 = vld [vmem:[#allocation2 + $0x30] sm:$0xe]  ;;  %v3779_v30 = vld [vmem:[#allocation2 + $0x3c] sm:$0xe] }
 0x1e6   : > { %5386 = vmatpush3.bf16.msra.mxu1 %v5704_v51  ;;  %5389 = vmatprep.mubr.bf16.mxu1 %v4742_v63  ;;  %v3532_v51 = vshrl.u32 %v6733_v24, 16  ;;  %v3514_v63 = vshll.u32 %v6745_v5, 16  ;;  %v3483_v8 = vsel %vm6097_vm12, %v3478_v23, %v6714_v59  ;;  %v3540_v53 = vrot.slane %v3538_v33, 5  ;;  %v5719_v23 = vld [vmem:[#allocation2 + $0x54] sm:$0xff]  }
 0x1e7   : > { %5387 = vmatprep.subr.bf16.mxu1 %v5706_v42  ;;  %5262 = vmatmul.mubr.bf16.vlgmr.msra.gmra.mrb[20].mxu0 %v5708_v32  ;;  %v5713_v32 = vld [vmem:[%s6940_s5 + $0x210] sm:$0xff]   ;;  %v3525_v59 = vor.u32 %v3524_v2, %v3521_v45  ;;  %v3776_v45 = vld [vmem:[#allocation2 + $0x18] sm:$0xe]  ;;  %v3550_v38 = vrot.slane %v3549_v6, 4 }
 0x1e8   : > { %5265 = vmatprep.mubr.bf16.mxu0 %v5711_v14  ;;  %v3534_v52 = vrot.slane %v3532_v51, 4  ;;  %v3502_v14 = vrot.slane %v3501_v26, 4  ;;  %v3516_v31 = vrot.slane %v3514_v63, 5  ;;  %v3817_v26 = vrot.slane %v6620_v56, 5  ;;  %v5722_v33 = vld [vmem:[%s6940_s5 + $0x238] sm:$0xff]  }
 0x1e9   : > { %v3526_v18 = vrot.slane %v3525_v59, 4  ;;  %v4759_v56 = vrot.slane %v3777_v35, 9 }
 0x1ea   : > { %5388 = vmatpush3.bf16.msra.mxu1 %v5706_v42  ;;  %v3493_v42 = vsel %vm6097_vm12, %v3488_v20, %v3492_v37  ;;  %v3535_v60 = vor.u32 %v3534_v52, %v6754_v15  ;;  %v6782_v37 = vld [vmem:[#allocation2 + $0x74] sm:$0x1]  ;;  %v3507_v51 = vsel %vm6097_vm12, %v3502_v14, %v6749_v29  ;;  %v3517_v20 = vsel %vm6097_vm12, %v3512_v34, %v3516_v31 }
 0x1eb   : > { %5405 = vmatprep.subr.bf16.mxu1 %v5709_v21  ;;  %v4746_v19 = vcombine.low %v3483_v8, %v3493_v42  ;;  %v4747_v2 = vcombine.low %v3507_v51, %v3517_v20  ;;  %v5720_v8 = vld [vmem:[#allocation2 + $0x60] sm:$0xff]   ;;  %v3819_v59 = vrot.slane %v3817_v26, 4  ;;  %v3827_v14 = vrot.slane %v6665_v43, 5 }
 0x1ec   : > { %v3536_v54 = vrot.slane %v3535_v60, 4  ;;  %v3820_v60 = vrot.slane %v6644_v46, 5  ;;  %v3831_v46 = vrot.slane %v6660_v12, 5  ;;  %v3838_v43 = vrot.slane %v6681_v10, 5 }
 0x1ed   : > { %5390 = vmatmul.mubr.bf16.vlgmr.msra.gmra.mrb[0].mxu1 %v4743_v22  ;;  %v3562_v22 = vshll.u32 %v6782_v37, 16  ;;  %v3841_v51 = vrot.slane %v6709_v4, 5  ;;  %v3845_v20 = vrot.slane %v6717_v3, 5  ;;  %v3782_v4 = vld [vmem:[#allocation2 + $0x60] sm:$0xe]  ;;  %v3855_v3 = vrot.slane %v6764_v7, 5 }
 0x1ee   : > { %5406 = vmatpush3.bf16.msra.mxu1 %v5709_v21  ;;  %5393 = vmatprep.mubr.bf16.mxu1 %v4744_v27  ;;  %v3554_v21 = vrot.slane %v3552_v61, 5  ;;  %v3541_v29 = vsel %vm6097_vm12, %v3536_v54, %v3540_v53  ;;  %v3810_v27 = vrot.slane %v6611_v57, 5  ;;  %v3824_v61 = vrot.slane %v6640_v49, 5 }
 0x1ef   : > { %5407 = vmatprep.subr.bf16.mxu1 %v5710_v62  ;;  %5266 = vmatmul.mubr.bf16.gmra.mrb[24].mxu0 %v5712_v48  ;;  %v3564_v0 = vrot.slane %v3562_v22, 5  ;;  %v3818_v49 = vsel %vm6352_vm1, %v4759_v56, %v3817_v26  ;;  %v3821_v34 = vsel %vm6352_vm1, %v3819_v59, %v3820_v60  ;;  %v3833_v54 = vrot.slane %v3831_v46, 4 }
 0x1f0   : > { %5269 = vmatprep.mubr.bf16.mxu0 %v5715_v17  ;;  %v3559_v39 = vor.u32 %v3558_v36, %v3554_v21  ;;  %v3812_v63 = vrot.slane %v3810_v27, 4  ;;  %v3813_v17 = vrot.slane %v6616_v58, 5  ;;  %v3555_v57 = vsel %vm6097_vm12, %v3550_v38, %v3554_v21  ;;  %v3780_v21 = vld [vmem:[#allocation2 + $0x48] sm:$0xe] }
 0x1f1   : > { %v4783_v36 = vcombine.low %v3818_v49, %v3821_v34  ;;  %v3834_v53 = vrot.slane %v6699_v11, 5  ;;  %v3840_v12 = vrot.slane %v3838_v43, 4  ;;  %v3852_v22 = vrot.slane %v6733_v24, 5  ;;  %v4937_v34 = vld [vmem:[%s5875_s25 + $0x8] sm:$0xff]  }
 0x1f2   : > { %5408 = vmatpush3.bf16.msra.mxu1 %v5710_v62  ;;  %v3531_v62 = vsel %vm6097_vm12, %v3526_v18, %v6754_v15  ;;  %v3560_v48 = vrot.slane %v3559_v39, 4  ;;  %v4758_v15 = vrot.slane %v3776_v45, 9  ;;  %v3814_v13 = vsel %vm6352_vm1, %v3812_v63, %v3813_v17  ;;  %v3781_v39 = vld [vmem:[#allocation2 + $0x54] sm:$0xe] }
 0x1f3   : > { %5409 = vmatprep.subr.bf16.mxu1 %v5713_v32  ;;  %v4748_v52 = vcombine.low %v3531_v62, %v3541_v29  ;;  %v4761_v18 = vrot.slane %v3779_v30, 9  ;;  %v3835_v10 = vsel %vm6352_vm1, %v3833_v54, %v3834_v53  ;;  %v3842_v11 = vsel %vm6352_vm1, %v3840_v12, %v3841_v51 }
 0x1f4   : > { %v3565_v42 = vsel %vm6097_vm12, %v3560_v48, %v3564_v0  ;;  %v3811_v58 = vsel %vm6352_vm1, %v4758_v15, %v3810_v27  ;;  %v4763_v29 = vrot.slane %v3781_v39, 9  ;;  %v3847_v27 = vrot.slane %v3845_v20, 4 }
 0x1f5   : > { %5394 = vmatmul.mubr.bf16.gmra.mrb[4].mxu1 %v4745_v55  ;;  %v4749_v1 = vcombine.low %v3555_v57, %v3565_v42  ;;  %v4760_v55 = vrot.slane %v3778_v40, 9  ;;  %v3848_v45 = vrot.slane %v6745_v5, 5  ;;  %v3859_v24 = vrot.slane %v6756_v47, 5 }
 0x1f6   : > { %5410 = vmatpush3.bf16.msra.mxu1 %v5713_v32  ;;  %5397 = vmatprep.mubr.bf16.mxu1 %v4746_v19  ;;  %v4782_v32 = vcombine.low %v3811_v58, %v3814_v13  ;;  %v3826_v19 = vrot.slane %v3824_v61, 4  ;;  %v3846_v38 = vsel %vm6352_vm1, %v4763_v29, %v3845_v20  ;;  %v4939_v20 = vld [vmem:[%s5875_s25 + $0x18] sm:$0xff]  }
 0x1f7   : > { %5411 = vmatprep.subr.bf16.mxu1 %v5714_v28  ;;  %5270 = vmatmul.mubr.bf16.gmra.mrb[28].mxu0 %v5716_v25  ;;  %v3825_v31 = vsel %vm6352_vm1, %v4760_v55, %v3824_v61  ;;  %v4762_v25 = vrot.slane %v3780_v21, 9  ;;  %v3849_v48 = vsel %vm6352_vm1, %v3847_v27, %v3848_v45  ;;  %v3861_v17 = vrot.slane %v3859_v24, 4 }
 0x1f8   : > { %5273 = vmatprep.mubr.bf16.mxu0 %v5719_v23  ;;  %v3828_v44 = vsel %vm6352_vm1, %v3826_v19, %v3827_v14  ;;  %v3832_v23 = vsel %vm6352_vm1, %v4761_v18, %v3831_v46  ;;  %v4787_v15 = vcombine.low %v3846_v38, %v3849_v48  ;;  %v6878_v14 = vld [vmem:[%s6941_s6] ss:$0 sm:$0xff]  ;;  %v4879_v27 = vunpack.c.l.bf16 %v4939_v20 }
 0x1f9   : > { %v3839_v6 = vsel %vm6352_vm1, %v4762_v25, %v3838_v43 }
 0x1fa   : > { %5412 = vmatpush3.bf16.msra.mxu1 %v5714_v28  ;;  %v4784_v28 = vcombine.low %v3825_v31, %v3828_v44  ;;  %v4786_v62 = vcombine.low %v3839_v6, %v3842_v11  ;;  %v4866_v44 = vld [vmem:[%s5875_s25] sm:$0xff]  }
 0x1fb   : > { %5413 = vmatprep.subr.bf16.mxu1 %v5717_v16  ;;  %v4867_v25 = vunpack.c.l.bf16 %v4866_v44  ;;  %v4868_v39 = vunpack.c.h.bf16 %v4866_v44 }
 0x1fd   : > { %5398 = vmatmul.mubr.bf16.gmra.mrb[8].mxu1 %v4747_v2  ;;  %v4764_v2 = vrot.slane %v3782_v4, 9 }
 0x1fe   : > { %5414 = vmatpush3.bf16.msra.mxu1 %v5717_v16  ;;  %5401 = vmatprep.mubr.bf16.mxu1 %v4748_v52  ;;  %v4785_v16 = vcombine.low %v3832_v23, %v3835_v10  ;;  %v3854_v52 = vrot.slane %v3852_v22, 4  ;;  %v4872_v23 = vunpack.c.h.bf16 %v4937_v34 }
 0x1ff   : > { %5415 = vmatprep.subr.bf16.mxu1 %v5718_v41  ;;  %5274 = vmatmul.mubr.bf16.gmra.mrb[32].mxu0 %v5720_v8  ;;  %v3853_v0 = vsel %vm6352_vm1, %v4764_v2, %v3852_v22  ;;  %v3862_v8 = vrot.slane %v6782_v37, 5  ;;  %v4938_v2 = vld [vmem:[%s5875_s25 + $0x10] sm:$0xff]  }
 0x200   : > { %v3856_v5 = vsel %vm6352_vm1, %v3854_v52, %v3855_v3 }
 0x201   : > { %v4788_v63 = vcombine.low %v3853_v0, %v3856_v5  ;;  %v3863_v47 = vsel %vm6352_vm1, %v3861_v17, %v3862_v8  ;;  %v4875_v8 = vunpack.c.l.bf16 %v4938_v2 }
 0x202   : > { %5416 = vmatpush3.bf16.msra.mxu1 %v5718_v41  ;;  %v3783_v41 = vld [vmem:[#allocation2 + $0x6c] sm:$0xe] }
 0x203   : > { %5417 = vmatprep.subr.bf16.mxu1 %v5721_v9  ;;  %v4765_v7 = vrot.slane %v3783_v41, 9 }
 0x205   : > { %5402 = vmatmul.mubr.bf16.gmra.mrb[12].mxu1 %v4749_v1  ;;  %v3860_v57 = vsel %vm6352_vm1, %v4765_v7, %v3859_v24 }
 0x206   : > { %5418 = vmatpush3.bf16.msra.mxu1 %v5721_v9  ;;  %5421 = vmatprep.mubr.bf16.mxu1 %v4782_v32  ;;  %v4789_v42 = vcombine.low %v3860_v57, %v3863_v47 }
 0x207   : > { %5419 = vmatprep.subr.bf16.mxu1 %v5722_v33 }
 0x20a   : > { %5420 = vmatpush3.bf16.msra.mxu1 %v5722_v33 }
 0x20d   : > { %5422 = vmatmul.mubr.bf16.vlgmr.msra.gmra.mrb[0].mxu1 %v4783_v36 }
 0x20e   : > { %5425 = vmatprep.mubr.bf16.mxu1 %v4784_v28  ;;  %v4871_v28 = vunpack.c.l.bf16 %v4937_v34 }
 0x215   : > { %5426 = vmatmul.mubr.bf16.gmra.mrb[4].mxu1 %v4785_v16 }
 0x216   : > { %5429 = vmatprep.mubr.bf16.mxu1 %v4786_v62 }
 0x21d   : > { %5430 = vmatmul.mubr.bf16.gmra.mrb[8].mxu1 %v4787_v15 }
 0x21e   : > { %5433 = vmatprep.mubr.bf16.mxu1 %v4788_v63 }
 0x225   : > { %5434 = vmatmul.mubr.bf16.gmra.mrb[12].mxu1 %v4789_v42 }
 0x2ba   : > { %v5263_v26 = vpop.f32.mrb[20].mxu0 }
 0x2bb   : > { %v2304_v9 = vpop.f32.mrb[21].mxu0 }
 0x2bc   : > { %v5264_v58 = vpop.f32.mrb[22].mxu0 }
 0x2bd   : > { %v2307_v13 = vpop.f32.mrb[23].mxu0 }
 0x2c2   : > { %v5267_v35 = vpop.f32.mrb[24].mxu0 }
 0x2c3   : > { %v2320_v61 = vpop.f32.mrb[25].mxu0 }
 0x2c4   : > { %v5268_v40 = vpop.f32.mrb[26].mxu0 }
 0x2c5   : > { %v2323_v37 = vpop.f32.mrb[27].mxu0 }
 0x2ca   : > { %v6859_v1 = vpop.f32.mrb[28].mxu0 }
 0x2cb   : > { %v6861_v32 = vpop.f32.mrb[29].mxu0 }
 0x2cc   : > { %v6863_v56 = vpop.f32.mrb[30].mxu0 }
 0x2cd   : > { %v6865_v50 = vpop.f32.mrb[31].mxu0 }
 0x2d2   : > { %v6867_v59 = vpop.f32.mrb[32].mxu0 }
 0x2d3   : > { %v6869_v60 = vpop.f32.mrb[33].mxu0 }
 0x2d4   : > { %v6871_v33 = vpop.f32.mrb[34].mxu0 }
 0x2d5   : > { %v6873_v55 = vpop.f32.mrb[35].mxu0 }
 0x2e0   : > { %v5423_v19 = vpop.f32.mrb[0].mxu1 }
 0x2e1   : > { %v5437_v49 = vadd.f32 %v5423_v19, %v5263_v26  ;;  %v3995_v46 = vpop.f32.mrb[1].mxu1  ;;  %v4876_v19 = vunpack.c.h.bf16 %v4938_v2 }
 0x2e2   : > { %v5438_v31 = vadd.f32 %v3995_v46, %v2304_v9  ;;  %v5424_v30 = vpop.f32.mrb[2].mxu1 }
 0x2e3   : > { %v4083_v43 = vadd.f32 %v5437_v49, %v6878_v14  ;;  %v5439_v21 = vadd.f32 %v5424_v30, %v5264_v58  ;;  %v3998_v36 = vpop.f32.mrb[3].mxu1  ;;  %v4880_v58 = vunpack.c.h.bf16 %v4939_v20 }
 0x2e4   : > { %v4081_v18 = vadd.f32 %v5438_v31, %v6878_v14  ;;  %v5440_v54 = vadd.f32 %v3998_v36, %v2307_v13 }
 0x2e5   : > { %vm4099_vm2 = vcmp.gt.f32.partialorder %v4083_v43, 0.0  ;;  %v4115_v53 = vmul.f32 0.1, %v4083_v43  ;;  %v4084_v12 = vadd.f32 %v5439_v21, %v6878_v14 }
 0x2e6   : > { %vm4097_vm3 = vcmp.gt.f32.partialorder %v4081_v18, 0.0  ;;  %v4113_v51 = vmul.f32 0.1, %v4081_v18  ;;  %v4082_v10 = vadd.f32 %v5440_v54, %v6878_v14 }
 0x2e7   : > { %v4131_v6 = vsel %vm4099_vm2, %v4083_v43, %v4115_v53  ;;  %vm4100_vm4 = vcmp.gt.f32.partialorder %v4084_v12, 0.0  ;;  %v4116_v11 = vmul.f32 0.1, %v4084_v12  ;;  %v4940_v43 = vld [vmem:[%s5875_s25 + $0x20] sm:$0xff]  }
 0x2e8   : > { %v4129_v22 = vsel %vm4097_vm3, %v4081_v18, %v4113_v51  ;;  %vm4098_vm5 = vcmp.gt.f32.partialorder %v4082_v10, 0.0  ;;  %v4114_v4 = vmul.f32 0.1, %v4082_v10  ;;  %v5427_v16 = vpop.f32.mrb[4].mxu1  ;;  %v4179_v52 = vadd.f32 %v4871_v28, %v4131_v6 }
 0x2e9   : > { %v4132_v62 = vsel %vm4100_vm4, %v4084_v12, %v4116_v11  ;;  %v5441_v29 = vadd.f32 %v5427_v16, %v5267_v35  ;;  %v4011_v45 = vpop.f32.mrb[5].mxu1  ;;  %v4177_v0 = vadd.f32 %v4867_v25, %v4129_v22  ;;  %v4941_v35 = vld [vmem:[%s5875_s25 + $0x28] sm:$0xff]   ;;  %v4883_v20 = vunpack.c.l.bf16 %v4940_v43  ;;  %v4943_v16 = vld [vmem:[%s5875_s25 + $0x38] sm:$0xff]  }
 0x2ea   : > { %v4180_v3 = vadd.f32 %v4872_v23, %v4132_v62  ;;  %v4130_v38 = vsel %vm4098_vm5, %v4082_v10, %v4114_v4  ;;  %v5442_v48 = vadd.f32 %v4011_v45, %v2320_v61  ;;  %v5428_v24 = vpop.f32.mrb[6].mxu1  ;;  %v4887_v44 = vunpack.c.l.bf16 %v4941_v35 }
 0x2eb   : > { %v4178_v5 = vadd.f32 %v4868_v39, %v4130_v38  ;;  %v4087_v41 = vadd.f32 %v5441_v29, %v6878_v14  ;;  %v5443_v15 = vadd.f32 %v5428_v24, %v5268_v40  ;;  %v4014_v63 = vpop.f32.mrb[7].mxu1  ;;  %v4888_v4 = vunpack.c.h.bf16 %v4941_v35  ;;  %v4942_v24 = vld [vmem:[%s5875_s25 + $0x30] sm:$0xff]  }
 0x2ec   : > { %v4905_v7 = vpack.c.bf16 %v4180_v3, %v4179_v52  ;;  %v4085_v17 = vadd.f32 %v5442_v48, %v6878_v14  ;;  %v5444_v57 = vadd.f32 %v4014_v63, %v2323_v37  ;;  %v4895_v38 = vunpack.c.l.bf16 %v4943_v16 }
 0x2ed   : > { %v4900_v47 = vpack.c.bf16 %v4178_v5, %v4177_v0  ;;  %vm4103_vm6 = vcmp.gt.f32.partialorder %v4087_v41, 0.0  ;;  %v4119_v42 = vmul.f32 0.1, %v4087_v41  ;;  %v4088_v26 = vadd.f32 %v5443_v15, %v6878_v14 }
 0x2ee   : > { %4944 = vst [vmem:[%s5880_s0 + $0x8] sm:$0xff] %v4905_v7   ;;  %vm4101_vm7 = vcmp.gt.f32.partialorder %v4085_v17, 0.0  ;;  %v4117_v9 = vmul.f32 0.1, %v4085_v17  ;;  %v4086_v13 = vadd.f32 %v5444_v57, %v6878_v14 }
 0x2ef   : > { %4901 = vst [vmem:[%s5880_s0] sm:$0xff] %v4900_v47   ;;  %v4135_v61 = vsel %vm4103_vm6, %v4087_v41, %v4119_v42  ;;  %vm4104_vm8 = vcmp.gt.f32.partialorder %v4088_v26, 0.0  ;;  %v4120_v40 = vmul.f32 0.1, %v4088_v26 }
 0x2f0   : > { %v4133_v49 = vsel %vm4101_vm7, %v4085_v17, %v4117_v9  ;;  %vm4102_vm10 = vcmp.gt.f32.partialorder %v4086_v13, 0.0  ;;  %v4118_v37 = vmul.f32 0.1, %v4086_v13  ;;  %v5431_v34 = vpop.f32.mrb[8].mxu1  ;;  %v4183_v21 = vadd.f32 %v4879_v27, %v4135_v61 }
 0x2f1   : > { %v4136_v46 = vsel %vm4104_vm8, %v4088_v26, %v4120_v40  ;;  %v5445_v31 = vadd.f32 %v5431_v34, %v6859_v1  ;;  %v4027_v30 = vpop.f32.mrb[9].mxu1  ;;  %v4181_v53 = vadd.f32 %v4875_v8, %v4133_v49  ;;  %v4884_v27 = vunpack.c.h.bf16 %v4940_v43 }
 0x2f2   : > { %v4184_v36 = vadd.f32 %v4880_v58, %v4136_v46  ;;  %v4134_v28 = vsel %vm4102_vm10, %v4086_v13, %v4118_v37  ;;  %v5446_v18 = vadd.f32 %v4027_v30, %v6861_v32  ;;  %v5432_v54 = vpop.f32.mrb[10].mxu1  ;;  %v4891_v26 = vunpack.c.l.bf16 %v4942_v24 }
 0x2f3   : > { %v4182_v25 = vadd.f32 %v4876_v19, %v4134_v28  ;;  %v4091_v12 = vadd.f32 %v5445_v31, %v6878_v14  ;;  %v5447_v51 = vadd.f32 %v5432_v54, %v6863_v56  ;;  %v4030_v23 = vpop.f32.mrb[11].mxu1  ;;  %v4896_v61 = vunpack.c.h.bf16 %v4943_v16 }
 0x2f4   : > { %v4915_v1 = vpack.c.bf16 %v4184_v36, %v4183_v21  ;;  %v4089_v10 = vadd.f32 %v5446_v18, %v6878_v14  ;;  %v5448_v6 = vadd.f32 %v4030_v23, %v6865_v50  ;;  %v4892_v49 = vunpack.c.h.bf16 %v4942_v24 }
 0x2f5   : > { %v4910_v11 = vpack.c.bf16 %v4182_v25, %v4181_v53  ;;  %vm4107_vm13 = vcmp.gt.f32.partialorder %v4091_v12, 0.0  ;;  %v4123_v39 = vmul.f32 0.1, %v4091_v12  ;;  %v4092_v32 = vadd.f32 %v5447_v51, %v6878_v14 }
 0x2f6   : > { %4946 = vst [vmem:[%s5880_s0 + $0x18] sm:$0xff] %v4915_v1   ;;  %vm4105_vm14 = vcmp.gt.f32.partialorder %v4089_v10, 0.0  ;;  %v4121_v22 = vmul.f32 0.1, %v4089_v10  ;;  %v4090_v56 = vadd.f32 %v5448_v6, %v6878_v14 }
 0x2f7   : > { %4945 = vst [vmem:[%s5880_s0 + $0x10] sm:$0xff] %v4910_v11   ;;  %v4139_v62 = vsel %vm4107_vm13, %v4091_v12, %v4123_v39  ;;  %vm4108_vm9 = vcmp.gt.f32.partialorder %v4092_v32, 0.0  ;;  %v4124_v29 = vmul.f32 0.1, %v4092_v32 }
 0x2f8   : > { %v4137_v45 = vsel %vm4105_vm14, %v4089_v10, %v4121_v22  ;;  %vm4106_vm11 = vcmp.gt.f32.partialorder %v4090_v56, 0.0  ;;  %v4122_v50 = vmul.f32 0.1, %v4090_v56  ;;  %v5435_v2 = vpop.f32.mrb[12].mxu1  ;;  %v4187_v0 = vadd.f32 %v4887_v44, %v4139_v62 }
 0x2f9   : > { %v4140_v52 = vsel %vm4108_vm9, %v4092_v32, %v4124_v29  ;;  %v5449_v3 = vadd.f32 %v5435_v2, %v6867_v59  ;;  %v4043_v48 = vpop.f32.mrb[13].mxu1  ;;  %v4185_v7 = vadd.f32 %v4883_v20, %v4137_v45 }
 0x2fa   : > { %v4188_v5 = vadd.f32 %v4888_v4, %v4140_v52  ;;  %v4138_v41 = vsel %vm4106_vm11, %v4090_v56, %v4122_v50  ;;  %v5450_v15 = vadd.f32 %v4043_v48, %v6869_v60  ;;  %v5436_v63 = vpop.f32.mrb[14].mxu1 }
 0x2fb   : > { %v4186_v17 = vadd.f32 %v4884_v27, %v4138_v41  ;;  %v4095_v8 = vadd.f32 %v5449_v3, %v6878_v14  ;;  %v5451_v57 = vadd.f32 %v5436_v63, %v6871_v33  ;;  %v4046_v47 = vpop.f32.mrb[15].mxu1 }
 0x2fc   : > { %v4925_v42 = vpack.c.bf16 %v4188_v5, %v4187_v0  ;;  %v4093_v59 = vadd.f32 %v5450_v15, %v6878_v14  ;;  %v5452_v9 = vadd.f32 %v4046_v47, %v6873_v55 }
 0x2fd   : > { %v4920_v58 = vpack.c.bf16 %v4186_v17, %v4185_v7  ;;  %vm4111_vm12 = vcmp.gt.f32.partialorder %v4095_v8, 0.0  ;;  %v4127_v13 = vmul.f32 0.1, %v4095_v8  ;;  %v4096_v60 = vadd.f32 %v5451_v57, %v6878_v14 }
 0x2fe   : > { %4948 = vst [vmem:[%s5880_s0 + $0x28] sm:$0xff] %v4925_v42   ;;  %vm4109_vm15 = vcmp.gt.f32.partialorder %v4093_v59, 0.0  ;;  %v4125_v35 = vmul.f32 0.1, %v4093_v59  ;;  %v4094_v40 = vadd.f32 %v5452_v9, %v6878_v14 }
 0x2ff   : > { %4947 = vst [vmem:[%s5880_s0 + $0x20] sm:$0xff] %v4920_v58   ;;  %v4143_v33 = vsel %vm4111_vm12, %v4095_v8, %v4127_v13  ;;  %vm4112_vm0 = vcmp.gt.f32.partialorder %v4096_v60, 0.0  ;;  %v4128_v19 = vmul.f32 0.1, %v4096_v60 }
 0x300   : > { %v4141_v37 = vsel %vm4109_vm15, %v4093_v59, %v4125_v35  ;;  %vm4110_vm1 = vcmp.gt.f32.partialorder %v4094_v40, 0.0  ;;  %v4126_v55 = vmul.f32 0.1, %v4094_v40  ;;  %v4191_v46 = vadd.f32 %v4895_v38, %v4143_v33 }
 0x301   : > { %v4144_v34 = vsel %vm4112_vm0, %v4096_v60, %v4128_v19  ;;  %v4189_v30 = vadd.f32 %v4891_v26, %v4141_v37 }
 0x302   : > { %v4192_v31 = vadd.f32 %v4896_v61, %v4144_v34  ;;  %v4142_v44 = vsel %vm4110_vm1, %v4094_v40, %v4126_v55 }
 0x303   : > { %v4190_v43 = vadd.f32 %v4892_v49, %v4142_v44 }
 0x304   : > { %v4935_v21 = vpack.c.bf16 %v4192_v31, %v4191_v46 }
 0x305   : > { %v4930_v36 = vpack.c.bf16 %v4190_v43, %v4189_v30 }
 0x306   : > { %4950 = vst [vmem:[%s5880_s0 + $0x38] sm:$0xff] %v4935_v21  }
 0x307   : > { %4949 = vst [vmem:[%s5880_s0 + $0x30] sm:$0xff] %v4930_v36  }
 0x308 PF: > { %s18_s9 = sadd.s32 1, %s5765_s9   ;;  %s6965_s27 = smov %s5757_s29 }
 0x309   : > { %p15_p12 = scmp.ge.s32.totalorder %s18_s9, 6   ;;  %s6966_s28 = smov %s5761_s30 }
 0x30a   : > { %s6967_s29 = smov %s6970_s10  ;;  %s6968_s30 = smov %s6974_s11 }
 0x30b   :  { %17 = sbr.rel (!%p15_p12) target bundleno = 3 (0x3), region = 110 }

</bundles_post_ra>
